<compile_context>
chip_gen: v7x
topology: tpu7x:2x2x1
jax: 0.10.0
libtpu: 0.0.40
codegen_flags: <defaults>
</compile_context>

<pallas_src>
import functools
import math

import jax
import jax.numpy as jnp
from jax import lax
from jax.experimental import pallas as pl
from jax.experimental.pallas import tpu as pltpu

F32 = jnp.float32
BF16 = jnp.bfloat16


def _layernorm(y, g, b, eps=1e-5):
    mu = jnp.mean(y, axis=-1, keepdims=True)
    yc = y - mu
    var = jnp.mean(yc * yc, axis=-1, keepdims=True)
    return yc * lax.rsqrt(var + eps) * g + b


def _mm(a, w_bf16):
    # bf16 x bf16 MXU matmul, f32 accumulation.
    return jnp.dot(a.astype(BF16), w_bf16, preferred_element_type=F32)


def _compiler_params(dims):
    # Derive the VMEM limit from the actual chip instead of hardcoding 64 MiB
    # (which is the *entire* per-core VMEM on v7x): request <= 3/4 of capacity.
    kw = dict(dimension_semantics=dims)
    try:
        cap = int(pltpu.get_tpu_info().vmem_capacity_bytes)
        kw["vmem_limit_bytes"] = (cap * 3) // 4
    except Exception:
        pass  # fall back to compiler default
    return pltpu.CompilerParams(**kw)


def _seq_tiling(T):
    """Pick a sequence tile and a padded length (multiple of the tile)."""
    if T <= 128:
        tile = -(-T // 8) * 8           # round up to a sublane multiple
        return tile, tile
    # TODO(synk): prefer 128 on v5e (128-wide MXU); 256 helps v6e/v7x MXU fill.
    for cand in (256, 128):
        if T % cand == 0:
            return cand, T
    # Ragged long T: pad to a multiple of 128 instead of falling back to a
    # full (T, T) score tile.
    return 128, -(-T // 128) * 128


def _rope_tables_channels(T, n_head, head_size, theta=10000.0):
    """Split-half (GPT-NeoX) RoPE tables replicated over heads, in (T, C)
    channel layout, with the rotate-half sign folded into the sin tables so
    the kernel only needs two lane-rolls + two FMAs."""
    half = head_size // 2
    freqs = theta ** (-(jnp.arange(half, dtype=F32) * 2.0 / head_size))
    ang = jnp.arange(T, dtype=F32)[:, None] * freqs[None, :]          # (T, K/2)
    cos = jnp.concatenate([jnp.cos(ang), jnp.cos(ang)], axis=-1)      # (T, K)
    sin = jnp.sin(ang)
    sin_a = jnp.concatenate([-sin, jnp.zeros_like(sin)], axis=-1)     # 1st half
    sin_b = jnp.concatenate([jnp.zeros_like(sin), sin], axis=-1)      # 2nd half
    tile_h = lambda a: jnp.tile(a, (1, n_head))                       # (T, C)
    return tile_h(cos), tile_h(sin_a), tile_h(sin_b)


# ---------------------------------------------------------------------------
# Kernel 1: token-shift mixes + LoRA + q/k/v projections + layernorms + RoPE
# ---------------------------------------------------------------------------
def mix_qkv_kernel(
    x_ref, xo_ref, kc_ref, ss_ref, cos_ref, sina_ref, sinb_ref,
    maa_ref, mqw1_ref, mqw2_ref, mkvw1_ref, mkvw2_ref,
    kw1_ref, kw2_ref, vw1_ref, vw2_ref,
    wq_ref, lng_ref, lnb_ref,
    q_ref, k_ref, v_ref,
    carry_ref,
    *, head_size: int,
):
    t = pl.program_id(1)
    x = x_ref[0]       # (TT, C) f32
    xo = xo_ref[0]     # (TT, C) f32
    kc = kc_ref[0]     # (TT, C) f32
    TT, C = x.shape

    # --- token-shift carry: row TT-1 of the previous tile ---------------------
    @pl.when(t == 0)
    def _():
        carry_ref[0:1, :] = ss_ref[0]                      # x carry = shift_state
        carry_ref[1:3, :] = jnp.zeros((2, C), F32)         # xo_norm / k_cache carry = 0

    prev = carry_ref[...]                                  # (3, C), read after init

    # rms_norm(xo) in f32
    xon = xo * lax.rsqrt(jnp.mean(xo * xo, axis=-1, keepdims=True) + 1e-8)

    row_t = lax.broadcasted_iota(jnp.int32, (TT, 1), 0)
    first = row_t == 0

    def tshift(y, first_row):
        # out[0] = first_row, out[i] = y[i-1]   (ZeroPad2d((0,0,1,-1)) semantics)
        return jnp.where(first, first_row, pltpu.roll(y, shift=1, axis=0))

    dxprev = tshift(x, prev[0:1, :]) - x
    dxoprev = tshift(xon, prev[1:2, :]) - xon
    dkprev = tshift(kc, prev[2:3, :]) - kc

    # update carry for the next tile (prev was already read into a value)
    carry_ref[0:1, :] = x[TT - 1:TT, :]
    carry_ref[1:2, :] = xon[TT - 1:TT, :]
    carry_ref[2:3, :] = kc[TT - 1:TT, :]

    maa = maa_ref[...]         # (5, C): [maa_x, maa_q, maa_v_cache, maa_k, maa_v]
    lng = lng_ref[...]         # (3, C)
    lnb = lnb_ref[...]         # (3, C)

    # ---- q-mix LoRA ----------------------------------------------------------
    xxx = x + dxprev * maa[0:1, :]                               # time_maa_x
    mq = _mm(jnp.tanh(_mm(xxx, mqw1_ref[...])), mqw2_ref[...])

    # ---- kv mixing LoRA ------------------------------------------------------
    xxx2 = xon + dxoprev * maa[2:3, :]                           # time_maa_v_cache
    tkv = jnp.tanh(_mm(xxx2, mkvw1_ref[...]))                    # (TT, 2*D_MIX) f32
    d_mix = mkvw1_ref.shape[1] // 2
    mk = _mm(tkv[:, :d_mix], mkvw2_ref[0])
    mv = _mm(tkv[:, d_mix:], mkvw2_ref[1])

    xq = x + dxprev * (maa[1:2, :] + mq)                         # time_maa_q
    k = kc + dkprev * (maa[3:4, :] + mk)                         # time_maa_k
    v = xon + dxoprev * (maa[4:5, :] + mv)                       # time_maa_v

    k = k + _mm(jnp.tanh(_mm(k, kw1_ref[...])), kw2_ref[...])    # key LoRA
    v = v + _mm(jnp.tanh(_mm(v, vw1_ref[...])), vw2_ref[...])    # value LoRA
    q = _mm(xq, wq_ref[...])                                     # query proj (no bias)

    # LayerNorms in f32; fold 1/sqrt(head_size) attention scale into q.
    scale = 1.0 / math.sqrt(head_size)
    q = _layernorm(q, lng[0:1, :], lnb[0:1, :]) * scale          # ln_q (+ scale)
    k = _layernorm(k, lng[1:2, :], lnb[1:2, :])                  # ln_k
    v = _layernorm(v, lng[2:3, :], lnb[2:3, :])                  # ln_v

    # ---- RoPE (split-half per head) pre-applied here, once ------------------
    # rot(x)[first half] = -x[second half]; rot(x)[second half] = x[first half].
    # Both rolls stay within-head where the sin table is nonzero; the sign is
    # folded into sin_a.  Rolls run on the XLU (near-free next to the matmuls).
    half = head_size // 2
    cos = cos_ref[...]
    sa = sina_ref[...]
    sb = sinb_ref[...]

    def rope(y):
        down = pltpu.roll(y, shift=C - half, axis=1)   # y[:, j + half]
        up = pltpu.roll(y, shift=half, axis=1)         # y[:, j - half]
        return y * cos + down * sa + up * sb

    q = rope(q)
    k = rope(k)

    q_ref[0] = q.astype(BF16)
    k_ref[0] = k.astype(BF16)
    v_ref[0] = v.astype(BF16)


# ---------------------------------------------------------------------------
# Kernel 2: causal flash attention (head-batched, online softmax, RoPE already
#           applied, clamped kv DMA, diagonal-only masking, bf16 output)
# ---------------------------------------------------------------------------
def flash_attn_kernel(q_ref, k_ref, v_ref, o_ref, m_ref, l_ref, acc_ref,
                      *, tq: int, tk: int, n_head: int, head_size: int):
    qi = pl.program_id(1)
    ki = pl.program_id(2)

    @pl.when(ki == 0)
    def _():
        m_ref[...] = jnp.full(m_ref.shape, -1e30, F32)
        l_ref[...] = jnp.zeros(l_ref.shape, F32)
        acc_ref[...] = jnp.zeros(acc_ref.shape, F32)

    def attend(masked):
        if masked:
            qpos = qi * tq + lax.broadcasted_iota(jnp.int32, (tq, tk), 0)
            kpos = ki * tk + lax.broadcasted_iota(jnp.int32, (tq, tk), 1)
            causal = qpos >= kpos
        for h in range(n_head):
            c0, c1 = h * head_size, (h + 1) * head_size
            qh = q_ref[0, :, c0:c1]                               # (tq, K) bf16
            kh = k_ref[0, :, c0:c1]                               # (tk, K) bf16
            vh = v_ref[0, :, c0:c1]                               # (tk, K) bf16
            s = lax.dot_general(qh, kh, (((1,), (1,)), ((), ())),
                                preferred_element_type=F32)       # (tq, tk)
            if masked:
                s = jnp.where(causal, s, -1e30)
            m_prev = m_ref[h]                                     # (tq, 1)
            m_new = jnp.maximum(m_prev, jnp.max(s, axis=-1, keepdims=True))
            alpha = jnp.exp(m_prev - m_new)
            p = jnp.exp(s - m_new)
            l_ref[h] = alpha * l_ref[h] + jnp.sum(p, axis=-1, keepdims=True)
            acc_ref[:, c0:c1] = alpha * acc_ref[:, c0:c1] + jnp.dot(
                p.astype(BF16), vh, preferred_element_type=F32)
            m_ref[h] = m_new

    @pl.when(ki < qi)          # interior tiles: no mask needed (fully causal-ok)
    def _():
        attend(masked=False)

    @pl.when(ki == qi)         # diagonal tile: mask, then finalize + write bf16
    def _():
        attend(masked=True)
        for h in range(n_head):
            c0, c1 = h * head_size, (h + 1) * head_size
            inv = pl.reciprocal(l_ref[h], approx=True)
            o_ref[0, :, c0:c1] = (acc_ref[:, c0:c1] * inv).astype(BF16)
    # (ki > qi steps: clamped index map re-references the resident kv block, so
    #  no DMA is issued and no compute runs.)


# ---------------------------------------------------------------------------
# Kernel 3: ln_x + output projection
# ---------------------------------------------------------------------------
def out_proj_kernel(att_ref, g_ref, b_ref, wo_ref, out_ref):
    y = _layernorm(att_ref[0].astype(F32), g_ref[...], b_ref[...])   # f32 stats
    out_ref[0] = jnp.dot(y.astype(BF16), wo_ref[...], preferred_element_type=F32)


# ---------------------------------------------------------------------------
# Wrapper
# ---------------------------------------------------------------------------
@functools.partial(jax.jit, static_argnames=("n_head", "head_size"))
def tmix_gold_forward(x, xo, k_cache, shift_state, params, *, n_head, head_size):
    B, T, C = x.shape
    H, K = n_head, head_size

    tile, Tp = _seq_tiling(T)
    nT = Tp // tile

    if Tp != T:
        padT = ((0, 0), (0, Tp - T), (0, 0))
        xp = jnp.pad(x, padT)
        xop = jnp.pad(xo, padT)
        kcp = jnp.pad(k_cache, padT)
    else:
        xp, xop, kcp = x, xo, k_cache

    ss3 = shift_state.reshape(B, 1, C)
    cosC, sinA, sinB = _rope_tables_channels(Tp, H, K)

    DM = params["maa_q_w1"].shape[1]
    DV = params["key_w1"].shape[1]

    # ------------------ kernel 1: mixes + q/k/v (+RoPE) -----------------------
    w1 = [params["maa"], params["maa_q_w1"], params["maa_q_w2"],
          params["maa_kv_w1"], params["maa_kv_w2"],
          params["key_w1"], params["key_w2"],
          params["value_w1"], params["value_w2"],
          params["wq_t"], params["ln_qkv_g"], params["ln_qkv_b"]]

    bspec_tile = pl.BlockSpec((1, tile, C), lambda b, t: (b, t, 0))
    bspec_ss = pl.BlockSpec((1, 1, C), lambda b, t: (b, 0, 0))
    bspec_tab = pl.BlockSpec((tile, C), lambda b, t: (t, 0))

    def wspec1(arr):
        nd = arr.ndim
        return pl.BlockSpec(arr.shape, lambda b, t, nd=nd: (0,) * nd)

    flops1 = B * Tp * (12 * C * DM + 8 * C * DV + 2 * C * C)
    bytes1 = (4 * 6 * B * Tp * C + 4 * B * C + 2 * 3 * B * Tp * C
              + 2 * (C * C + 6 * C * DM + 4 * C * DV) + 4 * 11 * C)

    q, k, v = pl.pallas_call(
        functools.partial(mix_qkv_kernel, head_size=K),
        out_shape=(jax.ShapeDtypeStruct((B, Tp, C), BF16),
                   jax.ShapeDtypeStruct((B, Tp, C), BF16),
                   jax.ShapeDtypeStruct((B, Tp, C), BF16)),
        grid_spec=pltpu.PrefetchScalarGridSpec(
            num_scalar_prefetch=0, grid=(B, nT),
            in_specs=[bspec_tile, bspec_tile, bspec_tile, bspec_ss,
                      bspec_tab, bspec_tab, bspec_tab]
                     + [wspec1(w) for w in w1],
            out_specs=(bspec_tile, bspec_tile, bspec_tile),
            scratch_shapes=[pltpu.VMEM((3, C), F32)]),        # token-shift carry
        compiler_params=_compiler_params(("parallel", "arbitrary")),
        cost_estimate=pl.CostEstimate(
            flops=flops1, transcendentals=B * Tp * (3 * DM + 2 * DV),
            bytes_accessed=bytes1),
    )(xp, xop, kcp, ss3, cosC, sinA, sinB, *w1)

    # ------------------ kernel 2: causal flash attention ----------------------
    qspec = pl.BlockSpec((1, tile, C), lambda b, qi, ki: (b, qi, 0))
    # Clamp ki so fully-masked kv tiles re-reference the resident block (no DMA).
    kvspec = pl.BlockSpec((1, tile, C),
                          lambda b, qi, ki: (b, jnp.minimum(ki, qi), 0))
    ospec = pl.BlockSpec((1, tile, C), lambda b, qi, ki: (b, qi, 0))

    flops2 = 2 * B * Tp * Tp * C                           # causal-halved qk + pv
    bytes2 = 2 * B * Tp * C * (3 + nT)

    o = pl.pallas_call(
        functools.partial(flash_attn_kernel, tq=tile, tk=tile,
                          n_head=H, head_size=K),
        out_shape=jax.ShapeDtypeStruct((B, Tp, C), BF16),
        grid_spec=pltpu.PrefetchScalarGridSpec(
            num_scalar_prefetch=0, grid=(B, nT, nT),
            in_specs=[qspec, kvspec, kvspec],
            out_specs=ospec,
            scratch_shapes=[pltpu.VMEM((H, tile, 1), F32),   # running max
                            pltpu.VMEM((H, tile, 1), F32),   # running denom
                            pltpu.VMEM((tile, C), F32)]),    # accumulator
        compiler_params=_compiler_params(("parallel", "parallel", "arbitrary")),
        cost_estimate=pl.CostEstimate(
            flops=flops2, transcendentals=B * H * Tp * Tp // 2,
            bytes_accessed=bytes2),
    )(q, k, v)

    # ------------------ kernel 3: ln_x + output projection --------------------
    a_spec = pl.BlockSpec((1, tile, C), lambda b, t: (b, t, 0))

    def wspec3(arr):
        nd = arr.ndim
        return pl.BlockSpec(arr.shape, lambda b, t, nd=nd: (0,) * nd)

    out_p = pl.pallas_call(
        out_proj_kernel,
        out_shape=jax.ShapeDtypeStruct((B, Tp, C), F32),
        grid_spec=pltpu.PrefetchScalarGridSpec(
            num_scalar_prefetch=0, grid=(B, nT),
            in_specs=[a_spec, wspec3(params["ln_x_g"]), wspec3(params["ln_x_b"]),
                      wspec3(params["wo_t"])],
            out_specs=a_spec),
        compiler_params=_compiler_params(("parallel", "parallel")),
        cost_estimate=pl.CostEstimate(
            flops=2 * B * Tp * C * C, transcendentals=0,
            bytes_accessed=6 * B * Tp * C + 2 * C * C + 8 * C),
    )(o, params["ln_x_g"], params["ln_x_b"], params["wo_t"])

    out = out_p[:, :T, :] if Tp != T else out_p
    # TimeMixState: wkv_state is passed through unchanged by the reference module;
    # new shift_state is the last real input row of x.
    return out, x[:, -1, :]


# ---------------------------------------------------------------------------
# Parameter construction (plain JAX glue)
# ---------------------------------------------------------------------------
def init_params(key, *, n_embd, dim_att, head_size, n_layer, layer_id):
    C = n_embd
    D_MIX_LORA = 32
    D_VALUE_LORA = max(n_embd // 16, 64)

    r0 = layer_id / (n_layer - 1)
    r1 = 1.0 - layer_id / n_layer
    ddd = jnp.arange(C, dtype=jnp.float32) / C
    maa = jnp.stack([
        1.0 - ddd ** r1,                 # time_maa_x
        1.0 - ddd ** (0.5 * r1),         # time_maa_q
        1.0 - ddd ** r1,                 # time_maa_v_cache
        1.0 - ddd ** r1,                 # time_maa_k
        1.0 - (ddd ** r1 + 0.3 * r0),    # time_maa_v
    ], axis=0)

    ks = jax.random.split(key, 10)
    u = lambda k, shape, lim=0.01: jax.random.uniform(k, shape, jnp.float32, -lim, lim)

    # NOTE: the PyTorch __init__ zeros the *_w1 LoRA weights; small random values
    # here so the whole LoRA path is exercised numerically.  Matmul weights are
    # stored in bf16 (MXU-native); norms/mixes stay f32.
    return dict(
        maa=maa,
        maa_q_w1=u(ks[0], (C, D_MIX_LORA)).astype(BF16),
        maa_q_w2=u(ks[1], (D_MIX_LORA, C)).astype(BF16),
        maa_kv_w1=u(ks[2], (C, 2 * D_MIX_LORA)).astype(BF16),
        maa_kv_w2=u(ks[3], (2, D_MIX_LORA, C)).astype(BF16),
        key_w1=u(ks[4], (C, D_VALUE_LORA)).astype(BF16),
        key_w2=u(ks[5], (D_VALUE_LORA, dim_att)).astype(BF16),
        value_w1=u(ks[6], (C, D_VALUE_LORA)).astype(BF16),
        value_w2=u(ks[7], (D_VALUE_LORA, dim_att)).astype(BF16),
        # nn.Linear weights, stored pre-transposed so y = x @ w_t
        wq_t=u(ks[8], (n_embd, dim_att), 1.0 / math.sqrt(n_embd)).astype(BF16),
        wo_t=u(ks[9], (dim_att, n_embd), 1.0 / math.sqrt(dim_att)).astype(BF16),
        ln_qkv_g=jnp.ones((3, dim_att), jnp.float32),   # ln_q/k/v gamma
        ln_qkv_b=jnp.zeros((3, dim_att), jnp.float32),  # ln_q/k/v beta
        ln_x_g=jnp.ones((1, dim_att), jnp.float32),
        ln_x_b=jnp.zeros((1, dim_att), jnp.float32),
    )


# ---------------------------------------------------------------------------
# Pure-JAX f32 reference (mirrors the PyTorch forward) for a sanity check.
# ---------------------------------------------------------------------------
def tmix_gold_reference(x, xo, k_cache, shift_state, params, *, n_head, head_size):
    B, T, C = x.shape
    H, K = n_head, head_size
    f32 = lambda a: a.astype(jnp.float32)
    maa = params["maa"]

    dxprev = jnp.concatenate([shift_state[:, None, :], x[:, :-1]], axis=1) - x
    xxx = x + dxprev * maa[0]
    mq = jnp.tanh(xxx @ f32(params["maa_q_w1"])) @ f32(params["maa_q_w2"])

    xon = xo * lax.rsqrt(jnp.mean(xo * xo, -1, keepdims=True) + 1e-8)
    shift0 = lambda a: jnp.concatenate([jnp.zeros_like(a[:, :1]), a[:, :-1]], axis=1)
    dxoprev = shift0(xon) - xon
    xxx2 = xon + dxoprev * maa[2]
    tkv = jnp.tanh(xxx2 @ f32(params["maa_kv_w1"]))
    dm = params["maa_kv_w1"].shape[1] // 2
    mk = tkv[..., :dm] @ f32(params["maa_kv_w2"][0])
    mv = tkv[..., dm:] @ f32(params["maa_kv_w2"][1])

    kc = k_cache
    dkprev = shift0(kc) - kc
    xq = x + dxprev * (maa[1] + mq)
    k = kc + dkprev * (maa[3] + mk)
    v = xon + dxoprev * (maa[4] + mv)
    k = k + jnp.tanh(k @ f32(params["key_w1"])) @ f32(params["key_w2"])
    v = v + jnp.tanh(v @ f32(params["value_w1"])) @ f32(params["value_w2"])
    q = xq @ f32(params["wq_t"])

    ln = lambda y, g, b: ((y - y.mean(-1, keepdims=True))
                          * lax.rsqrt(y.var(-1, keepdims=True) + 1e-5) * g + b)
    q = ln(q, params["ln_qkv_g"][0], params["ln_qkv_b"][0])
    k = ln(k, params["ln_qkv_g"][1], params["ln_qkv_b"][1])
    v = ln(v, params["ln_qkv_g"][2], params["ln_qkv_b"][2])

    qh = q.reshape(B, T, H, K).transpose(0, 2, 1, 3)
    kh = k.reshape(B, T, H, K).transpose(0, 2, 1, 3)
    vh = v.reshape(B, T, H, K).transpose(0, 2, 1, 3)

    half = K // 2
    freqs = 10000.0 ** (-(jnp.arange(half, dtype=jnp.float32) * 2.0 / K))
    ang = jnp.arange(T, dtype=jnp.float32)[:, None] * freqs[None, :]
    cos = jnp.concatenate([jnp.cos(ang), jnp.cos(ang)], -1)
    sin = jnp.concatenate([jnp.sin(ang), jnp.sin(ang)], -1)

    def rope(a):
        rot = jnp.concatenate([-a[..., half:], a[..., :half]], -1)
        return a * cos + rot * sin

    qh, kh = rope(qh), rope(kh)
    s = jnp.einsum("bhqk,bhsk->bhqs", qh, kh) / math.sqrt(K)
    s = jnp.where(jnp.tril(jnp.ones((T, T), bool)), s, -jnp.inf)
    p = jax.nn.softmax(s, axis=-1)
    o = jnp.einsum("bhqs,bhsk->bhqk", p, vh)
    att = o.transpose(0, 2, 1, 3).reshape(B, T, C)
    y = ln(att, params["ln_x_g"][0], params["ln_x_b"][0])
    return y @ f32(params["wo_t"]), x[:, -1]


if __name__ == "__main__":
    B, T = 2, 16
    n_embd = dim_att = 128         # module requires dim_att == n_embd
    head_size = 32
    n_layer = 4
    layer_id = 1
    n_head = dim_att // head_size

    key = jax.random.PRNGKey(0)
    kx, kxo, kkc, kss, kp = jax.random.split(key, 5)
    x = jax.random.normal(kx, (B, T, n_embd), jnp.float32)
    xo = jax.random.normal(kxo, (B, T, n_embd), jnp.float32)
    k_cache = jax.random.normal(kkc, (B, T, dim_att), jnp.float32)
    shift_state = jax.random.normal(kss, (B, n_embd), jnp.float32)

    params = init_params(kp, n_embd=n_embd, dim_att=dim_att,
                         head_size=head_size, n_layer=n_layer, layer_id=layer_id)

    out, new_shift = tmix_gold_forward(x, xo, k_cache, shift_state, params,
                                       n_head=n_head, head_size=head_size)
    jax.block_until_ready((out, new_shift))
    assert out.shape == (B, T, n_embd) and new_shift.shape == (B, n_embd)
    assert bool(jnp.all(jnp.isfinite(out)))

    # Sanity check against the pure-JAX f32 reference (bf16 intermediates +
    # approx reciprocal give ~1e-2-level deviations; bugs give O(1) errors).
    ref_out, ref_shift = tmix_gold_reference(x, xo, k_cache, shift_state, params,
                                             n_head=n_head, head_size=head_size)
    max_err = float(jnp.max(jnp.abs(out - ref_out)))
    assert max_err < 0.15, f"kernel/reference mismatch: max abs err {max_err}"
    assert bool(jnp.allclose(new_shift, ref_shift))

    print("KERNEL_OK")
</pallas_src>

<mosaic_0001>
module attributes {stable_mosaic.version = 11 : i64} {
  func.func @out_proj_kernel(%arg0: i32, %arg1: i32, %arg2: memref<1x16x128xbf16, #tpu.memory_space<vmem>>, %arg3: memref<1x128xf32, #tpu.memory_space<vmem>>, %arg4: memref<1x128xf32, #tpu.memory_space<vmem>>, %arg5: memref<128x128xbf16, #tpu.memory_space<vmem>>, %arg6: memref<1x16x128xf32, #tpu.memory_space<vmem>>) attributes {dimension_semantics = [#tpu.dimension_semantics<parallel>, #tpu.dimension_semantics<parallel>], iteration_bounds = array<i64: 2, 1>, scalar_prefetch = 0 : i64, scratch_operands = 0 : i64, tpu.core_type = #tpu.core_type<tc>, window_params = [{transform_indices = @transform_0, window_bounds = array<i64: 1, 16, 128>}, {pipeline_mode = #tpu.pipeline_mode<synchronous>, transform_indices = @transform_1, window_bounds = array<i64: 1, 128>}, {pipeline_mode = #tpu.pipeline_mode<synchronous>, transform_indices = @transform_2, window_bounds = array<i64: 1, 128>}, {pipeline_mode = #tpu.pipeline_mode<synchronous>, transform_indices = @transform_3, window_bounds = array<i64: 128, 128>}, {transform_indices = @transform_4, window_bounds = array<i64: 1, 16, 128>}]} {
    %c0 = arith.constant 0 : index
    %c0_0 = arith.constant 0 : index
    %c0_1 = arith.constant 0 : index
    %0 = vector.load %arg2[%c0, %c0_0, %c0_1] : memref<1x16x128xbf16, #tpu.memory_space<vmem>>, vector<1x16x128xbf16>
    %1 = vector.shape_cast %0 : vector<1x16x128xbf16> to vector<16x128xbf16>
    %2 = arith.extf %1 : vector<16x128xbf16> to vector<16x128xf32>
    %c0_2 = arith.constant 0 : index
    %c0_3 = arith.constant 0 : index
    %3 = vector.load %arg3[%c0_2, %c0_3] : memref<1x128xf32, #tpu.memory_space<vmem>>, vector<1x128xf32>
    %c0_4 = arith.constant 0 : index
    %c0_5 = arith.constant 0 : index
    %4 = vector.load %arg4[%c0_4, %c0_5] : memref<1x128xf32, #tpu.memory_space<vmem>>, vector<1x128xf32>
    %cst = arith.constant dense<0.000000e+00> : vector<16xf32>
    %5 = vector.multi_reduction <add>, %2, %cst [1] : vector<16x128xf32> to vector<16xf32>
    %6 = vector.shape_cast %5 : vector<16xf32> to vector<16x1xf32>
    %cst_6 = arith.constant 1.280000e+02 : f32
    %7 = vector.broadcast %cst_6 : f32 to vector<16x1xf32>
    %8 = arith.divf %6, %7 : vector<16x1xf32>
    %9 = vector.broadcast %8 : vector<16x1xf32> to vector<16x128xf32>
    %10 = arith.subf %2, %9 : vector<16x128xf32>
    %11 = arith.mulf %10, %10 : vector<16x128xf32>
    %cst_7 = arith.constant dense<0.000000e+00> : vector<16xf32>
    %12 = vector.multi_reduction <add>, %11, %cst_7 [1] : vector<16x128xf32> to vector<16xf32>
    %13 = vector.shape_cast %12 : vector<16xf32> to vector<16x1xf32>
    %cst_8 = arith.constant 1.280000e+02 : f32
    %14 = vector.broadcast %cst_8 : f32 to vector<16x1xf32>
    %15 = arith.divf %13, %14 : vector<16x1xf32>
    %cst_9 = arith.constant 9.99999974E-6 : f32
    %16 = vector.broadcast %cst_9 : f32 to vector<16x1xf32>
    %17 = arith.addf %15, %16 : vector<16x1xf32>
    %18 = math.rsqrt %17 : vector<16x1xf32>
    %19 = vector.broadcast %18 : vector<16x1xf32> to vector<16x128xf32>
    %20 = arith.mulf %10, %19 : vector<16x128xf32>
    %21 = vector.broadcast %3 : vector<1x128xf32> to vector<16x128xf32>
    %22 = arith.mulf %20, %21 : vector<16x128xf32>
    %23 = vector.broadcast %4 : vector<1x128xf32> to vector<16x128xf32>
    %24 = arith.addf %22, %23 : vector<16x128xf32>
    %25 = arith.truncf %24 : vector<16x128xf32> to vector<16x128xbf16>
    %c0_10 = arith.constant 0 : index
    %c0_11 = arith.constant 0 : index
    %26 = vector.load %arg5[%c0_10, %c0_11] : memref<128x128xbf16, #tpu.memory_space<vmem>>, vector<128x128xbf16>
    %cst_12 = arith.constant dense<0.000000e+00> : vector<16x128xf32>
    %27 = tpu.matmul %25, %26, %cst_12 {dimension_numbers = #tpu.dot_dimension_numbers<[1], [0], [0], [1], [0, 0, 1, 1], [], []>} : vector<16x128xbf16>, vector<128x128xbf16>, vector<16x128xf32> -> vector<16x128xf32>
    %c0_13 = arith.constant 0 : index
    %c0_14 = arith.constant 0 : index
    %c0_15 = arith.constant 0 : index
    %28 = vector.load %arg6[%c0_13, %c0_14, %c0_15] : memref<1x16x128xf32, #tpu.memory_space<vmem>>, vector<1x16x128xf32>
    %29 = vector.shape_cast %28 : vector<1x16x128xf32> to vector<16x128xf32>
    %30 = vector.shape_cast %27 : vector<16x128xf32> to vector<1x16x128xf32>
    tpu.vector_store %arg6[%c0_13, %c0_14, %c0_15], %30 {strides = array<i32>} : memref<1x16x128xf32, #tpu.memory_space<vmem>>, vector<1x16x128xf32>,
    return
  }
  func.func @transform_0(%arg0: i32, %arg1: i32) -> (i32, i32, i32) {
    %c0_i32 = arith.constant 0 : i32
    %c0_i32_0 = arith.constant 0 : i32
    return %arg0, %arg1, %c0_i32 : i32, i32, i32
  }
  func.func @transform_1(%arg0: i32, %arg1: i32) -> (i32, i32) {
    %c0_i32 = arith.constant 0 : i32
    %c0_i32_0 = arith.constant 0 : i32
    %c0_i32_1 = arith.constant 0 : i32
    return %c0_i32, %c0_i32_0 : i32, i32
  }
  func.func @transform_2(%arg0: i32, %arg1: i32) -> (i32, i32) {
    %c0_i32 = arith.constant 0 : i32
    %c0_i32_0 = arith.constant 0 : i32
    %c0_i32_1 = arith.constant 0 : i32
    return %c0_i32, %c0_i32_0 : i32, i32
  }
  func.func @transform_3(%arg0: i32, %arg1: i32) -> (i32, i32) {
    %c0_i32 = arith.constant 0 : i32
    %c0_i32_0 = arith.constant 0 : i32
    %c0_i32_1 = arith.constant 0 : i32
    return %c0_i32, %c0_i32_0 : i32, i32
  }
  func.func @transform_4(%arg0: i32, %arg1: i32) -> (i32, i32, i32) {
    %c0_i32 = arith.constant 0 : i32
    %c0_i32_0 = arith.constant 0 : i32
    return %arg0, %arg1, %c0_i32 : i32, i32, i32
  }
}

module attributes {stable_mosaic.version = 11 : i64} {
  func.func @flash_attn_kernel(%arg0: i32, %arg1: i32, %arg2: i32, %arg3: memref<1x16x128xbf16, #tpu.memory_space<vmem>>, %arg4: memref<1x16x128xbf16, #tpu.memory_space<vmem>>, %arg5: memref<1x16x128xbf16, #tpu.memory_space<vmem>>, %arg6: memref<1x16x128xbf16, #tpu.memory_space<vmem>>, %arg7: memref<4x16x1xf32, #tpu.memory_space<vmem>>, %arg8: memref<4x16x1xf32, #tpu.memory_space<vmem>>, %arg9: memref<16x128xf32, #tpu.memory_space<vmem>>) attributes {dimension_semantics = [#tpu.dimension_semantics<parallel>, #tpu.dimension_semantics<parallel>, #tpu.dimension_semantics<arbitrary>], iteration_bounds = array<i64: 2, 1, 1>, scalar_prefetch = 0 : i64, scratch_operands = 3 : i64, tpu.core_type = #tpu.core_type<tc>, window_params = [{transform_indices = @transform_0, window_bounds = array<i64: 1, 16, 128>}, {transform_indices = @transform_1, window_bounds = array<i64: 1, 16, 128>}, {transform_indices = @transform_2, window_bounds = array<i64: 1, 16, 128>}, {transform_indices = @transform_3, window_bounds = array<i64: 1, 16, 128>}]} {
    %c0_i32 = arith.constant 0 : i32
    %0 = arith.cmpi eq, %arg2, %c0_i32 : i32
    %1 = arith.extui %0 : i1 to i32
    %c0_i32_0 = arith.constant 0 : i32
    %2 = arith.cmpi ne, %1, %c0_i32_0 : i32
    scf.if %2 {
      %cst = arith.constant -1.000000e+30 : f32
      %9 = vector.broadcast %cst : f32 to vector<4x16x1xf32>
      %c0 = arith.constant 0 : index
      %c0_3 = arith.constant 0 : index
      %c0_4 = arith.constant 0 : index
      %10 = vector.load %arg7[%c0, %c0_3, %c0_4] : memref<4x16x1xf32, #tpu.memory_space<vmem>>, vector<4x16x1xf32>
      tpu.vector_store %arg7[%c0, %c0_3, %c0_4], %9 {strides = array<i32>} : memref<4x16x1xf32, #tpu.memory_space<vmem>>, vector<4x16x1xf32>,
      %cst_5 = arith.constant 0.000000e+00 : f32
      %11 = vector.broadcast %cst_5 : f32 to vector<4x16x1xf32>
      %c0_6 = arith.constant 0 : index
      %c0_7 = arith.constant 0 : index
      %c0_8 = arith.constant 0 : index
      %12 = vector.load %arg8[%c0_6, %c0_7, %c0_8] : memref<4x16x1xf32, #tpu.memory_space<vmem>>, vector<4x16x1xf32>
      tpu.vector_store %arg8[%c0_6, %c0_7, %c0_8], %11 {strides = array<i32>} : memref<4x16x1xf32, #tpu.memory_space<vmem>>, vector<4x16x1xf32>,
      %cst_9 = arith.constant 0.000000e+00 : f32
      %13 = vector.broadcast %cst_9 : f32 to vector<16x128xf32>
      %c0_10 = arith.constant 0 : index
      %c0_11 = arith.constant 0 : index
      %14 = vector.load %arg9[%c0_10, %c0_11] : memref<16x128xf32, #tpu.memory_space<vmem>>, vector<16x128xf32>
      tpu.vector_store %arg9[%c0_10, %c0_11], %13 {strides = array<i32>} : memref<16x128xf32, #tpu.memory_space<vmem>>, vector<16x128xf32>,
    } else {
    }
    %3 = arith.cmpi slt, %arg2, %arg1 : i32
    %4 = arith.extui %3 : i1 to i32
    %c0_i32_1 = arith.constant 0 : i32
    %5 = arith.cmpi ne, %4, %c0_i32_1 : i32
    scf.if %5 {
      %c0 = arith.constant 0 : index
      %c0_3 = arith.constant 0 : index
      %c0_4 = arith.constant 0 : index
      %9 = vector.load %arg3[%c0, %c0_3, %c0_4] : memref<1x16x128xbf16, #tpu.memory_space<vmem>>, vector<1x16x32xbf16>
      %10 = vector.shape_cast %9 : vector<1x16x32xbf16> to vector<16x32xbf16>
      %c0_5 = arith.constant 0 : index
      %c0_6 = arith.constant 0 : index
      %c0_7 = arith.constant 0 : index
      %11 = vector.load %arg4[%c0_5, %c0_6, %c0_7] : memref<1x16x128xbf16, #tpu.memory_space<vmem>>, vector<1x16x32xbf16>
      %12 = vector.shape_cast %11 : vector<1x16x32xbf16> to vector<16x32xbf16>
      %c0_8 = arith.constant 0 : index
      %c0_9 = arith.constant 0 : index
      %c0_10 = arith.constant 0 : index
      %13 = vector.load %arg5[%c0_8, %c0_9, %c0_10] : memref<1x16x128xbf16, #tpu.memory_space<vmem>>, vector<1x16x32xbf16>
      %14 = vector.shape_cast %13 : vector<1x16x32xbf16> to vector<16x32xbf16>
      %cst = arith.constant dense<0.000000e+00> : vector<16x16xf32>
      %15 = tpu.matmul %10, %12, %cst {dimension_numbers = #tpu.dot_dimension_numbers<[1], [1], [0], [0], [0, 0, 1, 0], [], []>} : vector<16x32xbf16>, vector<16x32xbf16>, vector<16x16xf32> -> vector<16x16xf32>
      %c0_11 = arith.constant 0 : index
      %c0_12 = arith.constant 0 : index
      %c0_13 = arith.constant 0 : index
      %16 = vector.load %arg7[%c0_11, %c0_12, %c0_13] : memref<4x16x1xf32, #tpu.memory_space<vmem>>, vector<1x16x1xf32>
      %17 = vector.shape_cast %16 : vector<1x16x1xf32> to vector<16x1xf32>
      %cst_14 = arith.constant dense<0xFF800000> : vector<16xf32>
      %18 = vector.multi_reduction <maximumf>, %15, %cst_14 [1] : vector<16x16xf32> to vector<16xf32>
      %19 = vector.shape_cast %18 : vector<16xf32> to vector<16x1xf32>
      %20 = arith.maximumf %17, %19 : vector<16x1xf32>
      %21 = arith.subf %17, %20 : vector<16x1xf32>
      %22 = math.exp %21 : vector<16x1xf32>
      %23 = vector.broadcast %20 : vector<16x1xf32> to vector<16x16xf32>
      %24 = arith.subf %15, %23 : vector<16x16xf32>
      %25 = math.exp %24 : vector<16x16xf32>
      %c0_15 = arith.constant 0 : index
      %c0_16 = arith.constant 0 : index
      %c0_17 = arith.constant 0 : index
      %26 = vector.load %arg8[%c0_15, %c0_16, %c0_17] : memref<4x16x1xf32, #tpu.memory_space<vmem>>, vector<1x16x1xf32>
      %27 = vector.shape_cast %26 : vector<1x16x1xf32> to vector<16x1xf32>
      %28 = arith.mulf %22, %27 : vector<16x1xf32>
      %cst_18 = arith.constant dense<0.000000e+00> : vector<16xf32>
      %29 = vector.multi_reduction <add>, %25, %cst_18 [1] : vector<16x16xf32> to vector<16xf32>
      %30 = vector.shape_cast %29 : vector<16xf32> to vector<16x1xf32>
      %31 = arith.addf %28, %30 : vector<16x1xf32>
      %c0_19 = arith.constant 0 : index
      %c0_20 = arith.constant 0 : index
      %c0_21 = arith.constant 0 : index
      %32 = vector.load %arg8[%c0_19, %c0_20, %c0_21] : memref<4x16x1xf32, #tpu.memory_space<vmem>>, vector<1x16x1xf32>
      %33 = vector.shape_cast %32 : vector<1x16x1xf32> to vector<16x1xf32>
      %34 = vector.shape_cast %31 : vector<16x1xf32> to vector<1x16x1xf32>
      tpu.vector_store %arg8[%c0_19, %c0_20, %c0_21], %34 {strides = array<i32>} : memref<4x16x1xf32, #tpu.memory_space<vmem>>, vector<1x16x1xf32>,
      %c0_22 = arith.constant 0 : index
      %c0_23 = arith.constant 0 : index
      %35 = vector.load %arg9[%c0_22, %c0_23] : memref<16x128xf32, #tpu.memory_space<vmem>>, vector<16x32xf32>
      %36 = vector.broadcast %22 : vector<16x1xf32> to vector<16x32xf32>
      %37 = arith.mulf %36, %35 : vector<16x32xf32>
      %38 = arith.truncf %25 : vector<16x16xf32> to vector<16x16xbf16>
      %cst_24 = arith.constant dense<0.000000e+00> : vector<16x32xf32>
      %39 = tpu.matmul %38, %14, %cst_24 {dimension_numbers = #tpu.dot_dimension_numbers<[1], [0], [0], [1], [0, 0, 1, 1], [], []>} : vector<16x16xbf16>, vector<16x32xbf16>, vector<16x32xf32> -> vector<16x32xf32>
      %40 = arith.addf %37, %39 : vector<16x32xf32>
      %c0_25 = arith.constant 0 : index
      %c0_26 = arith.constant 0 : index
      %41 = vector.load %arg9[%c0_25, %c0_26] : memref<16x128xf32, #tpu.memory_space<vmem>>, vector<16x32xf32>
      tpu.vector_store %arg9[%c0_25, %c0_26], %40 {strides = array<i32>} : memref<16x128xf32, #tpu.memory_space<vmem>>, vector<16x32xf32>,
      %c0_27 = arith.constant 0 : index
      %c0_28 = arith.constant 0 : index
      %c0_29 = arith.constant 0 : index
      %42 = vector.load %arg7[%c0_27, %c0_28, %c0_29] : memref<4x16x1xf32, #tpu.memory_space<vmem>>, vector<1x16x1xf32>
      %43 = vector.shape_cast %42 : vector<1x16x1xf32> to vector<16x1xf32>
      %44 = vector.shape_cast %20 : vector<16x1xf32> to vector<1x16x1xf32>
      tpu.vector_store %arg7[%c0_27, %c0_28, %c0_29], %44 {strides = array<i32>} : memref<4x16x1xf32, #tpu.memory_space<vmem>>, vector<1x16x1xf32>,
      %c0_30 = arith.constant 0 : index
      %c0_31 = arith.constant 0 : index
      %c32 = arith.constant 32 : index
      %45 = vector.load %arg3[%c0_30, %c0_31, %c32] : memref<1x16x128xbf16, #tpu.memory_space<vmem>>, vector<1x16x32xbf16>
      %46 = vector.shape_cast %45 : vector<1x16x32xbf16> to vector<16x32xbf16>
      %c0_32 = arith.constant 0 : index
      %c0_33 = arith.constant 0 : index
      %c32_34 = arith.constant 32 : index
      %47 = vector.load %arg4[%c0_32, %c0_33, %c32_34] : memref<1x16x128xbf16, #tpu.memory_space<vmem>>, vector<1x16x32xbf16>
      %48 = vector.shape_cast %47 : vector<1x16x32xbf16> to vector<16x32xbf16>
      %c0_35 = arith.constant 0 : index
      %c0_36 = arith.constant 0 : index
      %c32_37 = arith.constant 32 : index
      %49 = vector.load %arg5[%c0_35, %c0_36, %c32_37] : memref<1x16x128xbf16, #tpu.memory_space<vmem>>, vector<1x16x32xbf16>
      %50 = vector.shape_cast %49 : vector<1x16x32xbf16> to vector<16x32xbf16>
      %cst_38 = arith.constant dense<0.000000e+00> : vector<16x16xf32>
      %51 = tpu.matmul %46, %48, %cst_38 {dimension_numbers = #tpu.dot_dimension_numbers<[1], [1], [0], [0], [0, 0, 1, 0], [], []>} : vector<16x32xbf16>, vector<16x32xbf16>, vector<16x16xf32> -> vector<16x16xf32>
      %c1 = arith.constant 1 : index
      %c0_39 = arith.constant 0 : index
      %c0_40 = arith.constant 0 : index
      %52 = vector.load %arg7[%c1, %c0_39, %c0_40] : memref<4x16x1xf32, #tpu.memory_space<vmem>>, vector<1x16x1xf32>
      %53 = vector.shape_cast %52 : vector<1x16x1xf32> to vector<16x1xf32>
      %cst_41 = arith.constant dense<0xFF800000> : vector<16xf32>
      %54 = vector.multi_reduction <maximumf>, %51, %cst_41 [1] : vector<16x16xf32> to vector<16xf32>
      %55 = vector.shape_cast %54 : vector<16xf32> to vector<16x1xf32>
      %56 = arith.maximumf %53, %55 : vector<16x1xf32>
      %57 = arith.subf %53, %56 : vector<16x1xf32>
      %58 = math.exp %57 : vector<16x1xf32>
      %59 = vector.broadcast %56 : vector<16x1xf32> to vector<16x16xf32>
      %60 = arith.subf %51, %59 : vector<16x16xf32>
      %61 = math.exp %60 : vector<16x16xf32>
      %c1_42 = arith.constant 1 : index
      %c0_43 = arith.constant 0 : index
      %c0_44 = arith.constant 0 : index
      %62 = vector.load %arg8[%c1_42, %c0_43, %c0_44] : memref<4x16x1xf32, #tpu.memory_space<vmem>>, vector<1x16x1xf32>
      %63 = vector.shape_cast %62 : vector<1x16x1xf32> to vector<16x1xf32>
      %64 = arith.mulf %58, %63 : vector<16x1xf32>
      %cst_45 = arith.constant dense<0.000000e+00> : vector<16xf32>
      %65 = vector.multi_reduction <add>, %61, %cst_45 [1] : vector<16x16xf32> to vector<16xf32>
      %66 = vector.shape_cast %65 : vector<16xf32> to vector<16x1xf32>
      %67 = arith.addf %64, %66 : vector<16x1xf32>
      %c1_46 = arith.constant 1 : index
      %c0_47 = arith.constant 0 : index
      %c0_48 = arith.constant 0 : index
      %68 = vector.load %arg8[%c1_46, %c0_47, %c0_48] : memref<4x16x1xf32, #tpu.memory_space<vmem>>, vector<1x16x1xf32>
      %69 = vector.shape_cast %68 : vector<1x16x1xf32> to vector<16x1xf32>
      %70 = vector.shape_cast %67 : vector<16x1xf32> to vector<1x16x1xf32>
      tpu.vector_store %arg8[%c1_46, %c0_47, %c0_48], %70 {strides = array<i32>} : memref<4x16x1xf32, #tpu.memory_space<vmem>>, vector<1x16x1xf32>,
      %c0_49 = arith.constant 0 : index
      %c32_50 = arith.constant 32 : index
      %71 = vector.load %arg9[%c0_49, %c32_50] : memref<16x128xf32, #tpu.memory_space<vmem>>, vector<16x32xf32>
      %72 = vector.broadcast %58 : vector<16x1xf32> to vector<16x32xf32>
      %73 = arith.mulf %72, %71 : vector<16x32xf32>
      %74 = arith.truncf %61 : vector<16x16xf32> to vector<16x16xbf16>
      %cst_51 = arith.constant dense<0.000000e+00> : vector<16x32xf32>
      %75 = tpu.matmul %74, %50, %cst_51 {dimension_numbers = #tpu.dot_dimension_numbers<[1], [0], [0], [1], [0, 0, 1, 1], [], []>} : vector<16x16xbf16>, vector<16x32xbf16>, vector<16x32xf32> -> vector<16x32xf32>
      %76 = arith.addf %73, %75 : vector<16x32xf32>
      %c0_52 = arith.constant 0 : index
      %c32_53 = arith.constant 32 : index
      %77 = vector.load %arg9[%c0_52, %c32_53] : memref<16x128xf32, #tpu.memory_space<vmem>>, vector<16x32xf32>
      tpu.vector_store %arg9[%c0_52, %c32_53], %76 {strides = array<i32>} : memref<16x128xf32, #tpu.memory_space<vmem>>, vector<16x32xf32>,
      %c1_54 = arith.constant 1 : index
      %c0_55 = arith.constant 0 : index
      %c0_56 = arith.constant 0 : index
      %78 = vector.load %arg7[%c1_54, %c0_55, %c0_56] : memref<4x16x1xf32, #tpu.memory_space<vmem>>, vector<1x16x1xf32>
      %79 = vector.shape_cast %78 : vector<1x16x1xf32> to vector<16x1xf32>
      %80 = vector.shape_cast %56 : vector<16x1xf32> to vector<1x16x1xf32>
      tpu.vector_store %arg7[%c1_54, %c0_55, %c0_56], %80 {strides = array<i32>} : memref<4x16x1xf32, #tpu.memory_space<vmem>>, vector<1x16x1xf32>,
      %c0_57 = arith.constant 0 : index
      %c0_58 = arith.constant 0 : index
      %c64 = arith.constant 64 : index
      %81 = vector.load %arg3[%c0_57, %c0_58, %c64] : memref<1x16x128xbf16, #tpu.memory_space<vmem>>, vector<1x16x32xbf16>
      %82 = vector.shape_cast %81 : vector<1x16x32xbf16> to vector<16x32xbf16>
      %c0_59 = arith.constant 0 : index
      %c0_60 = arith.constant 0 : index
      %c64_61 = arith.constant 64 : index
      %83 = vector.load %arg4[%c0_59, %c0_60, %c64_61] : memref<1x16x128xbf16, #tpu.memory_space<vmem>>, vector<1x16x32xbf16>
      %84 = vector.shape_cast %83 : vector<1x16x32xbf16> to vector<16x32xbf16>
      %c0_62 = arith.constant 0 : index
      %c0_63 = arith.constant 0 : index
      %c64_64 = arith.constant 64 : index
      %85 = vector.load %arg5[%c0_62, %c0_63, %c64_64] : memref<1x16x128xbf16, #tpu.memory_space<vmem>>, vector<1x16x32xbf16>
      %86 = vector.shape_cast %85 : vector<1x16x32xbf16> to vector<16x32xbf16>
      %cst_65 = arith.constant dense<0.000000e+00> : vector<16x16xf32>
      %87 = tpu.matmul %82, %84, %cst_65 {dimension_numbers = #tpu.dot_dimension_numbers<[1], [1], [0], [0], [0, 0, 1, 0], [], []>} : vector<16x32xbf16>, vector<16x32xbf16>, vector<16x16xf32> -> vector<16x16xf32>
      %c2 = arith.constant 2 : index
      %c0_66 = arith.constant 0 : index
      %c0_67 = arith.constant 0 : index
      %88 = vector.load %arg7[%c2, %c0_66, %c0_67] : memref<4x16x1xf32, #tpu.memory_space<vmem>>, vector<1x16x1xf32>
      %89 = vector.shape_cast %88 : vector<1x16x1xf32> to vector<16x1xf32>
      %cst_68 = arith.constant dense<0xFF800000> : vector<16xf32>
      %90 = vector.multi_reduction <maximumf>, %87, %cst_68 [1] : vector<16x16xf32> to vector<16xf32>
      %91 = vector.shape_cast %90 : vector<16xf32> to vector<16x1xf32>
      %92 = arith.maximumf %89, %91 : vector<16x1xf32>
      %93 = arith.subf %89, %92 : vector<16x1xf32>
      %94 = math.exp %93 : vector<16x1xf32>
      %95 = vector.broadcast %92 : vector<16x1xf32> to vector<16x16xf32>
      %96 = arith.subf %87, %95 : vector<16x16xf32>
      %97 = math.exp %96 : vector<16x16xf32>
      %c2_69 = arith.constant 2 : index
      %c0_70 = arith.constant 0 : index
      %c0_71 = arith.constant 0 : index
      %98 = vector.load %arg8[%c2_69, %c0_70, %c0_71] : memref<4x16x1xf32, #tpu.memory_space<vmem>>, vector<1x16x1xf32>
      %99 = vector.shape_cast %98 : vector<1x16x1xf32> to vector<16x1xf32>
      %100 = arith.mulf %94, %99 : vector<16x1xf32>
      %cst_72 = arith.constant dense<0.000000e+00> : vector<16xf32>
      %101 = vector.multi_reduction <add>, %97, %cst_72 [1] : vector<16x16xf32> to vector<16xf32>
      %102 = vector.shape_cast %101 : vector<16xf32> to vector<16x1xf32>
      %103 = arith.addf %100, %102 : vector<16x1xf32>
      %c2_73 = arith.constant 2 : index
      %c0_74 = arith.constant 0 : index
      %c0_75 = arith.constant 0 : index
      %104 = vector.load %arg8[%c2_73, %c0_74, %c0_75] : memref<4x16x1xf32, #tpu.memory_space<vmem>>, vector<1x16x1xf32>
      %105 = vector.shape_cast %104 : vector<1x16x1xf32> to vector<16x1xf32>
      %106 = vector.shape_cast %103 : vector<16x1xf32> to vector<1x16x1xf32>
      tpu.vector_store %arg8[%c2_73, %c0_74, %c0_75], %106 {strides = array<i32>} : memref<4x16x1xf32, #tpu.memory_space<vmem>>, vector<1x16x1xf32>,
      %c0_76 = arith.constant 0 : index
      %c64_77 = arith.constant 64 : index
      %107 = vector.load %arg9[%c0_76, %c64_77] : memref<16x128xf32, #tpu.memory_space<vmem>>, vector<16x32xf32>
      %108 = vector.broadcast %94 : vector<16x1xf32> to vector<16x32xf32>
      %109 = arith.mulf %108, %107 : vector<16x32xf32>
      %110 = arith.truncf %97 : vector<16x16xf32> to vector<16x16xbf16>
      %cst_78 = arith.constant dense<0.000000e+00> : vector<16x32xf32>
      %111 = tpu.matmul %110, %86, %cst_78 {dimension_numbers = #tpu.dot_dimension_numbers<[1], [0], [0], [1], [0, 0, 1, 1], [], []>} : vector<16x16xbf16>, vector<16x32xbf16>, vector<16x32xf32> -> vector<16x32xf32>
      %112 = arith.addf %109, %111 : vector<16x32xf32>
      %c0_79 = arith.constant 0 : index
      %c64_80 = arith.constant 64 : index
      %113 = vector.load %arg9[%c0_79, %c64_80] : memref<16x128xf32, #tpu.memory_space<vmem>>, vector<16x32xf32>
      tpu.vector_store %arg9[%c0_79, %c64_80], %112 {strides = array<i32>} : memref<16x128xf32, #tpu.memory_space<vmem>>, vector<16x32xf32>,
      %c2_81 = arith.constant 2 : index
      %c0_82 = arith.constant 0 : index
      %c0_83 = arith.constant 0 : index
      %114 = vector.load %arg7[%c2_81, %c0_82, %c0_83] : memref<4x16x1xf32, #tpu.memory_space<vmem>>, vector<1x16x1xf32>
      %115 = vector.shape_cast %114 : vector<1x16x1xf32> to vector<16x1xf32>
      %116 = vector.shape_cast %92 : vector<16x1xf32> to vector<1x16x1xf32>
      tpu.vector_store %arg7[%c2_81, %c0_82, %c0_83], %116 {strides = array<i32>} : memref<4x16x1xf32, #tpu.memory_space<vmem>>, vector<1x16x1xf32>,
      %c0_84 = arith.constant 0 : index
      %c0_85 = arith.constant 0 : index
      %c96 = arith.constant 96 : index
      %117 = vector.load %arg3[%c0_84, %c0_85, %c96] : memref<1x16x128xbf16, #tpu.memory_space<vmem>>, vector<1x16x32xbf16>
      %118 = vector.shape_cast %117 : vector<1x16x32xbf16> to vector<16x32xbf16>
      %c0_86 = arith.constant 0 : index
      %c0_87 = arith.constant 0 : index
      %c96_88 = arith.constant 96 : index
      %119 = vector.load %arg4[%c0_86, %c0_87, %c96_88] : memref<1x16x128xbf16, #tpu.memory_space<vmem>>, vector<1x16x32xbf16>
      %120 = vector.shape_cast %119 : vector<1x16x32xbf16> to vector<16x32xbf16>
      %c0_89 = arith.constant 0 : index
      %c0_90 = arith.constant 0 : index
      %c96_91 = arith.constant 96 : index
      %121 = vector.load %arg5[%c0_89, %c0_90, %c96_91] : memref<1x16x128xbf16, #tpu.memory_space<vmem>>, vector<1x16x32xbf16>
      %122 = vector.shape_cast %121 : vector<1x16x32xbf16> to vector<16x32xbf16>
      %cst_92 = arith.constant dense<0.000000e+00> : vector<16x16xf32>
      %123 = tpu.matmul %118, %120, %cst_92 {dimension_numbers = #tpu.dot_dimension_numbers<[1], [1], [0], [0], [0, 0, 1, 0], [], []>} : vector<16x32xbf16>, vector<16x32xbf16>, vector<16x16xf32> -> vector<16x16xf32>
      %c3 = arith.constant 3 : index
      %c0_93 = arith.constant 0 : index
      %c0_94 = arith.constant 0 : index
      %124 = vector.load %arg7[%c3, %c0_93, %c0_94] : memref<4x16x1xf32, #tpu.memory_space<vmem>>, vector<1x16x1xf32>
      %125 = vector.shape_cast %124 : vector<1x16x1xf32> to vector<16x1xf32>
      %cst_95 = arith.constant dense<0xFF800000> : vector<16xf32>
      %126 = vector.multi_reduction <maximumf>, %123, %cst_95 [1] : vector<16x16xf32> to vector<16xf32>
      %127 = vector.shape_cast %126 : vector<16xf32> to vector<16x1xf32>
      %128 = arith.maximumf %125, %127 : vector<16x1xf32>
      %129 = arith.subf %125, %128 : vector<16x1xf32>
      %130 = math.exp %129 : vector<16x1xf32>
      %131 = vector.broadcast %128 : vector<16x1xf32> to vector<16x16xf32>
      %132 = arith.subf %123, %131 : vector<16x16xf32>
      %133 = math.exp %132 : vector<16x16xf32>
      %c3_96 = arith.constant 3 : index
      %c0_97 = arith.constant 0 : index
      %c0_98 = arith.constant 0 : index
      %134 = vector.load %arg8[%c3_96, %c0_97, %c0_98] : memref<4x16x1xf32, #tpu.memory_space<vmem>>, vector<1x16x1xf32>
      %135 = vector.shape_cast %134 : vector<1x16x1xf32> to vector<16x1xf32>
      %136 = arith.mulf %130, %135 : vector<16x1xf32>
      %cst_99 = arith.constant dense<0.000000e+00> : vector<16xf32>
      %137 = vector.multi_reduction <add>, %133, %cst_99 [1] : vector<16x16xf32> to vector<16xf32>
      %138 = vector.shape_cast %137 : vector<16xf32> to vector<16x1xf32>
      %139 = arith.addf %136, %138 : vector<16x1xf32>
      %c3_100 = arith.constant 3 : index
      %c0_101 = arith.constant 0 : index
      %c0_102 = arith.constant 0 : index
      %140 = vector.load %arg8[%c3_100, %c0_101, %c0_102] : memref<4x16x1xf32, #tpu.memory_space<vmem>>, vector<1x16x1xf32>
      %141 = vector.shape_cast %140 : vector<1x16x1xf32> to vector<16x1xf32>
      %142 = vector.shape_cast %139 : vector<16x1xf32> to vector<1x16x1xf32>
      tpu.vector_store %arg8[%c3_100, %c0_101, %c0_102], %142 {strides = array<i32>} : memref<4x16x1xf32, #tpu.memory_space<vmem>>, vector<1x16x1xf32>,
      %c0_103 = arith.constant 0 : index
      %c96_104 = arith.constant 96 : index
      %143 = vector.load %arg9[%c0_103, %c96_104] : memref<16x128xf32, #tpu.memory_space<vmem>>, vector<16x32xf32>
      %144 = vector.broadcast %130 : vector<16x1xf32> to vector<16x32xf32>
      %145 = arith.mulf %144, %143 : vector<16x32xf32>
      %146 = arith.truncf %133 : vector<16x16xf32> to vector<16x16xbf16>
      %cst_105 = arith.constant dense<0.000000e+00> : vector<16x32xf32>
      %147 = tpu.matmul %146, %122, %cst_105 {dimension_numbers = #tpu.dot_dimension_numbers<[1], [0], [0], [1], [0, 0, 1, 1], [], []>} : vector<16x16xbf16>, vector<16x32xbf16>, vector<16x32xf32> -> vector<16x32xf32>
      %148 = arith.addf %145, %147 : vector<16x32xf32>
      %c0_106 = arith.constant 0 : index
      %c96_107 = arith.constant 96 : index
      %149 = vector.load %arg9[%c0_106, %c96_107] : memref<16x128xf32, #tpu.memory_space<vmem>>, vector<16x32xf32>
      tpu.vector_store %arg9[%c0_106, %c96_107], %148 {strides = array<i32>} : memref<16x128xf32, #tpu.memory_space<vmem>>, vector<16x32xf32>,
      %c3_108 = arith.constant 3 : index
      %c0_109 = arith.constant 0 : index
      %c0_110 = arith.constant 0 : index
      %150 = vector.load %arg7[%c3_108, %c0_109, %c0_110] : memref<4x16x1xf32, #tpu.memory_space<vmem>>, vector<1x16x1xf32>
      %151 = vector.shape_cast %150 : vector<1x16x1xf32> to vector<16x1xf32>
      %152 = vector.shape_cast %128 : vector<16x1xf32> to vector<1x16x1xf32>
      tpu.vector_store %arg7[%c3_108, %c0_109, %c0_110], %152 {strides = array<i32>} : memref<4x16x1xf32, #tpu.memory_space<vmem>>, vector<1x16x1xf32>,
    } else {
    }
    %6 = arith.cmpi eq, %arg2, %arg1 : i32
    %7 = arith.extui %6 : i1 to i32
    %c0_i32_2 = arith.constant 0 : i32
    %8 = arith.cmpi ne, %7, %c0_i32_2 : i32
    scf.if %8 {
      %c16_i32 = arith.constant 16 : i32
      %9 = arith.muli %arg1, %c16_i32 : i32
      %10 = tpu.iota {dimensions = array<i32: 0>} : vector<16x16xi32>
      %11 = vector.broadcast %9 : i32 to vector<16x16xi32>
      %12 = arith.addi %11, %10 : vector<16x16xi32>
      %c16_i32_3 = arith.constant 16 : i32
      %13 = arith.muli %arg2, %c16_i32_3 : i32
      %14 = tpu.iota {dimensions = array<i32: 1>} : vector<16x16xi32>
      %15 = vector.broadcast %13 : i32 to vector<16x16xi32>
      %16 = arith.addi %15, %14 : vector<16x16xi32>
      %17 = arith.cmpi sge, %12, %16 : vector<16x16xi32>
      %c0 = arith.constant 0 : index
      %c0_4 = arith.constant 0 : index
      %c0_5 = arith.constant 0 : index
      %18 = vector.load %arg3[%c0, %c0_4, %c0_5] : memref<1x16x128xbf16, #tpu.memory_space<vmem>>, vector<1x16x32xbf16>
      %19 = vector.shape_cast %18 : vector<1x16x32xbf16> to vector<16x32xbf16>
      %c0_6 = arith.constant 0 : index
      %c0_7 = arith.constant 0 : index
      %c0_8 = arith.constant 0 : index
      %20 = vector.load %arg4[%c0_6, %c0_7, %c0_8] : memref<1x16x128xbf16, #tpu.memory_space<vmem>>, vector<1x16x32xbf16>
      %21 = vector.shape_cast %20 : vector<1x16x32xbf16> to vector<16x32xbf16>
      %c0_9 = arith.constant 0 : index
      %c0_10 = arith.constant 0 : index
      %c0_11 = arith.constant 0 : index
      %22 = vector.load %arg5[%c0_9, %c0_10, %c0_11] : memref<1x16x128xbf16, #tpu.memory_space<vmem>>, vector<1x16x32xbf16>
      %23 = vector.shape_cast %22 : vector<1x16x32xbf16> to vector<16x32xbf16>
      %cst = arith.constant dense<0.000000e+00> : vector<16x16xf32>
      %24 = tpu.matmul %19, %21, %cst {dimension_numbers = #tpu.dot_dimension_numbers<[1], [1], [0], [0], [0, 0, 1, 0], [], []>} : vector<16x32xbf16>, vector<16x32xbf16>, vector<16x16xf32> -> vector<16x16xf32>
      %cst_12 = arith.constant -1.000000e+30 : f32
      %25 = vector.broadcast %cst_12 : f32 to vector<16x16xf32>
      %26 = arith.select %17, %24, %25 : vector<16x16xi1>, vector<16x16xf32>
      %c0_13 = arith.constant 0 : index
      %c0_14 = arith.constant 0 : index
      %c0_15 = arith.constant 0 : index
      %27 = vector.load %arg7[%c0_13, %c0_14, %c0_15] : memref<4x16x1xf32, #tpu.memory_space<vmem>>, vector<1x16x1xf32>
      %28 = vector.shape_cast %27 : vector<1x16x1xf32> to vector<16x1xf32>
      %cst_16 = arith.constant dense<0xFF800000> : vector<16xf32>
      %29 = vector.multi_reduction <maximumf>, %26, %cst_16 [1] : vector<16x16xf32> to vector<16xf32>
      %30 = vector.shape_cast %29 : vector<16xf32> to vector<16x1xf32>
      %31 = arith.maximumf %28, %30 : vector<16x1xf32>
      %32 = arith.subf %28, %31 : vector<16x1xf32>
      %33 = math.exp %32 : vector<16x1xf32>
      %34 = vector.broadcast %31 : vector<16x1xf32> to vector<16x16xf32>
      %35 = arith.subf %26, %34 : vector<16x16xf32>
      %36 = math.exp %35 : vector<16x16xf32>
      %c0_17 = arith.constant 0 : index
      %c0_18 = arith.constant 0 : index
      %c0_19 = arith.constant 0 : index
      %37 = vector.load %arg8[%c0_17, %c0_18, %c0_19] : memref<4x16x1xf32, #tpu.memory_space<vmem>>, vector<1x16x1xf32>
      %38 = vector.shape_cast %37 : vector<1x16x1xf32> to vector<16x1xf32>
      %39 = arith.mulf %33, %38 : vector<16x1xf32>
      %cst_20 = arith.constant dense<0.000000e+00> : vector<16xf32>
      %40 = vector.multi_reduction <add>, %36, %cst_20 [1] : vector<16x16xf32> to vector<16xf32>
      %41 = vector.shape_cast %40 : vector<16xf32> to vector<16x1xf32>
      %42 = arith.addf %39, %41 : vector<16x1xf32>
      %c0_21 = arith.constant 0 : index
      %c0_22 = arith.constant 0 : index
      %c0_23 = arith.constant 0 : index
      %43 = vector.load %arg8[%c0_21, %c0_22, %c0_23] : memref<4x16x1xf32, #tpu.memory_space<vmem>>, vector<1x16x1xf32>
      %44 = vector.shape_cast %43 : vector<1x16x1xf32> to vector<16x1xf32>
      %45 = vector.shape_cast %42 : vector<16x1xf32> to vector<1x16x1xf32>
      tpu.vector_store %arg8[%c0_21, %c0_22, %c0_23], %45 {strides = array<i32>} : memref<4x16x1xf32, #tpu.memory_space<vmem>>, vector<1x16x1xf32>,
      %c0_24 = arith.constant 0 : index
      %c0_25 = arith.constant 0 : index
      %46 = vector.load %arg9[%c0_24, %c0_25] : memref<16x128xf32, #tpu.memory_space<vmem>>, vector<16x32xf32>
      %47 = vector.broadcast %33 : vector<16x1xf32> to vector<16x32xf32>
      %48 = arith.mulf %47, %46 : vector<16x32xf32>
      %49 = arith.truncf %36 : vector<16x16xf32> to vector<16x16xbf16>
      %cst_26 = arith.constant dense<0.000000e+00> : vector<16x32xf32>
      %50 = tpu.matmul %49, %23, %cst_26 {dimension_numbers = #tpu.dot_dimension_numbers<[1], [0], [0], [1], [0, 0, 1, 1], [], []>} : vector<16x16xbf16>, vector<16x32xbf16>, vector<16x32xf32> -> vector<16x32xf32>
      %51 = arith.addf %48, %50 : vector<16x32xf32>
      %c0_27 = arith.constant 0 : index
      %c0_28 = arith.constant 0 : index
      %52 = vector.load %arg9[%c0_27, %c0_28] : memref<16x128xf32, #tpu.memory_space<vmem>>, vector<16x32xf32>
      tpu.vector_store %arg9[%c0_27, %c0_28], %51 {strides = array<i32>} : memref<16x128xf32, #tpu.memory_space<vmem>>, vector<16x32xf32>,
      %c0_29 = arith.constant 0 : index
      %c0_30 = arith.constant 0 : index
      %c0_31 = arith.constant 0 : index
      %53 = vector.load %arg7[%c0_29, %c0_30, %c0_31] : memref<4x16x1xf32, #tpu.memory_space<vmem>>, vector<1x16x1xf32>
      %54 = vector.shape_cast %53 : vector<1x16x1xf32> to vector<16x1xf32>
      %55 = vector.shape_cast %31 : vector<16x1xf32> to vector<1x16x1xf32>
      tpu.vector_store %arg7[%c0_29, %c0_30, %c0_31], %55 {strides = array<i32>} : memref<4x16x1xf32, #tpu.memory_space<vmem>>, vector<1x16x1xf32>,
      %c0_32 = arith.constant 0 : index
      %c0_33 = arith.constant 0 : index
      %c32 = arith.constant 32 : index
      %56 = vector.load %arg3[%c0_32, %c0_33, %c32] : memref<1x16x128xbf16, #tpu.memory_space<vmem>>, vector<1x16x32xbf16>
      %57 = vector.shape_cast %56 : vector<1x16x32xbf16> to vector<16x32xbf16>
      %c0_34 = arith.constant 0 : index
      %c0_35 = arith.constant 0 : index
      %c32_36 = arith.constant 32 : index
      %58 = vector.load %arg4[%c0_34, %c0_35, %c32_36] : memref<1x16x128xbf16, #tpu.memory_space<vmem>>, vector<1x16x32xbf16>
      %59 = vector.shape_cast %58 : vector<1x16x32xbf16> to vector<16x32xbf16>
      %c0_37 = arith.constant 0 : index
      %c0_38 = arith.constant 0 : index
      %c32_39 = arith.constant 32 : index
      %60 = vector.load %arg5[%c0_37, %c0_38, %c32_39] : memref<1x16x128xbf16, #tpu.memory_space<vmem>>, vector<1x16x32xbf16>
      %61 = vector.shape_cast %60 : vector<1x16x32xbf16> to vector<16x32xbf16>
      %cst_40 = arith.constant dense<0.000000e+00> : vector<16x16xf32>
      %62 = tpu.matmul %57, %59, %cst_40 {dimension_numbers = #tpu.dot_dimension_numbers<[1], [1], [0], [0], [0, 0, 1, 0], [], []>} : vector<16x32xbf16>, vector<16x32xbf16>, vector<16x16xf32> -> vector<16x16xf32>
      %cst_41 = arith.constant -1.000000e+30 : f32
      %63 = vector.broadcast %cst_41 : f32 to vector<16x16xf32>
      %64 = arith.select %17, %62, %63 : vector<16x16xi1>, vector<16x16xf32>
      %c1 = arith.constant 1 : index
      %c0_42 = arith.constant 0 : index
      %c0_43 = arith.constant 0 : index
      %65 = vector.load %arg7[%c1, %c0_42, %c0_43] : memref<4x16x1xf32, #tpu.memory_space<vmem>>, vector<1x16x1xf32>
      %66 = vector.shape_cast %65 : vector<1x16x1xf32> to vector<16x1xf32>
      %cst_44 = arith.constant dense<0xFF800000> : vector<16xf32>
      %67 = vector.multi_reduction <maximumf>, %64, %cst_44 [1] : vector<16x16xf32> to vector<16xf32>
      %68 = vector.shape_cast %67 : vector<16xf32> to vector<16x1xf32>
      %69 = arith.maximumf %66, %68 : vector<16x1xf32>
      %70 = arith.subf %66, %69 : vector<16x1xf32>
      %71 = math.exp %70 : vector<16x1xf32>
      %72 = vector.broadcast %69 : vector<16x1xf32> to vector<16x16xf32>
      %73 = arith.subf %64, %72 : vector<16x16xf32>
      %74 = math.exp %73 : vector<16x16xf32>
      %c1_45 = arith.constant 1 : index
      %c0_46 = arith.constant 0 : index
      %c0_47 = arith.constant 0 : index
      %75 = vector.load %arg8[%c1_45, %c0_46, %c0_47] : memref<4x16x1xf32, #tpu.memory_space<vmem>>, vector<1x16x1xf32>
      %76 = vector.shape_cast %75 : vector<1x16x1xf32> to vector<16x1xf32>
      %77 = arith.mulf %71, %76 : vector<16x1xf32>
      %cst_48 = arith.constant dense<0.000000e+00> : vector<16xf32>
      %78 = vector.multi_reduction <add>, %74, %cst_48 [1] : vector<16x16xf32> to vector<16xf32>
      %79 = vector.shape_cast %78 : vector<16xf32> to vector<16x1xf32>
      %80 = arith.addf %77, %79 : vector<16x1xf32>
      %c1_49 = arith.constant 1 : index
      %c0_50 = arith.constant 0 : index
      %c0_51 = arith.constant 0 : index
      %81 = vector.load %arg8[%c1_49, %c0_50, %c0_51] : memref<4x16x1xf32, #tpu.memory_space<vmem>>, vector<1x16x1xf32>
      %82 = vector.shape_cast %81 : vector<1x16x1xf32> to vector<16x1xf32>
      %83 = vector.shape_cast %80 : vector<16x1xf32> to vector<1x16x1xf32>
      tpu.vector_store %arg8[%c1_49, %c0_50, %c0_51], %83 {strides = array<i32>} : memref<4x16x1xf32, #tpu.memory_space<vmem>>, vector<1x16x1xf32>,
      %c0_52 = arith.constant 0 : index
      %c32_53 = arith.constant 32 : index
      %84 = vector.load %arg9[%c0_52, %c32_53] : memref<16x128xf32, #tpu.memory_space<vmem>>, vector<16x32xf32>
      %85 = vector.broadcast %71 : vector<16x1xf32> to vector<16x32xf32>
      %86 = arith.mulf %85, %84 : vector<16x32xf32>
      %87 = arith.truncf %74 : vector<16x16xf32> to vector<16x16xbf16>
      %cst_54 = arith.constant dense<0.000000e+00> : vector<16x32xf32>
      %88 = tpu.matmul %87, %61, %cst_54 {dimension_numbers = #tpu.dot_dimension_numbers<[1], [0], [0], [1], [0, 0, 1, 1], [], []>} : vector<16x16xbf16>, vector<16x32xbf16>, vector<16x32xf32> -> vector<16x32xf32>
      %89 = arith.addf %86, %88 : vector<16x32xf32>
      %c0_55 = arith.constant 0 : index
      %c32_56 = arith.constant 32 : index
      %90 = vector.load %arg9[%c0_55, %c32_56] : memref<16x128xf32, #tpu.memory_space<vmem>>, vector<16x32xf32>
      tpu.vector_store %arg9[%c0_55, %c32_56], %89 {strides = array<i32>} : memref<16x128xf32, #tpu.memory_space<vmem>>, vector<16x32xf32>,
      %c1_57 = arith.constant 1 : index
      %c0_58 = arith.constant 0 : index
      %c0_59 = arith.constant 0 : index
      %91 = vector.load %arg7[%c1_57, %c0_58, %c0_59] : memref<4x16x1xf32, #tpu.memory_space<vmem>>, vector<1x16x1xf32>
      %92 = vector.shape_cast %91 : vector<1x16x1xf32> to vector<16x1xf32>
      %93 = vector.shape_cast %69 : vector<16x1xf32> to vector<1x16x1xf32>
      tpu.vector_store %arg7[%c1_57, %c0_58, %c0_59], %93 {strides = array<i32>} : memref<4x16x1xf32, #tpu.memory_space<vmem>>, vector<1x16x1xf32>,
      %c0_60 = arith.constant 0 : index
      %c0_61 = arith.constant 0 : index
      %c64 = arith.constant 64 : index
      %94 = vector.load %arg3[%c0_60, %c0_61, %c64] : memref<1x16x128xbf16, #tpu.memory_space<vmem>>, vector<1x16x32xbf16>
      %95 = vector.shape_cast %94 : vector<1x16x32xbf16> to vector<16x32xbf16>
      %c0_62 = arith.constant 0 : index
      %c0_63 = arith.constant 0 : index
      %c64_64 = arith.constant 64 : index
      %96 = vector.load %arg4[%c0_62, %c0_63, %c64_64] : memref<1x16x128xbf16, #tpu.memory_space<vmem>>, vector<1x16x32xbf16>
      %97 = vector.shape_cast %96 : vector<1x16x32xbf16> to vector<16x32xbf16>
      %c0_65 = arith.constant 0 : index
      %c0_66 = arith.constant 0 : index
      %c64_67 = arith.constant 64 : index
      %98 = vector.load %arg5[%c0_65, %c0_66, %c64_67] : memref<1x16x128xbf16, #tpu.memory_space<vmem>>, vector<1x16x32xbf16>
      %99 = vector.shape_cast %98 : vector<1x16x32xbf16> to vector<16x32xbf16>
      %cst_68 = arith.constant dense<0.000000e+00> : vector<16x16xf32>
      %100 = tpu.matmul %95, %97, %cst_68 {dimension_numbers = #tpu.dot_dimension_numbers<[1], [1], [0], [0], [0, 0, 1, 0], [], []>} : vector<16x32xbf16>, vector<16x32xbf16>, vector<16x16xf32> -> vector<16x16xf32>
      %cst_69 = arith.constant -1.000000e+30 : f32
      %101 = vector.broadcast %cst_69 : f32 to vector<16x16xf32>
      %102 = arith.select %17, %100, %101 : vector<16x16xi1>, vector<16x16xf32>
      %c2 = arith.constant 2 : index
      %c0_70 = arith.constant 0 : index
      %c0_71 = arith.constant 0 : index
      %103 = vector.load %arg7[%c2, %c0_70, %c0_71] : memref<4x16x1xf32, #tpu.memory_space<vmem>>, vector<1x16x1xf32>
      %104 = vector.shape_cast %103 : vector<1x16x1xf32> to vector<16x1xf32>
      %cst_72 = arith.constant dense<0xFF800000> : vector<16xf32>
      %105 = vector.multi_reduction <maximumf>, %102, %cst_72 [1] : vector<16x16xf32> to vector<16xf32>
      %106 = vector.shape_cast %105 : vector<16xf32> to vector<16x1xf32>
      %107 = arith.maximumf %104, %106 : vector<16x1xf32>
      %108 = arith.subf %104, %107 : vector<16x1xf32>
      %109 = math.exp %108 : vector<16x1xf32>
      %110 = vector.broadcast %107 : vector<16x1xf32> to vector<16x16xf32>
      %111 = arith.subf %102, %110 : vector<16x16xf32>
      %112 = math.exp %111 : vector<16x16xf32>
      %c2_73 = arith.constant 2 : index
      %c0_74 = arith.constant 0 : index
      %c0_75 = arith.constant 0 : index
      %113 = vector.load %arg8[%c2_73, %c0_74, %c0_75] : memref<4x16x1xf32, #tpu.memory_space<vmem>>, vector<1x16x1xf32>
      %114 = vector.shape_cast %113 : vector<1x16x1xf32> to vector<16x1xf32>
      %115 = arith.mulf %109, %114 : vector<16x1xf32>
      %cst_76 = arith.constant dense<0.000000e+00> : vector<16xf32>
      %116 = vector.multi_reduction <add>, %112, %cst_76 [1] : vector<16x16xf32> to vector<16xf32>
      %117 = vector.shape_cast %116 : vector<16xf32> to vector<16x1xf32>
      %118 = arith.addf %115, %117 : vector<16x1xf32>
      %c2_77 = arith.constant 2 : index
      %c0_78 = arith.constant 0 : index
      %c0_79 = arith.constant 0 : index
      %119 = vector.load %arg8[%c2_77, %c0_78, %c0_79] : memref<4x16x1xf32, #tpu.memory_space<vmem>>, vector<1x16x1xf32>
      %120 = vector.shape_cast %119 : vector<1x16x1xf32> to vector<16x1xf32>
      %121 = vector.shape_cast %118 : vector<16x1xf32> to vector<1x16x1xf32>
      tpu.vector_store %arg8[%c2_77, %c0_78, %c0_79], %121 {strides = array<i32>} : memref<4x16x1xf32, #tpu.memory_space<vmem>>, vector<1x16x1xf32>,
      %c0_80 = arith.constant 0 : index
      %c64_81 = arith.constant 64 : index
      %122 = vector.load %arg9[%c0_80, %c64_81] : memref<16x128xf32, #tpu.memory_space<vmem>>, vector<16x32xf32>
      %123 = vector.broadcast %109 : vector<16x1xf32> to vector<16x32xf32>
      %124 = arith.mulf %123, %122 : vector<16x32xf32>
      %125 = arith.truncf %112 : vector<16x16xf32> to vector<16x16xbf16>
      %cst_82 = arith.constant dense<0.000000e+00> : vector<16x32xf32>
      %126 = tpu.matmul %125, %99, %cst_82 {dimension_numbers = #tpu.dot_dimension_numbers<[1], [0], [0], [1], [0, 0, 1, 1], [], []>} : vector<16x16xbf16>, vector<16x32xbf16>, vector<16x32xf32> -> vector<16x32xf32>
      %127 = arith.addf %124, %126 : vector<16x32xf32>
      %c0_83 = arith.constant 0 : index
      %c64_84 = arith.constant 64 : index
      %128 = vector.load %arg9[%c0_83, %c64_84] : memref<16x128xf32, #tpu.memory_space<vmem>>, vector<16x32xf32>
      tpu.vector_store %arg9[%c0_83, %c64_84], %127 {strides = array<i32>} : memref<16x128xf32, #tpu.memory_space<vmem>>, vector<16x32xf32>,
      %c2_85 = arith.constant 2 : index
      %c0_86 = arith.constant 0 : index
      %c0_87 = arith.constant 0 : index
      %129 = vector.load %arg7[%c2_85, %c0_86, %c0_87] : memref<4x16x1xf32, #tpu.memory_space<vmem>>, vector<1x16x1xf32>
      %130 = vector.shape_cast %129 : vector<1x16x1xf32> to vector<16x1xf32>
      %131 = vector.shape_cast %107 : vector<16x1xf32> to vector<1x16x1xf32>
      tpu.vector_store %arg7[%c2_85, %c0_86, %c0_87], %131 {strides = array<i32>} : memref<4x16x1xf32, #tpu.memory_space<vmem>>, vector<1x16x1xf32>,
      %c0_88 = arith.constant 0 : index
      %c0_89 = arith.constant 0 : index
      %c96 = arith.constant 96 : index
      %132 = vector.load %arg3[%c0_88, %c0_89, %c96] : memref<1x16x128xbf16, #tpu.memory_space<vmem>>, vector<1x16x32xbf16>
      %133 = vector.shape_cast %132 : vector<1x16x32xbf16> to vector<16x32xbf16>
      %c0_90 = arith.constant 0 : index
      %c0_91 = arith.constant 0 : index
      %c96_92 = arith.constant 96 : index
      %134 = vector.load %arg4[%c0_90, %c0_91, %c96_92] : memref<1x16x128xbf16, #tpu.memory_space<vmem>>, vector<1x16x32xbf16>
      %135 = vector.shape_cast %134 : vector<1x16x32xbf16> to vector<16x32xbf16>
      %c0_93 = arith.constant 0 : index
      %c0_94 = arith.constant 0 : index
      %c96_95 = arith.constant 96 : index
      %136 = vector.load %arg5[%c0_93, %c0_94, %c96_95] : memref<1x16x128xbf16, #tpu.memory_space<vmem>>, vector<1x16x32xbf16>
      %137 = vector.shape_cast %136 : vector<1x16x32xbf16> to vector<16x32xbf16>
      %cst_96 = arith.constant dense<0.000000e+00> : vector<16x16xf32>
      %138 = tpu.matmul %133, %135, %cst_96 {dimension_numbers = #tpu.dot_dimension_numbers<[1], [1], [0], [0], [0, 0, 1, 0], [], []>} : vector<16x32xbf16>, vector<16x32xbf16>, vector<16x16xf32> -> vector<16x16xf32>
      %cst_97 = arith.constant -1.000000e+30 : f32
      %139 = vector.broadcast %cst_97 : f32 to vector<16x16xf32>
      %140 = arith.select %17, %138, %139 : vector<16x16xi1>, vector<16x16xf32>
      %c3 = arith.constant 3 : index
      %c0_98 = arith.constant 0 : index
      %c0_99 = arith.constant 0 : index
      %141 = vector.load %arg7[%c3, %c0_98, %c0_99] : memref<4x16x1xf32, #tpu.memory_space<vmem>>, vector<1x16x1xf32>
      %142 = vector.shape_cast %141 : vector<1x16x1xf32> to vector<16x1xf32>
      %cst_100 = arith.constant dense<0xFF800000> : vector<16xf32>
      %143 = vector.multi_reduction <maximumf>, %140, %cst_100 [1] : vector<16x16xf32> to vector<16xf32>
      %144 = vector.shape_cast %143 : vector<16xf32> to vector<16x1xf32>
      %145 = arith.maximumf %142, %144 : vector<16x1xf32>
      %146 = arith.subf %142, %145 : vector<16x1xf32>
      %147 = math.exp %146 : vector<16x1xf32>
      %148 = vector.broadcast %145 : vector<16x1xf32> to vector<16x16xf32>
      %149 = arith.subf %140, %148 : vector<16x16xf32>
      %150 = math.exp %149 : vector<16x16xf32>
      %c3_101 = arith.constant 3 : index
      %c0_102 = arith.constant 0 : index
      %c0_103 = arith.constant 0 : index
      %151 = vector.load %arg8[%c3_101, %c0_102, %c0_103] : memref<4x16x1xf32, #tpu.memory_space<vmem>>, vector<1x16x1xf32>
      %152 = vector.shape_cast %151 : vector<1x16x1xf32> to vector<16x1xf32>
      %153 = arith.mulf %147, %152 : vector<16x1xf32>
      %cst_104 = arith.constant dense<0.000000e+00> : vector<16xf32>
      %154 = vector.multi_reduction <add>, %150, %cst_104 [1] : vector<16x16xf32> to vector<16xf32>
      %155 = vector.shape_cast %154 : vector<16xf32> to vector<16x1xf32>
      %156 = arith.addf %153, %155 : vector<16x1xf32>
      %c3_105 = arith.constant 3 : index
      %c0_106 = arith.constant 0 : index
      %c0_107 = arith.constant 0 : index
      %157 = vector.load %arg8[%c3_105, %c0_106, %c0_107] : memref<4x16x1xf32, #tpu.memory_space<vmem>>, vector<1x16x1xf32>
      %158 = vector.shape_cast %157 : vector<1x16x1xf32> to vector<16x1xf32>
      %159 = vector.shape_cast %156 : vector<16x1xf32> to vector<1x16x1xf32>
      tpu.vector_store %arg8[%c3_105, %c0_106, %c0_107], %159 {strides = array<i32>} : memref<4x16x1xf32, #tpu.memory_space<vmem>>, vector<1x16x1xf32>,
      %c0_108 = arith.constant 0 : index
      %c96_109 = arith.constant 96 : index
      %160 = vector.load %arg9[%c0_108, %c96_109] : memref<16x128xf32, #tpu.memory_space<vmem>>, vector<16x32xf32>
      %161 = vector.broadcast %147 : vector<16x1xf32> to vector<16x32xf32>
      %162 = arith.mulf %161, %160 : vector<16x32xf32>
      %163 = arith.truncf %150 : vector<16x16xf32> to vector<16x16xbf16>
      %cst_110 = arith.constant dense<0.000000e+00> : vector<16x32xf32>
      %164 = tpu.matmul %163, %137, %cst_110 {dimension_numbers = #tpu.dot_dimension_numbers<[1], [0], [0], [1], [0, 0, 1, 1], [], []>} : vector<16x16xbf16>, vector<16x32xbf16>, vector<16x32xf32> -> vector<16x32xf32>
      %165 = arith.addf %162, %164 : vector<16x32xf32>
      %c0_111 = arith.constant 0 : index
      %c96_112 = arith.constant 96 : index
      %166 = vector.load %arg9[%c0_111, %c96_112] : memref<16x128xf32, #tpu.memory_space<vmem>>, vector<16x32xf32>
      tpu.vector_store %arg9[%c0_111, %c96_112], %165 {strides = array<i32>} : memref<16x128xf32, #tpu.memory_space<vmem>>, vector<16x32xf32>,
      %c3_113 = arith.constant 3 : index
      %c0_114 = arith.constant 0 : index
      %c0_115 = arith.constant 0 : index
      %167 = vector.load %arg7[%c3_113, %c0_114, %c0_115] : memref<4x16x1xf32, #tpu.memory_space<vmem>>, vector<1x16x1xf32>
      %168 = vector.shape_cast %167 : vector<1x16x1xf32> to vector<16x1xf32>
      %169 = vector.shape_cast %145 : vector<16x1xf32> to vector<1x16x1xf32>
      tpu.vector_store %arg7[%c3_113, %c0_114, %c0_115], %169 {strides = array<i32>} : memref<4x16x1xf32, #tpu.memory_space<vmem>>, vector<1x16x1xf32>,
      %c0_116 = arith.constant 0 : index
      %c0_117 = arith.constant 0 : index
      %c0_118 = arith.constant 0 : index
      %170 = vector.load %arg8[%c0_116, %c0_117, %c0_118] : memref<4x16x1xf32, #tpu.memory_space<vmem>>, vector<1x16x1xf32>
      %171 = vector.shape_cast %170 : vector<1x16x1xf32> to vector<16x1xf32>
      %172 = tpu.reciprocal %171 {approx = true} : vector<16x1xf32> -> vector<16x1xf32>
      %c0_119 = arith.constant 0 : index
      %c0_120 = arith.constant 0 : index
      %173 = vector.load %arg9[%c0_119, %c0_120] : memref<16x128xf32, #tpu.memory_space<vmem>>, vector<16x32xf32>
      %174 = vector.broadcast %172 : vector<16x1xf32> to vector<16x32xf32>
      %175 = arith.mulf %173, %174 : vector<16x32xf32>
      %176 = arith.truncf %175 : vector<16x32xf32> to vector<16x32xbf16>
      %c0_121 = arith.constant 0 : index
      %c0_122 = arith.constant 0 : index
      %c0_123 = arith.constant 0 : index
      %177 = vector.load %arg6[%c0_121, %c0_122, %c0_123] : memref<1x16x128xbf16, #tpu.memory_space<vmem>>, vector<1x16x32xbf16>
      %178 = vector.shape_cast %177 : vector<1x16x32xbf16> to vector<16x32xbf16>
      %179 = vector.shape_cast %176 : vector<16x32xbf16> to vector<1x16x32xbf16>
      tpu.vector_store %arg6[%c0_121, %c0_122, %c0_123], %179 {strides = array<i32>} : memref<1x16x128xbf16, #tpu.memory_space<vmem>>, vector<1x16x32xbf16>,
      %c1_124 = arith.constant 1 : index
      %c0_125 = arith.constant 0 : index
      %c0_126 = arith.constant 0 : index
      %180 = vector.load %arg8[%c1_124, %c0_125, %c0_126] : memref<4x16x1xf32, #tpu.memory_space<vmem>>, vector<1x16x1xf32>
      %181 = vector.shape_cast %180 : vector<1x16x1xf32> to vector<16x1xf32>
      %182 = tpu.reciprocal %181 {approx = true} : vector<16x1xf32> -> vector<16x1xf32>
      %c0_127 = arith.constant 0 : index
      %c32_128 = arith.constant 32 : index
      %183 = vector.load %arg9[%c0_127, %c32_128] : memref<16x128xf32, #tpu.memory_space<vmem>>, vector<16x32xf32>
      %184 = vector.broadcast %182 : vector<16x1xf32> to vector<16x32xf32>
      %185 = arith.mulf %183, %184 : vector<16x32xf32>
      %186 = arith.truncf %185 : vector<16x32xf32> to vector<16x32xbf16>
      %c0_129 = arith.constant 0 : index
      %c0_130 = arith.constant 0 : index
      %c32_131 = arith.constant 32 : index
      %187 = vector.load %arg6[%c0_129, %c0_130, %c32_131] : memref<1x16x128xbf16, #tpu.memory_space<vmem>>, vector<1x16x32xbf16>
      %188 = vector.shape_cast %187 : vector<1x16x32xbf16> to vector<16x32xbf16>
      %189 = vector.shape_cast %186 : vector<16x32xbf16> to vector<1x16x32xbf16>
      tpu.vector_store %arg6[%c0_129, %c0_130, %c32_131], %189 {strides = array<i32>} : memref<1x16x128xbf16, #tpu.memory_space<vmem>>, vector<1x16x32xbf16>,
      %c2_132 = arith.constant 2 : index
      %c0_133 = arith.constant 0 : index
      %c0_134 = arith.constant 0 : index
      %190 = vector.load %arg8[%c2_132, %c0_133, %c0_134] : memref<4x16x1xf32, #tpu.memory_space<vmem>>, vector<1x16x1xf32>
      %191 = vector.shape_cast %190 : vector<1x16x1xf32> to vector<16x1xf32>
      %192 = tpu.reciprocal %191 {approx = true} : vector<16x1xf32> -> vector<16x1xf32>
      %c0_135 = arith.constant 0 : index
      %c64_136 = arith.constant 64 : index
      %193 = vector.load %arg9[%c0_135, %c64_136] : memref<16x128xf32, #tpu.memory_space<vmem>>, vector<16x32xf32>
      %194 = vector.broadcast %192 : vector<16x1xf32> to vector<16x32xf32>
      %195 = arith.mulf %193, %194 : vector<16x32xf32>
      %196 = arith.truncf %195 : vector<16x32xf32> to vector<16x32xbf16>
      %c0_137 = arith.constant 0 : index
      %c0_138 = arith.constant 0 : index
      %c64_139 = arith.constant 64 : index
      %197 = vector.load %arg6[%c0_137, %c0_138, %c64_139] : memref<1x16x128xbf16, #tpu.memory_space<vmem>>, vector<1x16x32xbf16>
      %198 = vector.shape_cast %197 : vector<1x16x32xbf16> to vector<16x32xbf16>
      %199 = vector.shape_cast %196 : vector<16x32xbf16> to vector<1x16x32xbf16>
      tpu.vector_store %arg6[%c0_137, %c0_138, %c64_139], %199 {strides = array<i32>} : memref<1x16x128xbf16, #tpu.memory_space<vmem>>, vector<1x16x32xbf16>,
      %c3_140 = arith.constant 3 : index
      %c0_141 = arith.constant 0 : index
      %c0_142 = arith.constant 0 : index
      %200 = vector.load %arg8[%c3_140, %c0_141, %c0_142] : memref<4x16x1xf32, #tpu.memory_space<vmem>>, vector<1x16x1xf32>
      %201 = vector.shape_cast %200 : vector<1x16x1xf32> to vector<16x1xf32>
      %202 = tpu.reciprocal %201 {approx = true} : vector<16x1xf32> -> vector<16x1xf32>
      %c0_143 = arith.constant 0 : index
      %c96_144 = arith.constant 96 : index
      %203 = vector.load %arg9[%c0_143, %c96_144] : memref<16x128xf32, #tpu.memory_space<vmem>>, vector<16x32xf32>
      %204 = vector.broadcast %202 : vector<16x1xf32> to vector<16x32xf32>
      %205 = arith.mulf %203, %204 : vector<16x32xf32>
      %206 = arith.truncf %205 : vector<16x32xf32> to vector<16x32xbf16>
      %c0_145 = arith.constant 0 : index
      %c0_146 = arith.constant 0 : index
      %c96_147 = arith.constant 96 : index
      %207 = vector.load %arg6[%c0_145, %c0_146, %c96_147] : memref<1x16x128xbf16, #tpu.memory_space<vmem>>, vector<1x16x32xbf16>
      %208 = vector.shape_cast %207 : vector<1x16x32xbf16> to vector<16x32xbf16>
      %209 = vector.shape_cast %206 : vector<16x32xbf16> to vector<1x16x32xbf16>
      tpu.vector_store %arg6[%c0_145, %c0_146, %c96_147], %209 {strides = array<i32>} : memref<1x16x128xbf16, #tpu.memory_space<vmem>>, vector<1x16x32xbf16>,
    } else {
    }
    return
  }
  func.func @transform_0(%arg0: i32, %arg1: i32, %arg2: i32) -> (i32, i32, i32) {
    %c0_i32 = arith.constant 0 : i32
    %c0_i32_0 = arith.constant 0 : i32
    return %arg0, %arg1, %c0_i32 : i32, i32, i32
  }
  func.func @transform_1(%arg0: i32, %arg1: i32, %arg2: i32) -> (i32, i32, i32) {
    %0 = arith.minsi %arg2, %arg1 : i32
    %c0_i32 = arith.constant 0 : i32
    %c0_i32_0 = arith.constant 0 : i32
    return %arg0, %0, %c0_i32 : i32, i32, i32
  }
  func.func @transform_2(%arg0: i32, %arg1: i32, %arg2: i32) -> (i32, i32, i32) {
    %0 = arith.minsi %arg2, %arg1 : i32
    %c0_i32 = arith.constant 0 : i32
    %c0_i32_0 = arith.constant 0 : i32
    return %arg0, %0, %c0_i32 : i32, i32, i32
  }
  func.func @transform_3(%arg0: i32, %arg1: i32, %arg2: i32) -> (i32, i32, i32) {
    %c0_i32 = arith.constant 0 : i32
    %c0_i32_0 = arith.constant 0 : i32
    return %arg0, %arg1, %c0_i32 : i32, i32, i32
  }
}

module attributes {stable_mosaic.version = 11 : i64} {
  func.func @mix_qkv_kernel(%arg0: i32, %arg1: i32, %arg2: memref<1x16x128xf32, #tpu.memory_space<vmem>>, %arg3: memref<1x16x128xf32, #tpu.memory_space<vmem>>, %arg4: memref<1x16x128xf32, #tpu.memory_space<vmem>>, %arg5: memref<1x1x128xf32, #tpu.memory_space<vmem>>, %arg6: memref<16x128xf32, #tpu.memory_space<vmem>>, %arg7: memref<16x128xf32, #tpu.memory_space<vmem>>, %arg8: memref<16x128xf32, #tpu.memory_space<vmem>>, %arg9: memref<5x128xf32, #tpu.memory_space<vmem>>, %arg10: memref<128x32xbf16, #tpu.memory_space<vmem>>, %arg11: memref<32x128xbf16, #tpu.memory_space<vmem>>, %arg12: memref<128x64xbf16, #tpu.memory_space<vmem>>, %arg13: memref<2x32x128xbf16, #tpu.memory_space<vmem>>, %arg14: memref<128x64xbf16, #tpu.memory_space<vmem>>, %arg15: memref<64x128xbf16, #tpu.memory_space<vmem>>, %arg16: memref<128x64xbf16, #tpu.memory_space<vmem>>, %arg17: memref<64x128xbf16, #tpu.memory_space<vmem>>, %arg18: memref<128x128xbf16, #tpu.memory_space<vmem>>, %arg19: memref<3x128xf32, #tpu.memory_space<vmem>>, %arg20: memref<3x128xf32, #tpu.memory_space<vmem>>, %arg21: memref<1x16x128xbf16, #tpu.memory_space<vmem>>, %arg22: memref<1x16x128xbf16, #tpu.memory_space<vmem>>, %arg23: memref<1x16x128xbf16, #tpu.memory_space<vmem>>, %arg24: memref<3x128xf32, #tpu.memory_space<vmem>>) attributes {dimension_semantics = [#tpu.dimension_semantics<parallel>, #tpu.dimension_semantics<arbitrary>], iteration_bounds = array<i64: 2, 1>, scalar_prefetch = 0 : i64, scratch_operands = 1 : i64, tpu.core_type = #tpu.core_type<tc>, window_params = [{transform_indices = @transform_0, window_bounds = array<i64: 1, 16, 128>}, {transform_indices = @transform_1, window_bounds = array<i64: 1, 16, 128>}, {transform_indices = @transform_2, window_bounds = array<i64: 1, 16, 128>}, {transform_indices = @transform_3, window_bounds = array<i64: 1, 1, 128>}, {transform_indices = @transform_4, window_bounds = array<i64: 16, 128>}, {transform_indices = @transform_5, window_bounds = array<i64: 16, 128>}, {transform_indices = @transform_6, window_bounds = array<i64: 16, 128>}, {pipeline_mode = #tpu.pipeline_mode<synchronous>, transform_indices = @transform_7, window_bounds = array<i64: 5, 128>}, {pipeline_mode = #tpu.pipeline_mode<synchronous>, transform_indices = @transform_8, window_bounds = array<i64: 128, 32>}, {pipeline_mode = #tpu.pipeline_mode<synchronous>, transform_indices = @transform_9, window_bounds = array<i64: 32, 128>}, {pipeline_mode = #tpu.pipeline_mode<synchronous>, transform_indices = @transform_10, window_bounds = array<i64: 128, 64>}, {pipeline_mode = #tpu.pipeline_mode<synchronous>, transform_indices = @transform_11, window_bounds = array<i64: 2, 32, 128>}, {pipeline_mode = #tpu.pipeline_mode<synchronous>, transform_indices = @transform_12, window_bounds = array<i64: 128, 64>}, {pipeline_mode = #tpu.pipeline_mode<synchronous>, transform_indices = @transform_13, window_bounds = array<i64: 64, 128>}, {pipeline_mode = #tpu.pipeline_mode<synchronous>, transform_indices = @transform_14, window_bounds = array<i64: 128, 64>}, {pipeline_mode = #tpu.pipeline_mode<synchronous>, transform_indices = @transform_15, window_bounds = array<i64: 64, 128>}, {pipeline_mode = #tpu.pipeline_mode<synchronous>, transform_indices = @transform_16, window_bounds = array<i64: 128, 128>}, {pipeline_mode = #tpu.pipeline_mode<synchronous>, transform_indices = @transform_17, window_bounds = array<i64: 3, 128>}, {pipeline_mode = #tpu.pipeline_mode<synchronous>, transform_indices = @transform_18, window_bounds = array<i64: 3, 128>}, {transform_indices = @transform_19, window_bounds = array<i64: 1, 16, 128>}, {transform_indices = @transform_20, window_bounds = array<i64: 1, 16, 128>}, {transform_indices = @transform_21, window_bounds = array<i64: 1, 16, 128>}]} {
    %c0 = arith.constant 0 : index
    %c0_0 = arith.constant 0 : index
    %c0_1 = arith.constant 0 : index
    %0 = vector.load %arg2[%c0, %c0_0, %c0_1] : memref<1x16x128xf32, #tpu.memory_space<vmem>>, vector<1x16x128xf32>
    %1 = vector.shape_cast %0 : vector<1x16x128xf32> to vector<16x128xf32>
    %c0_2 = arith.constant 0 : index
    %c0_3 = arith.constant 0 : index
    %c0_4 = arith.constant 0 : index
    %2 = vector.load %arg3[%c0_2, %c0_3, %c0_4] : memref<1x16x128xf32, #tpu.memory_space<vmem>>, vector<1x16x128xf32>
    %3 = vector.shape_cast %2 : vector<1x16x128xf32> to vector<16x128xf32>
    %c0_5 = arith.constant 0 : index
    %c0_6 = arith.constant 0 : index
    %c0_7 = arith.constant 0 : index
    %4 = vector.load %arg4[%c0_5, %c0_6, %c0_7] : memref<1x16x128xf32, #tpu.memory_space<vmem>>, vector<1x16x128xf32>
    %5 = vector.shape_cast %4 : vector<1x16x128xf32> to vector<16x128xf32>
    %c0_i32 = arith.constant 0 : i32
    %6 = arith.cmpi eq, %arg1, %c0_i32 : i32
    %7 = arith.extui %6 : i1 to i32
    %c0_i32_8 = arith.constant 0 : i32
    %8 = arith.cmpi ne, %7, %c0_i32_8 : i32
    scf.if %8 {
      %c0_91 = arith.constant 0 : index
      %c0_92 = arith.constant 0 : index
      %c0_93 = arith.constant 0 : index
      %216 = vector.load %arg5[%c0_91, %c0_92, %c0_93] : memref<1x1x128xf32, #tpu.memory_space<vmem>>, vector<1x1x128xf32>
      %217 = vector.shape_cast %216 : vector<1x1x128xf32> to vector<1x128xf32>
      %c0_94 = arith.constant 0 : index
      %c0_95 = arith.constant 0 : index
      %218 = vector.load %arg24[%c0_94, %c0_95] : memref<3x128xf32, #tpu.memory_space<vmem>>, vector<1x128xf32>
      tpu.vector_store %arg24[%c0_94, %c0_95], %217 {strides = array<i32>} : memref<3x128xf32, #tpu.memory_space<vmem>>, vector<1x128xf32>,
      %cst_96 = arith.constant 0.000000e+00 : f32
      %219 = vector.broadcast %cst_96 : f32 to vector<2x128xf32>
      %c1_97 = arith.constant 1 : index
      %c0_98 = arith.constant 0 : index
      %220 = vector.load %arg24[%c1_97, %c0_98] : memref<3x128xf32, #tpu.memory_space<vmem>>, vector<2x128xf32>
      tpu.vector_store %arg24[%c1_97, %c0_98], %219 {strides = array<i32>} : memref<3x128xf32, #tpu.memory_space<vmem>>, vector<2x128xf32>,
    } else {
    }
    %c0_9 = arith.constant 0 : index
    %c0_10 = arith.constant 0 : index
    %9 = vector.load %arg24[%c0_9, %c0_10] : memref<3x128xf32, #tpu.memory_space<vmem>>, vector<3x128xf32>
    %10 = arith.mulf %3, %3 : vector<16x128xf32>
    %cst = arith.constant dense<0.000000e+00> : vector<16xf32>
    %11 = vector.multi_reduction <add>, %10, %cst [1] : vector<16x128xf32> to vector<16xf32>
    %12 = vector.shape_cast %11 : vector<16xf32> to vector<16x1xf32>
    %cst_11 = arith.constant 1.280000e+02 : f32
    %13 = vector.broadcast %cst_11 : f32 to vector<16x1xf32>
    %14 = arith.divf %12, %13 : vector<16x1xf32>
    %cst_12 = arith.constant 9.99999993E-9 : f32
    %15 = vector.broadcast %cst_12 : f32 to vector<16x1xf32>
    %16 = arith.addf %14, %15 : vector<16x1xf32>
    %17 = math.rsqrt %16 : vector<16x1xf32>
    %18 = vector.broadcast %17 : vector<16x1xf32> to vector<16x128xf32>
    %19 = arith.mulf %3, %18 : vector<16x128xf32>
    %20 = tpu.iota {dimensions = array<i32: 0>} : vector<16x1xi32>
    %c0_i32_13 = arith.constant 0 : i32
    %21 = vector.broadcast %c0_i32_13 : i32 to vector<16x1xi32>
    %22 = arith.cmpi eq, %20, %21 : vector<16x1xi32>
    %23 = vector.extract_strided_slice %9 {offsets = [0, 0], sizes = [1, 128], strides = [1, 1]} : vector<3x128xf32> to vector<1x128xf32>
    %c1_i32 = arith.constant 1 : i32
    %24 = tpu.dynamic_rotate %1 by %c1_i32 dim 0 : vector<16x128xf32>, i32 -> vector<16x128xf32>
    %25 = vector.shape_cast %22 : vector<16x1xi1> to vector<16x1xi1>
    %26 = vector.broadcast %25 : vector<16x1xi1> to vector<16x128xi1>
    %27 = vector.shape_cast %23 : vector<1x128xf32> to vector<1x128xf32>
    %28 = vector.broadcast %27 : vector<1x128xf32> to vector<16x128xf32>
    %29 = arith.select %26, %28, %24 : vector<16x128xi1>, vector<16x128xf32>
    %30 = arith.subf %29, %1 : vector<16x128xf32>
    %31 = vector.extract_strided_slice %9 {offsets = [1, 0], sizes = [1, 128], strides = [1, 1]} : vector<3x128xf32> to vector<1x128xf32>
    %c1_i32_14 = arith.constant 1 : i32
    %32 = tpu.dynamic_rotate %19 by %c1_i32_14 dim 0 : vector<16x128xf32>, i32 -> vector<16x128xf32>
    %33 = vector.shape_cast %22 : vector<16x1xi1> to vector<16x1xi1>
    %34 = vector.broadcast %33 : vector<16x1xi1> to vector<16x128xi1>
    %35 = vector.shape_cast %31 : vector<1x128xf32> to vector<1x128xf32>
    %36 = vector.broadcast %35 : vector<1x128xf32> to vector<16x128xf32>
    %37 = arith.select %34, %36, %32 : vector<16x128xi1>, vector<16x128xf32>
    %38 = arith.subf %37, %19 : vector<16x128xf32>
    %39 = vector.extract_strided_slice %9 {offsets = [2, 0], sizes = [1, 128], strides = [1, 1]} : vector<3x128xf32> to vector<1x128xf32>
    %c1_i32_15 = arith.constant 1 : i32
    %40 = tpu.dynamic_rotate %5 by %c1_i32_15 dim 0 : vector<16x128xf32>, i32 -> vector<16x128xf32>
    %41 = vector.shape_cast %22 : vector<16x1xi1> to vector<16x1xi1>
    %42 = vector.broadcast %41 : vector<16x1xi1> to vector<16x128xi1>
    %43 = vector.shape_cast %39 : vector<1x128xf32> to vector<1x128xf32>
    %44 = vector.broadcast %43 : vector<1x128xf32> to vector<16x128xf32>
    %45 = arith.select %42, %44, %40 : vector<16x128xi1>, vector<16x128xf32>
    %46 = arith.subf %45, %5 : vector<16x128xf32>
    %47 = vector.extract_strided_slice %1 {offsets = [15, 0], sizes = [1, 128], strides = [1, 1]} : vector<16x128xf32> to vector<1x128xf32>
    %c0_16 = arith.constant 0 : index
    %c0_17 = arith.constant 0 : index
    %48 = vector.load %arg24[%c0_16, %c0_17] : memref<3x128xf32, #tpu.memory_space<vmem>>, vector<1x128xf32>
    tpu.vector_store %arg24[%c0_16, %c0_17], %47 {strides = array<i32>} : memref<3x128xf32, #tpu.memory_space<vmem>>, vector<1x128xf32>,
    %49 = vector.extract_strided_slice %19 {offsets = [15, 0], sizes = [1, 128], strides = [1, 1]} : vector<16x128xf32> to vector<1x128xf32>
    %c1 = arith.constant 1 : index
    %c0_18 = arith.constant 0 : index
    %50 = vector.load %arg24[%c1, %c0_18] : memref<3x128xf32, #tpu.memory_space<vmem>>, vector<1x128xf32>
    tpu.vector_store %arg24[%c1, %c0_18], %49 {strides = array<i32>} : memref<3x128xf32, #tpu.memory_space<vmem>>, vector<1x128xf32>,
    %51 = vector.extract_strided_slice %5 {offsets = [15, 0], sizes = [1, 128], strides = [1, 1]} : vector<16x128xf32> to vector<1x128xf32>
    %c2 = arith.constant 2 : index
    %c0_19 = arith.constant 0 : index
    %52 = vector.load %arg24[%c2, %c0_19] : memref<3x128xf32, #tpu.memory_space<vmem>>, vector<1x128xf32>
    tpu.vector_store %arg24[%c2, %c0_19], %51 {strides = array<i32>} : memref<3x128xf32, #tpu.memory_space<vmem>>, vector<1x128xf32>,
    %c0_20 = arith.constant 0 : index
    %c0_21 = arith.constant 0 : index
    %53 = vector.load %arg9[%c0_20, %c0_21] : memref<5x128xf32, #tpu.memory_space<vmem>>, vector<5x128xf32>
    %c0_22 = arith.constant 0 : index
    %c0_23 = arith.constant 0 : index
    %54 = vector.load %arg19[%c0_22, %c0_23] : memref<3x128xf32, #tpu.memory_space<vmem>>, vector<3x128xf32>
    %c0_24 = arith.constant 0 : index
    %c0_25 = arith.constant 0 : index
    %55 = vector.load %arg20[%c0_24, %c0_25] : memref<3x128xf32, #tpu.memory_space<vmem>>, vector<3x128xf32>
    %56 = vector.extract_strided_slice %53 {offsets = [0, 0], sizes = [1, 128], strides = [1, 1]} : vector<5x128xf32> to vector<1x128xf32>
    %57 = vector.broadcast %56 : vector<1x128xf32> to vector<16x128xf32>
    %58 = arith.mulf %30, %57 : vector<16x128xf32>
    %59 = arith.addf %1, %58 : vector<16x128xf32>
    %c0_26 = arith.constant 0 : index
    %c0_27 = arith.constant 0 : index
    %60 = vector.load %arg10[%c0_26, %c0_27] : memref<128x32xbf16, #tpu.memory_space<vmem>>, vector<128x32xbf16>
    %61 = arith.truncf %59 : vector<16x128xf32> to vector<16x128xbf16>
    %cst_28 = arith.constant dense<0.000000e+00> : vector<16x32xf32>
    %62 = tpu.matmul %61, %60, %cst_28 {dimension_numbers = #tpu.dot_dimension_numbers<[1], [0], [0], [1], [0, 0, 1, 1], [], []>} : vector<16x128xbf16>, vector<128x32xbf16>, vector<16x32xf32> -> vector<16x32xf32>
    %63 = math.tanh %62 : vector<16x32xf32>
    %c0_29 = arith.constant 0 : index
    %c0_30 = arith.constant 0 : index
    %64 = vector.load %arg11[%c0_29, %c0_30] : memref<32x128xbf16, #tpu.memory_space<vmem>>, vector<32x128xbf16>
    %65 = arith.truncf %63 : vector<16x32xf32> to vector<16x32xbf16>
    %cst_31 = arith.constant dense<0.000000e+00> : vector<16x128xf32>
    %66 = tpu.matmul %65, %64, %cst_31 {dimension_numbers = #tpu.dot_dimension_numbers<[1], [0], [0], [1], [0, 0, 1, 1], [], []>} : vector<16x32xbf16>, vector<32x128xbf16>, vector<16x128xf32> -> vector<16x128xf32>
    %67 = vector.extract_strided_slice %53 {offsets = [2, 0], sizes = [1, 128], strides = [1, 1]} : vector<5x128xf32> to vector<1x128xf32>
    %68 = vector.broadcast %67 : vector<1x128xf32> to vector<16x128xf32>
    %69 = arith.mulf %38, %68 : vector<16x128xf32>
    %70 = arith.addf %19, %69 : vector<16x128xf32>
    %c0_32 = arith.constant 0 : index
    %c0_33 = arith.constant 0 : index
    %71 = vector.load %arg12[%c0_32, %c0_33] : memref<128x64xbf16, #tpu.memory_space<vmem>>, vector<128x64xbf16>
    %72 = arith.truncf %70 : vector<16x128xf32> to vector<16x128xbf16>
    %cst_34 = arith.constant dense<0.000000e+00> : vector<16x64xf32>
    %73 = tpu.matmul %72, %71, %cst_34 {dimension_numbers = #tpu.dot_dimension_numbers<[1], [0], [0], [1], [0, 0, 1, 1], [], []>} : vector<16x128xbf16>, vector<128x64xbf16>, vector<16x64xf32> -> vector<16x64xf32>
    %74 = math.tanh %73 : vector<16x64xf32>
    %75 = vector.extract_strided_slice %74 {offsets = [0, 0], sizes = [16, 32], strides = [1, 1]} : vector<16x64xf32> to vector<16x32xf32>
    %c0_35 = arith.constant 0 : index
    %c0_36 = arith.constant 0 : index
    %c0_37 = arith.constant 0 : index
    %76 = vector.load %arg13[%c0_35, %c0_36, %c0_37] : memref<2x32x128xbf16, #tpu.memory_space<vmem>>, vector<1x32x128xbf16>
    %77 = vector.shape_cast %76 : vector<1x32x128xbf16> to vector<32x128xbf16>
    %78 = arith.truncf %75 : vector<16x32xf32> to vector<16x32xbf16>
    %cst_38 = arith.constant dense<0.000000e+00> : vector<16x128xf32>
    %79 = tpu.matmul %78, %77, %cst_38 {dimension_numbers = #tpu.dot_dimension_numbers<[1], [0], [0], [1], [0, 0, 1, 1], [], []>} : vector<16x32xbf16>, vector<32x128xbf16>, vector<16x128xf32> -> vector<16x128xf32>
    %80 = vector.extract_strided_slice %74 {offsets = [0, 32], sizes = [16, 32], strides = [1, 1]} : vector<16x64xf32> to vector<16x32xf32>
    %c1_39 = arith.constant 1 : index
    %c0_40 = arith.constant 0 : index
    %c0_41 = arith.constant 0 : index
    %81 = vector.load %arg13[%c1_39, %c0_40, %c0_41] : memref<2x32x128xbf16, #tpu.memory_space<vmem>>, vector<1x32x128xbf16>
    %82 = vector.shape_cast %81 : vector<1x32x128xbf16> to vector<32x128xbf16>
    %83 = arith.truncf %80 : vector<16x32xf32> to vector<16x32xbf16>
    %cst_42 = arith.constant dense<0.000000e+00> : vector<16x128xf32>
    %84 = tpu.matmul %83, %82, %cst_42 {dimension_numbers = #tpu.dot_dimension_numbers<[1], [0], [0], [1], [0, 0, 1, 1], [], []>} : vector<16x32xbf16>, vector<32x128xbf16>, vector<16x128xf32> -> vector<16x128xf32>
    %85 = vector.extract_strided_slice %53 {offsets = [1, 0], sizes = [1, 128], strides = [1, 1]} : vector<5x128xf32> to vector<1x128xf32>
    %86 = vector.broadcast %85 : vector<1x128xf32> to vector<16x128xf32>
    %87 = arith.addf %86, %66 : vector<16x128xf32>
    %88 = arith.mulf %30, %87 : vector<16x128xf32>
    %89 = arith.addf %1, %88 : vector<16x128xf32>
    %90 = vector.extract_strided_slice %53 {offsets = [3, 0], sizes = [1, 128], strides = [1, 1]} : vector<5x128xf32> to vector<1x128xf32>
    %91 = vector.broadcast %90 : vector<1x128xf32> to vector<16x128xf32>
    %92 = arith.addf %91, %79 : vector<16x128xf32>
    %93 = arith.mulf %46, %92 : vector<16x128xf32>
    %94 = arith.addf %5, %93 : vector<16x128xf32>
    %95 = vector.extract_strided_slice %53 {offsets = [4, 0], sizes = [1, 128], strides = [1, 1]} : vector<5x128xf32> to vector<1x128xf32>
    %96 = vector.broadcast %95 : vector<1x128xf32> to vector<16x128xf32>
    %97 = arith.addf %96, %84 : vector<16x128xf32>
    %98 = arith.mulf %38, %97 : vector<16x128xf32>
    %99 = arith.addf %19, %98 : vector<16x128xf32>
    %c0_43 = arith.constant 0 : index
    %c0_44 = arith.constant 0 : index
    %100 = vector.load %arg14[%c0_43, %c0_44] : memref<128x64xbf16, #tpu.memory_space<vmem>>, vector<128x64xbf16>
    %101 = arith.truncf %94 : vector<16x128xf32> to vector<16x128xbf16>
    %cst_45 = arith.constant dense<0.000000e+00> : vector<16x64xf32>
    %102 = tpu.matmul %101, %100, %cst_45 {dimension_numbers = #tpu.dot_dimension_numbers<[1], [0], [0], [1], [0, 0, 1, 1], [], []>} : vector<16x128xbf16>, vector<128x64xbf16>, vector<16x64xf32> -> vector<16x64xf32>
    %103 = math.tanh %102 : vector<16x64xf32>
    %c0_46 = arith.constant 0 : index
    %c0_47 = arith.constant 0 : index
    %104 = vector.load %arg15[%c0_46, %c0_47] : memref<64x128xbf16, #tpu.memory_space<vmem>>, vector<64x128xbf16>
    %105 = arith.truncf %103 : vector<16x64xf32> to vector<16x64xbf16>
    %cst_48 = arith.constant dense<0.000000e+00> : vector<16x128xf32>
    %106 = tpu.matmul %105, %104, %cst_48 {dimension_numbers = #tpu.dot_dimension_numbers<[1], [0], [0], [1], [0, 0, 1, 1], [], []>} : vector<16x64xbf16>, vector<64x128xbf16>, vector<16x128xf32> -> vector<16x128xf32>
    %107 = arith.addf %94, %106 : vector<16x128xf32>
    %c0_49 = arith.constant 0 : index
    %c0_50 = arith.constant 0 : index
    %108 = vector.load %arg16[%c0_49, %c0_50] : memref<128x64xbf16, #tpu.memory_space<vmem>>, vector<128x64xbf16>
    %109 = arith.truncf %99 : vector<16x128xf32> to vector<16x128xbf16>
    %cst_51 = arith.constant dense<0.000000e+00> : vector<16x64xf32>
    %110 = tpu.matmul %109, %108, %cst_51 {dimension_numbers = #tpu.dot_dimension_numbers<[1], [0], [0], [1], [0, 0, 1, 1], [], []>} : vector<16x128xbf16>, vector<128x64xbf16>, vector<16x64xf32> -> vector<16x64xf32>
    %111 = math.tanh %110 : vector<16x64xf32>
    %c0_52 = arith.constant 0 : index
    %c0_53 = arith.constant 0 : index
    %112 = vector.load %arg17[%c0_52, %c0_53] : memref<64x128xbf16, #tpu.memory_space<vmem>>, vector<64x128xbf16>
    %113 = arith.truncf %111 : vector<16x64xf32> to vector<16x64xbf16>
    %cst_54 = arith.constant dense<0.000000e+00> : vector<16x128xf32>
    %114 = tpu.matmul %113, %112, %cst_54 {dimension_numbers = #tpu.dot_dimension_numbers<[1], [0], [0], [1], [0, 0, 1, 1], [], []>} : vector<16x64xbf16>, vector<64x128xbf16>, vector<16x128xf32> -> vector<16x128xf32>
    %115 = arith.addf %99, %114 : vector<16x128xf32>
    %c0_55 = arith.constant 0 : index
    %c0_56 = arith.constant 0 : index
    %116 = vector.load %arg18[%c0_55, %c0_56] : memref<128x128xbf16, #tpu.memory_space<vmem>>, vector<128x128xbf16>
    %117 = arith.truncf %89 : vector<16x128xf32> to vector<16x128xbf16>
    %cst_57 = arith.constant dense<0.000000e+00> : vector<16x128xf32>
    %118 = tpu.matmul %117, %116, %cst_57 {dimension_numbers = #tpu.dot_dimension_numbers<[1], [0], [0], [1], [0, 0, 1, 1], [], []>} : vector<16x128xbf16>, vector<128x128xbf16>, vector<16x128xf32> -> vector<16x128xf32>
    %119 = vector.extract_strided_slice %54 {offsets = [0, 0], sizes = [1, 128], strides = [1, 1]} : vector<3x128xf32> to vector<1x128xf32>
    %120 = vector.extract_strided_slice %55 {offsets = [0, 0], sizes = [1, 128], strides = [1, 1]} : vector<3x128xf32> to vector<1x128xf32>
    %cst_58 = arith.constant dense<0.000000e+00> : vector<16xf32>
    %121 = vector.multi_reduction <add>, %118, %cst_58 [1] : vector<16x128xf32> to vector<16xf32>
    %122 = vector.shape_cast %121 : vector<16xf32> to vector<16x1xf32>
    %cst_59 = arith.constant 1.280000e+02 : f32
    %123 = vector.broadcast %cst_59 : f32 to vector<16x1xf32>
    %124 = arith.divf %122, %123 : vector<16x1xf32>
    %125 = vector.broadcast %124 : vector<16x1xf32> to vector<16x128xf32>
    %126 = arith.subf %118, %125 : vector<16x128xf32>
    %127 = arith.mulf %126, %126 : vector<16x128xf32>
    %cst_60 = arith.constant dense<0.000000e+00> : vector<16xf32>
    %128 = vector.multi_reduction <add>, %127, %cst_60 [1] : vector<16x128xf32> to vector<16xf32>
    %129 = vector.shape_cast %128 : vector<16xf32> to vector<16x1xf32>
    %cst_61 = arith.constant 1.280000e+02 : f32
    %130 = vector.broadcast %cst_61 : f32 to vector<16x1xf32>
    %131 = arith.divf %129, %130 : vector<16x1xf32>
    %cst_62 = arith.constant 9.99999974E-6 : f32
    %132 = vector.broadcast %cst_62 : f32 to vector<16x1xf32>
    %133 = arith.addf %131, %132 : vector<16x1xf32>
    %134 = math.rsqrt %133 : vector<16x1xf32>
    %135 = vector.broadcast %134 : vector<16x1xf32> to vector<16x128xf32>
    %136 = arith.mulf %126, %135 : vector<16x128xf32>
    %137 = vector.broadcast %119 : vector<1x128xf32> to vector<16x128xf32>
    %138 = arith.mulf %136, %137 : vector<16x128xf32>
    %139 = vector.broadcast %120 : vector<1x128xf32> to vector<16x128xf32>
    %140 = arith.addf %138, %139 : vector<16x128xf32>
    %cst_63 = arith.constant 0.176776692 : f32
    %141 = vector.broadcast %cst_63 : f32 to vector<16x128xf32>
    %142 = arith.mulf %140, %141 : vector<16x128xf32>
    %143 = vector.extract_strided_slice %54 {offsets = [1, 0], sizes = [1, 128], strides = [1, 1]} : vector<3x128xf32> to vector<1x128xf32>
    %144 = vector.extract_strided_slice %55 {offsets = [1, 0], sizes = [1, 128], strides = [1, 1]} : vector<3x128xf32> to vector<1x128xf32>
    %cst_64 = arith.constant dense<0.000000e+00> : vector<16xf32>
    %145 = vector.multi_reduction <add>, %107, %cst_64 [1] : vector<16x128xf32> to vector<16xf32>
    %146 = vector.shape_cast %145 : vector<16xf32> to vector<16x1xf32>
    %cst_65 = arith.constant 1.280000e+02 : f32
    %147 = vector.broadcast %cst_65 : f32 to vector<16x1xf32>
    %148 = arith.divf %146, %147 : vector<16x1xf32>
    %149 = vector.broadcast %148 : vector<16x1xf32> to vector<16x128xf32>
    %150 = arith.subf %107, %149 : vector<16x128xf32>
    %151 = arith.mulf %150, %150 : vector<16x128xf32>
    %cst_66 = arith.constant dense<0.000000e+00> : vector<16xf32>
    %152 = vector.multi_reduction <add>, %151, %cst_66 [1] : vector<16x128xf32> to vector<16xf32>
    %153 = vector.shape_cast %152 : vector<16xf32> to vector<16x1xf32>
    %cst_67 = arith.constant 1.280000e+02 : f32
    %154 = vector.broadcast %cst_67 : f32 to vector<16x1xf32>
    %155 = arith.divf %153, %154 : vector<16x1xf32>
    %cst_68 = arith.constant 9.99999974E-6 : f32
    %156 = vector.broadcast %cst_68 : f32 to vector<16x1xf32>
    %157 = arith.addf %155, %156 : vector<16x1xf32>
    %158 = math.rsqrt %157 : vector<16x1xf32>
    %159 = vector.broadcast %158 : vector<16x1xf32> to vector<16x128xf32>
    %160 = arith.mulf %150, %159 : vector<16x128xf32>
    %161 = vector.broadcast %143 : vector<1x128xf32> to vector<16x128xf32>
    %162 = arith.mulf %160, %161 : vector<16x128xf32>
    %163 = vector.broadcast %144 : vector<1x128xf32> to vector<16x128xf32>
    %164 = arith.addf %162, %163 : vector<16x128xf32>
    %165 = vector.extract_strided_slice %54 {offsets = [2, 0], sizes = [1, 128], strides = [1, 1]} : vector<3x128xf32> to vector<1x128xf32>
    %166 = vector.extract_strided_slice %55 {offsets = [2, 0], sizes = [1, 128], strides = [1, 1]} : vector<3x128xf32> to vector<1x128xf32>
    %cst_69 = arith.constant dense<0.000000e+00> : vector<16xf32>
    %167 = vector.multi_reduction <add>, %115, %cst_69 [1] : vector<16x128xf32> to vector<16xf32>
    %168 = vector.shape_cast %167 : vector<16xf32> to vector<16x1xf32>
    %cst_70 = arith.constant 1.280000e+02 : f32
    %169 = vector.broadcast %cst_70 : f32 to vector<16x1xf32>
    %170 = arith.divf %168, %169 : vector<16x1xf32>
    %171 = vector.broadcast %170 : vector<16x1xf32> to vector<16x128xf32>
    %172 = arith.subf %115, %171 : vector<16x128xf32>
    %173 = arith.mulf %172, %172 : vector<16x128xf32>
    %cst_71 = arith.constant dense<0.000000e+00> : vector<16xf32>
    %174 = vector.multi_reduction <add>, %173, %cst_71 [1] : vector<16x128xf32> to vector<16xf32>
    %175 = vector.shape_cast %174 : vector<16xf32> to vector<16x1xf32>
    %cst_72 = arith.constant 1.280000e+02 : f32
    %176 = vector.broadcast %cst_72 : f32 to vector<16x1xf32>
    %177 = arith.divf %175, %176 : vector<16x1xf32>
    %cst_73 = arith.constant 9.99999974E-6 : f32
    %178 = vector.broadcast %cst_73 : f32 to vector<16x1xf32>
    %179 = arith.addf %177, %178 : vector<16x1xf32>
    %180 = math.rsqrt %179 : vector<16x1xf32>
    %181 = vector.broadcast %180 : vector<16x1xf32> to vector<16x128xf32>
    %182 = arith.mulf %172, %181 : vector<16x128xf32>
    %183 = vector.broadcast %165 : vector<1x128xf32> to vector<16x128xf32>
    %184 = arith.mulf %182, %183 : vector<16x128xf32>
    %185 = vector.broadcast %166 : vector<1x128xf32> to vector<16x128xf32>
    %186 = arith.addf %184, %185 : vector<16x128xf32>
    %c0_74 = arith.constant 0 : index
    %c0_75 = arith.constant 0 : index
    %187 = vector.load %arg6[%c0_74, %c0_75] : memref<16x128xf32, #tpu.memory_space<vmem>>, vector<16x128xf32>
    %c0_76 = arith.constant 0 : index
    %c0_77 = arith.constant 0 : index
    %188 = vector.load %arg7[%c0_76, %c0_77] : memref<16x128xf32, #tpu.memory_space<vmem>>, vector<16x128xf32>
    %c0_78 = arith.constant 0 : index
    %c0_79 = arith.constant 0 : index
    %189 = vector.load %arg8[%c0_78, %c0_79] : memref<16x128xf32, #tpu.memory_space<vmem>>, vector<16x128xf32>
    %c112_i32 = arith.constant 112 : i32
    %190 = tpu.dynamic_rotate %142 by %c112_i32 dim 1 : vector<16x128xf32>, i32 -> vector<16x128xf32>
    %c16_i32 = arith.constant 16 : i32
    %191 = tpu.dynamic_rotate %142 by %c16_i32 dim 1 : vector<16x128xf32>, i32 -> vector<16x128xf32>
    %192 = arith.mulf %142, %187 : vector<16x128xf32>
    %193 = arith.mulf %190, %188 : vector<16x128xf32>
    %194 = arith.addf %192, %193 : vector<16x128xf32>
    %195 = arith.mulf %191, %189 : vector<16x128xf32>
    %196 = arith.addf %194, %195 : vector<16x128xf32>
    %c112_i32_80 = arith.constant 112 : i32
    %197 = tpu.dynamic_rotate %164 by %c112_i32_80 dim 1 : vector<16x128xf32>, i32 -> vector<16x128xf32>
    %c16_i32_81 = arith.constant 16 : i32
    %198 = tpu.dynamic_rotate %164 by %c16_i32_81 dim 1 : vector<16x128xf32>, i32 -> vector<16x128xf32>
    %199 = arith.mulf %164, %187 : vector<16x128xf32>
    %200 = arith.mulf %197, %188 : vector<16x128xf32>
    %201 = arith.addf %199, %200 : vector<16x128xf32>
    %202 = arith.mulf %198, %189 : vector<16x128xf32>
    %203 = arith.addf %201, %202 : vector<16x128xf32>
    %204 = arith.truncf %196 : vector<16x128xf32> to vector<16x128xbf16>
    %c0_82 = arith.constant 0 : index
    %c0_83 = arith.constant 0 : index
    %c0_84 = arith.constant 0 : index
    %205 = vector.load %arg21[%c0_82, %c0_83, %c0_84] : memref<1x16x128xbf16, #tpu.memory_space<vmem>>, vector<1x16x128xbf16>
    %206 = vector.shape_cast %205 : vector<1x16x128xbf16> to vector<16x128xbf16>
    %207 = vector.shape_cast %204 : vector<16x128xbf16> to vector<1x16x128xbf16>
    tpu.vector_store %arg21[%c0_82, %c0_83, %c0_84], %207 {strides = array<i32>} : memref<1x16x128xbf16, #tpu.memory_space<vmem>>, vector<1x16x128xbf16>,
    %208 = arith.truncf %203 : vector<16x128xf32> to vector<16x128xbf16>
    %c0_85 = arith.constant 0 : index
    %c0_86 = arith.constant 0 : index
    %c0_87 = arith.constant 0 : index
    %209 = vector.load %arg22[%c0_85, %c0_86, %c0_87] : memref<1x16x128xbf16, #tpu.memory_space<vmem>>, vector<1x16x128xbf16>
    %210 = vector.shape_cast %209 : vector<1x16x128xbf16> to vector<16x128xbf16>
    %211 = vector.shape_cast %208 : vector<16x128xbf16> to vector<1x16x128xbf16>
    tpu.vector_store %arg22[%c0_85, %c0_86, %c0_87], %211 {strides = array<i32>} : memref<1x16x128xbf16, #tpu.memory_space<vmem>>, vector<1x16x128xbf16>,
    %212 = arith.truncf %186 : vector<16x128xf32> to vector<16x128xbf16>
    %c0_88 = arith.constant 0 : index
    %c0_89 = arith.constant 0 : index
    %c0_90 = arith.constant 0 : index
    %213 = vector.load %arg23[%c0_88, %c0_89, %c0_90] : memref<1x16x128xbf16, #tpu.memory_space<vmem>>, vector<1x16x128xbf16>
    %214 = vector.shape_cast %213 : vector<1x16x128xbf16> to vector<16x128xbf16>
    %215 = vector.shape_cast %212 : vector<16x128xbf16> to vector<1x16x128xbf16>
    tpu.vector_store %arg23[%c0_88, %c0_89, %c0_90], %215 {strides = array<i32>} : memref<1x16x128xbf16, #tpu.memory_space<vmem>>, vector<1x16x128xbf16>,
    return
  }
  func.func @transform_0(%arg0: i32, %arg1: i32) -> (i32, i32, i32) {
    %c0_i32 = arith.constant 0 : i32
    %c0_i32_0 = arith.constant 0 : i32
    return %arg0, %arg1, %c0_i32 : i32, i32, i32
  }
  func.func @transform_1(%arg0: i32, %arg1: i32) -> (i32, i32, i32) {
    %c0_i32 = arith.constant 0 : i32
    %c0_i32_0 = arith.constant 0 : i32
    return %arg0, %arg1, %c0_i32 : i32, i32, i32
  }
  func.func @transform_2(%arg0: i32, %arg1: i32) -> (i32, i32, i32) {
    %c0_i32 = arith.constant 0 : i32
    %c0_i32_0 = arith.constant 0 : i32
    return %arg0, %arg1, %c0_i32 : i32, i32, i32
  }
  func.func @transform_3(%arg0: i32, %arg1: i32) -> (i32, i32, i32) {
    %c0_i32 = arith.constant 0 : i32
    %c0_i32_0 = arith.constant 0 : i32
    %c0_i32_1 = arith.constant 0 : i32
    return %arg0, %c0_i32, %c0_i32_0 : i32, i32, i32
  }
  func.func @transform_4(%arg0: i32, %arg1: i32) -> (i32, i32) {
    %c0_i32 = arith.constant 0 : i32
    %c0_i32_0 = arith.constant 0 : i32
    return %arg1, %c0_i32 : i32, i32
  }
  func.func @transform_5(%arg0: i32, %arg1: i32) -> (i32, i32) {
    %c0_i32 = arith.constant 0 : i32
    %c0_i32_0 = arith.constant 0 : i32
    return %arg1, %c0_i32 : i32, i32
  }
  func.func @transform_6(%arg0: i32, %arg1: i32) -> (i32, i32) {
    %c0_i32 = arith.constant 0 : i32
    %c0_i32_0 = arith.constant 0 : i32
    return %arg1, %c0_i32 : i32, i32
  }
  func.func @transform_7(%arg0: i32, %arg1: i32) -> (i32, i32) {
    %c0_i32 = arith.constant 0 : i32
    %c0_i32_0 = arith.constant 0 : i32
    %c0_i32_1 = arith.constant 0 : i32
    return %c0_i32, %c0_i32_0 : i32, i32
  }
  func.func @transform_8(%arg0: i32, %arg1: i32) -> (i32, i32) {
    %c0_i32 = arith.constant 0 : i32
    %c0_i32_0 = arith.constant 0 : i32
    %c0_i32_1 = arith.constant 0 : i32
    return %c0_i32, %c0_i32_0 : i32, i32
  }
  func.func @transform_9(%arg0: i32, %arg1: i32) -> (i32, i32) {
    %c0_i32 = arith.constant 0 : i32
    %c0_i32_0 = arith.constant 0 : i32
    %c0_i32_1 = arith.constant 0 : i32
    return %c0_i32, %c0_i32_0 : i32, i32
  }
  func.func @transform_10(%arg0: i32, %arg1: i32) -> (i32, i32) {
    %c0_i32 = arith.constant 0 : i32
    %c0_i32_0 = arith.constant 0 : i32
    %c0_i32_1 = arith.constant 0 : i32
    return %c0_i32, %c0_i32_0 : i32, i32
  }
  func.func @transform_11(%arg0: i32, %arg1: i32) -> (i32, i32, i32) {
    %c0_i32 = arith.constant 0 : i32
    %c0_i32_0 = arith.constant 0 : i32
    %c0_i32_1 = arith.constant 0 : i32
    %c0_i32_2 = arith.constant 0 : i32
    return %c0_i32, %c0_i32_0, %c0_i32_1 : i32, i32, i32
  }
  func.func @transform_12(%arg0: i32, %arg1: i32) -> (i32, i32) {
    %c0_i32 = arith.constant 0 : i32
    %c0_i32_0 = arith.constant 0 : i32
    %c0_i32_1 = arith.constant 0 : i32
    return %c0_i32, %c0_i32_0 : i32, i32
  }
  func.func @transform_13(%arg0: i32, %arg1: i32) -> (i32, i32) {
    %c0_i32 = arith.constant 0 : i32
    %c0_i32_0 = arith.constant 0 : i32
    %c0_i32_1 = arith.constant 0 : i32
    return %c0_i32, %c0_i32_0 : i32, i32
  }
  func.func @transform_14(%arg0: i32, %arg1: i32) -> (i32, i32) {
    %c0_i32 = arith.constant 0 : i32
    %c0_i32_0 = arith.constant 0 : i32
    %c0_i32_1 = arith.constant 0 : i32
    return %c0_i32, %c0_i32_0 : i32, i32
  }
  func.func @transform_15(%arg0: i32, %arg1: i32) -> (i32, i32) {
    %c0_i32 = arith.constant 0 : i32
    %c0_i32_0 = arith.constant 0 : i32
    %c0_i32_1 = arith.constant 0 : i32
    return %c0_i32, %c0_i32_0 : i32, i32
  }
  func.func @transform_16(%arg0: i32, %arg1: i32) -> (i32, i32) {
    %c0_i32 = arith.constant 0 : i32
    %c0_i32_0 = arith.constant 0 : i32
    %c0_i32_1 = arith.constant 0 : i32
    return %c0_i32, %c0_i32_0 : i32, i32
  }
  func.func @transform_17(%arg0: i32, %arg1: i32) -> (i32, i32) {
    %c0_i32 = arith.constant 0 : i32
    %c0_i32_0 = arith.constant 0 : i32
    %c0_i32_1 = arith.constant 0 : i32
    return %c0_i32, %c0_i32_0 : i32, i32
  }
  func.func @transform_18(%arg0: i32, %arg1: i32) -> (i32, i32) {
    %c0_i32 = arith.constant 0 : i32
    %c0_i32_0 = arith.constant 0 : i32
    %c0_i32_1 = arith.constant 0 : i32
    return %c0_i32, %c0_i32_0 : i32, i32
  }
  func.func @transform_19(%arg0: i32, %arg1: i32) -> (i32, i32, i32) {
    %c0_i32 = arith.constant 0 : i32
    %c0_i32_0 = arith.constant 0 : i32
    return %arg0, %arg1, %c0_i32 : i32, i32, i32
  }
  func.func @transform_20(%arg0: i32, %arg1: i32) -> (i32, i32, i32) {
    %c0_i32 = arith.constant 0 : i32
    %c0_i32_0 = arith.constant 0 : i32
    return %arg0, %arg1, %c0_i32 : i32, i32, i32
  }
  func.func @transform_21(%arg0: i32, %arg1: i32) -> (i32, i32, i32) {
    %c0_i32 = arith.constant 0 : i32
    %c0_i32_0 = arith.constant 0 : i32
    return %arg0, %arg1, %c0_i32 : i32, i32, i32
  }
}

</mosaic_0001>

<bundles_post_ra>
// kernel: tile.19
= control target key start
LH: loop header
LB: loop body
LE: loop exit
PB: predicated region body
PF: predicated region fallthrough
CT: control target
= control target key end

     0   :  { %vm82_vm0 = vcmask 1047556   ;;  %vm84_vm1 = vcmask 261120   ;;  %s195_s9 = smov 96   ;;  %s196_s14 = smov 32   ;;  %vm103_vm2 = vcmask 1048320   ;;  %vm124_vm3 = vcmask 785920   ;;  %s289_s0 = inlined_call_operand.vmem [shape: f32[16,4,32], index: 0, kind: input, shape index: {}]   ;;  %s290_s1 = inlined_call_operand.vmem [shape: f32[16,128], index: 1, kind: output, shape index: {}]  }
   0x1   :  { %v180_v0 = vld [vmem:[%s289_s0 + $0x1c] sm:$0xf]  ;;  %v181_v1 = vld [vmem:[%s289_s0 + $0x18] sm:$0xf]  ;;  %v182_v2 = vld [vmem:[%s289_s0 + $0x14] sm:$0xf] }
   0x2   :  { %48 = vst [vmem:[#allocation0 + $0x38] sm:$0xf] %v180_v0  ;;  %53 = vst [vmem:[#allocation0 + $0x30] sm:$0xf] %v181_v1  ;;  %v183_v3 = vld [vmem:[%s289_s0 + $0x10] sm:$0xf] }
   0x3   :  { %58 = vst [vmem:[#allocation0 + $0x28] sm:$0xf] %v182_v2  ;;  %v184_v4 = vld [vmem:[%s289_s0 + $0xc] sm:$0xf]  ;;  %v185_v5 = vld [vmem:[%s289_s0 + $0x8] sm:$0xf] }
   0x4   :  { %63 = vst [vmem:[#allocation0 + $0x20] sm:$0xf] %v183_v3  ;;  %68 = vst [vmem:[#allocation0 + $0x18] sm:$0xf] %v184_v4  ;;  %v186_v6 = vld [vmem:[%s289_s0 + $0x4] sm:$0xf] }
   0x5   :  { %73 = vst [vmem:[#allocation0 + $0x10] sm:$0xf] %v185_v5  ;;  %v78_v7 = vld [vmem:[%s289_s0] sm:$0xf]  ;;  %77 = vst [vmem:[#allocation0 + $0x8] sm:$0xf] %v186_v6 }
   0x6   :  { %79 = vst [vmem:[#allocation0] sm:$0xf] %v78_v7  ;;  %v172_v8 = vld [vmem:[%s289_s0 + $0x3c] sm:$0xf]  ;;  %v173_v9 = vld [vmem:[%s289_s0 + $0x38] sm:$0xf] }
   0x7   :  { %8 = vst [vmem:[#allocation0 + $0x78] sm:$0xf] %v172_v8  ;;  %13 = vst [vmem:[#allocation0 + $0x70] sm:$0xf] %v173_v9  ;;  %v174_v10 = vld [vmem:[%s289_s0 + $0x34] sm:$0xf] }
   0x8   :  { %v175_v11 = vld [vmem:[%s289_s0 + $0x30] sm:$0xf]  ;;  %v176_v12 = vld [vmem:[%s289_s0 + $0x2c] sm:$0xf]  ;;  %18 = vst [vmem:[#allocation0 + $0x68] sm:$0xf] %v174_v10 }
   0x9   :  { %23 = vst [vmem:[#allocation0 + $0x60] sm:$0xf] %v175_v11  ;;  %28 = vst [vmem:[#allocation0 + $0x58] sm:$0xf] %v176_v12  ;;  %v177_v13 = vld [vmem:[%s289_s0 + $0x28] sm:$0xf] }
   0xa   :  { %v178_v14 = vld [vmem:[%s289_s0 + $0x24] sm:$0xf]  ;;  %v179_v15 = vld [vmem:[%s289_s0 + $0x20] sm:$0xf]  ;;  %33 = vst [vmem:[#allocation0 + $0x50] sm:$0xf] %v177_v13 }
   0xb   :  { %38 = vst [vmem:[#allocation0 + $0x48] sm:$0xf] %v178_v14  ;;  %43 = vst [vmem:[#allocation0 + $0x40] sm:$0xf] %v179_v15  ;;  %s194_s0 = smov 64   ;;  %vm145_vm4 = vcmask 523520  }
   0xc   :  { %v119_v16 = vld [vmem:[#allocation0 + $0x2] ss:$8 sm:$0xf0]   ;;  %v98_v17 = vld [vmem:[#allocation0 + $0x3] ss:$8 sm:$0xf0]  }
   0xd   :  { %v117_v18 = vld [vmem:[#allocation0 + $0x2] ss:$8 sm:$0xf]   ;;  %v96_v19 = vld [vmem:[#allocation0 + $0x3] ss:$8 sm:$0xf]  }
   0xe   :  { %v121_v20 = vsel %vm82_vm0, %v119_v16, %v117_v18  ;;  %v100_v21 = vsel %vm82_vm0, %v98_v17, %v96_v19  ;;  %v138_v24 = vld [vmem:[#allocation0 + $0x1] ss:$8 sm:$0xf]   ;;  %v80_v32 = vld [vmem:[#allocation0] ss:$8 sm:$0xf]  }
   0xf   :  { %122 = vrot.lane.b32.xlu1 %v121_v20, %s194_s0  ;;  %101 = vrot.lane.b32.xlu0 %v100_v21, %s195_s9  ;;  %v140_v25 = vld [vmem:[#allocation0 + $0x1] ss:$8 sm:$0xf0]   ;;  %v81_v33 = vld [vmem:[#allocation0] ss:$8 sm:$0xf0]  }
  0x10   :  { %v129_v22 = vld [vmem:[#allocation0 + $0x42] ss:$8 sm:$0xf0]   ;;  %v108_v23 = vld [vmem:[#allocation0 + $0x43] ss:$8 sm:$0xf0]   ;;  %v83_v34 = vsel %vm82_vm0, %v81_v33, %v80_v32  ;;  %v142_v38 = vsel %vm82_vm0, %v140_v25, %v138_v24 }
  0x11   :  { %v150_v31 = vld [vmem:[#allocation0 + $0x41] ss:$8 sm:$0xf0]   ;;  %v89_v36 = vld [vmem:[#allocation0 + $0x40] ss:$8 sm:$0xf0]  }
  0x12   :  { %v127_v26 = vld [vmem:[#allocation0 + $0x42] ss:$8 sm:$0xf]   ;;  %v106_v27 = vld [vmem:[#allocation0 + $0x43] ss:$8 sm:$0xf]  }
  0x13   :  { %v131_v28 = vsel %vm82_vm0, %v129_v22, %v127_v26  ;;  %v110_v29 = vsel %vm82_vm0, %v108_v23, %v106_v27  ;;  %v148_v30 = vld [vmem:[#allocation0 + $0x41] ss:$8 sm:$0xf]   ;;  %v87_v35 = vld [vmem:[#allocation0 + $0x40] ss:$8 sm:$0xf]  }
  0x14   :  { %132 = vrot.lane.b32.xlu1 %v131_v28, %s194_s0  ;;  %111 = vrot.lane.b32.xlu0 %v110_v29, %s195_s9  ;;  %v152_v37 = vsel %vm82_vm0, %v150_v31, %v148_v30  ;;  %85 = vst.msk [vmem:[%s290_s1] sm:$0xff] %vm84_vm1, %v83_v34   ;;  %v91_v39 = vsel %vm82_vm0, %v89_v36, %v87_v35 }
  0x15   :  { %187 = vst.msk [vmem:[%s290_s1 + $0x8] sm:$0xff] %vm84_vm1, %v91_v39  }
  0x18   :  { %153 = vrot.lane.b32.xlu1 %v152_v37, %s196_s14  ;;  %143 = vrot.lane.b32.xlu0 %v142_v38, %s196_s14 }
  0x81   :  { %v123_v40 = vpop.permute.xlu1 %122   ;;  %v102_v41 = vpop.permute.xlu0 %101  }
  0x82   :  { %104 = vst.msk [vmem:[%s290_s1] sm:$0xff] %vm103_vm2, %v102_v41  }
  0x83   :  { %125 = vst.msk [vmem:[%s290_s1] sm:$0xff] %vm124_vm3, %v123_v40  }
  0x86   :  { %v133_v42 = vpop.permute.xlu1 %132   ;;  %v112_v43 = vpop.permute.xlu0 %111  }
  0x87   :  { %188 = vst.msk [vmem:[%s290_s1 + $0x8] sm:$0xff] %vm103_vm2, %v112_v43  }
  0x88   :  { %189 = vst.msk [vmem:[%s290_s1 + $0x8] sm:$0xff] %vm124_vm3, %v133_v42  }
  0x8a   :  { %v154_v44 = vpop.permute.xlu1 %153   ;;  %v144_v45 = vpop.permute.xlu0 %143  }
  0x8b   :  { %190 = vst.msk [vmem:[%s290_s1 + $0x8] sm:$0xff] %vm145_vm4, %v154_v44   ;;  %146 = vst.msk [vmem:[%s290_s1] sm:$0xff] %vm145_vm4, %v144_v45  }

// kernel: tmix_gold_forward.5
= control target key start
LH: loop header
LB: loop body
LE: loop exit
PB: predicated region body
PF: predicated region fallthrough
CT: control target
= control target key end

     0   :  { %9 = vsyncpa [#allocation3], 0  ;;  %s860_s0 = inlined_call_operand.vmem [shape: bf16[2,16,128], index: 0, kind: input, shape index: {}]   ;;  %s861_s1 = inlined_call_operand.vmem [shape: f32[1,128], index: 1, kind: input, shape index: {}]   ;;  %s862_s2 = inlined_call_operand.vmem [shape: f32[1,128], index: 2, kind: input, shape index: {}]   ;;  %s863_s3 = inlined_call_operand.vmem [shape: bf16[128,128], index: 3, kind: input, shape index: {}]   ;;  %s864_s4 = inlined_call_operand.hbm [shape: f32[2,16,128], index: 4, kind: output, shape index: {}]  }
   0x1   :  { %11 = vsyncpa [#allocation3 + $0x1], 0  ;;  %s715_s15 = smov 0   ;;  %s717_s16 = smov 0  }
   0x2   :  { %s719_s17 = smov 0   ;;  %s721_s18 = smov 0  }
   0x3   :  { %s723_s19 = smov 0   ;;  %s725_s20 = smov 0  }
   0x4 LB: > { %s476_s21 = sadd.s32 4294967295, %s683_s20   ;;  %s477_s22 = sadd.s32 4294967294, %s683_s20   ;;  %s683_s20 = sphi %s725_s20, %s17_s20   ;;  %s679_s19 = sphi %s723_s19, %s871_s19   ;;  %s675_s18 = sphi %s721_s18, %s870_s18   ;;  %s671_s17 = sphi %s719_s17, %s869_s17   ;;  %s667_s16 = sphi %s717_s16, %s868_s16   ;;  %s663_s15 = sphi %s715_s15, %s867_s15  }
   0x5   : > { %s29_s23 = sadd.s32 1, %s679_s19  ;;  %s129_s24 = sadd.s32 1, %s671_s17 }
   0x6   : > { %p31_p0 = scmp.ge.s32.totalorder %s29_s23, 2  ;;  %p139_p1 = scmp.ne.s32.totalorder %s671_s17, %s667_s16 }
   0x7   : > { %p140_p2 = scmp.eq.s32.totalorder %s476_s21, 1  ;;  %p145_p3 = scmp.ne.s32.totalorder %s667_s16, %s663_s15 }
   0x8   : > { %s873_s23 = smov (%p31_p0, %s29_s23), 0  ;;  %p146_p5 = scmp.eq.s32.totalorder %s477_s22, 1 }
   0x9   : > { %p755_p4 = por %p140_p2, %p139_p1  ;;  %s124_s26 = ssub.s32 %s679_s19, %s873_s23 }
   0xa   : > { %p480_p6 = scmp.ge.s32.totalorder %s683_s20, 1  ;;  %p127_p7 = scmp.eq.s32.totalorder %s124_s26, 0 }
   0xb   : > { %p762_p8 = por %p146_p5, %p145_p3  ;;  %p186_p9 = scmp.lt.s32.totalorder %s683_s20, 3 }
   0xc   : > { %s768_s28 = scalar_select %p127_p7, %s671_s17, %s129_s24  }
   0xd   : > { %p187_p10 = pnand %p480_p6, %p186_p9 }
   0xe   : > { %p217_p11 = scmp.lt.s32.totalorder (!%p187_p10), %s675_s18, 1  ;;  %v593_v3 = vld [vmem:[%s863_s3] sm:$0xff] (!%p187_p10)   ;;  %v685_v4 = vmov (!%p187_p10), 0.0   ;;  %v594_v13 = vld [vmem:[%s863_s3 + $0x8] sm:$0xff] (!%p187_p10)   ;;  %v595_v14 = vld [vmem:[%s863_s3 + $0x10] sm:$0xff] (!%p187_p10)   ;;  %vm686_vm0 = vmmov (!%p187_p10), 0  }
   0xf   : > { %190 = sbr.rel (%p187_p10) target bundleno = 575 (0x23f), region = 36  ;;  %514 = vmatprep.subr.bf16.mxu0 (!%p187_p10), %v685_v4  ;;  %v596_v15 = vld [vmem:[%s863_s3 + $0x18] sm:$0xff] (!%p187_p10)   ;;  %v597_v16 = vld [vmem:[%s863_s3 + $0x20] sm:$0xff] (!%p187_p10)   ;;  %530 = vmatprep.mubr.msk.bf16.mxu0 (!%p187_p10), %vm686_vm0, %v685_v4  ;;  %v598_v17 = vld [vmem:[%s863_s3 + $0x28] sm:$0xff] (!%p187_p10)   ;;  %s213_s12 = sand.u32 (!%p187_p10), 1, %s667_s16  }
  0x10   : > { %515 = vmatpush3.bf16.msra.mxu0 (!%p187_p10), %v593_v3  ;;  %v599_v18 = vld [vmem:[%s863_s3 + $0x30] sm:$0xff] (!%p187_p10)   ;;  %v600_v19 = vld [vmem:[%s863_s3 + $0x38] sm:$0xff] (!%p187_p10)   ;;  %v484_v28 = vld [vmem:[%s861_s1] ss:$0 sm:$0xff] (!%p187_p10)  ;;  %s481_s13 = sshll.u32 (!%p187_p10), %s213_s12, 4  ;;  %s500_s22 = sshll.u32 (!%p187_p10), %s675_s18, 8 }
  0x11   : > { %516 = vmatprep.subr.bf16.mxu0 (!%p187_p10), %v685_v4  ;;  %v485_v32 = vld [vmem:[%s862_s2] ss:$0 sm:$0xff] (!%p187_p10)  ;;  %s215_s14 = scalar_lea.vmem (!%p187_p10), [#allocation2], %s481_s13 }
  0x12   : > { %s397_s21 = sshll.u32 (!%p187_p10), %s215_s14, 4  ;;  %s807_s21 = int_to_ptr.vmem [resolvable:$true] %s397_s21 }
  0x13   : > { %s605_s5 = scalar_lea.vmem (!%p187_p10), %s807_s21, 256 }
  0x14   : > { %517 = vmatpush3.bf16.msra.mxu0 (!%p187_p10), %v594_v13  ;;  %p606_p12 = scmp.ne.s32.totalorder (!%p187_p10), %s807_s21, %s605_s5 }
  0x15   : > { %518 = vmatprep.subr.bf16.mxu0 (!%p187_p10), %v685_v4 }
  0x16   : > { %s218_s29 = scalar_select %p217_p11, %s675_s18, 1 }
  0x17   : > { %p607_p13 = pnand %p606_p12, %p755_p4  ;;  %s687_s18 = smov [#allocation2]  }
  0x18   : > { %s499_s30 = sshll.u32 %s218_s29, 3  ;;  %519 = vmatpush3.bf16.msra.mxu0 %v595_v14  ;;  %s812_s29 = scalar_lea.hbm %s864_s4, %s500_s22 }
  0x19   : > { %s224_s7 = scalar_lea.vmem %s860_s0, %s499_s30  ;;  %520 = vmatprep.subr.bf16.mxu0 %v685_v4  ;;  %s814_s30 = scalar_lea.sflag [#allocation3], %s213_s12 }
  0x1a   : > { %v502_v0 = vld [vmem:[%s224_s7] sm:$0xff]   ;;  %p608_p0 = pneg %p607_p13  ;;  %s609_s6 = sshll.u32 %s687_s18, 4  ;;  %s610_s6 = int_to_ptr.vmem [resolvable:$false] %s609_s6 }
  0x1b   : > { %v503_v1 = vunpack.c.l.bf16 %v502_v0  ;;  %v504_v2 = vunpack.c.h.bf16 %v502_v0  ;;  %s611_s7 = scalar_lea.vmem %s610_s6, 512  ;;  %p612_p1 = scmp.lt.s32.totalorder %s807_s21, %s610_s6 }
  0x1c   : > { %521 = vmatpush3.bf16.msra.mxu0 %v596_v15  ;;  %p613_p2 = scmp.lt.s32.totalorder %s611_s7, %s605_s5 }
  0x1d   : > { %234 = vadd.xlane.f32.xlu0 %v503_v1  ;;  %522 = vmatprep.subr.bf16.mxu0 %v685_v4 }
  0x1e   : > { %p614_p3 = por %p613_p2, %p612_p1 }
  0x20   : > { %523 = vmatpush3.bf16.msra.mxu0 %v597_v16  ;;  %p615_p5 = pnand %p614_p3, %p608_p0 }
  0x21   : > { %236 = vadd.xlane.f32.xlu0 %v504_v2  ;;  %524 = vmatprep.subr.bf16.mxu0 %v685_v4 }
  0x24   : > { %525 = vmatpush3.bf16.msra.mxu0 %v598_v17 }
  0x25   : > { %526 = vmatprep.subr.bf16.mxu0 %v685_v4 }
  0x28   : > { %527 = vmatpush3.bf16.msra.mxu0 %v599_v18 }
  0x29   : > { %528 = vmatprep.subr.bf16.mxu0 %v685_v4 }
  0x2c   : > { %529 = vmatpush3.bf16.msra.mxu0 %v600_v19 }
  0xaa   : > { %v235_v5 = vpop.xlane.xlu0 %234 }
  0xab   : > { %v239_v6 = vmul.f32 0.0078125, %v235_v5 }
  0xad   : > { %v241_v7 = vsub.f32 %v503_v1, %v239_v6 }
  0xae   : > { %v237_v8 = vpop.xlane.xlu0 %236 }
  0xaf   : > { %v240_v9 = vmul.f32 0.0078125, %v237_v8  ;;  %v243_v10 = vmul.f32 %v241_v7, %v241_v7 }
  0xb1   : > { %v242_v11 = vsub.f32 %v504_v2, %v240_v9  ;;  %245 = vadd.xlane.f32.xlu1 %v243_v10 }
  0xb3   : > { %v244_v12 = vmul.f32 %v242_v11, %v242_v11 }
  0xb5   : > { %247 = vadd.xlane.f32.xlu1 %v244_v12 }
 0x13e   : > { %v246_v20 = vpop.xlane.xlu1 %245 }
 0x13f   : > { %v249_v21 = vmul.f32 0.0078125, %v246_v20 }
 0x141   : > { %v251_v22 = vadd.f32 1e-05, %v249_v21 }
 0x142   : > { %v248_v23 = vpop.xlane.xlu1 %247 }
 0x143   : > { %601 = vrsqrt.f32 %v251_v22  ;;  %v250_v24 = vmul.f32 0.0078125, %v248_v23 }
 0x145   : > { %v252_v25 = vadd.f32 1e-05, %v250_v24 }
 0x147   : > { %603 = vrsqrt.f32 %v252_v25 }
 0x14d   : > { %v602_v26 = vpop.eup %601 }
 0x14e   : > { %v255_v27 = vmul.f32 %v602_v26, %v241_v7 }
 0x150   : > { %v263_v31 = vmul.f32 %v484_v28, %v255_v27 }
 0x151   : > { %v604_v29 = vpop.eup %603 }
 0x152   : > { %v256_v30 = vmul.f32 %v604_v29, %v242_v11  ;;  %v271_v34 = vadd.f32 %v485_v32, %v263_v31 }
 0x154   : > { %v264_v33 = vmul.f32 %v484_v28, %v256_v30 }
 0x156   : > { %v272_v35 = vadd.f32 %v485_v32, %v264_v33 }
 0x158   : > { %v273_v36 = vpack.c.bf16 %v272_v35, %v271_v34 }
 0x15a   : > { %531 = vmatmul.mubr.bf16.vlgmr.msra.gmra.mrb[0].mxu0 %v273_v36 }
 0x22d   : > { %v372_v37 = vpop.f32.mrb[0].mxu0 }
 0x22e   : > { %379 = vst [vmem:[%s215_s14] sm:$0xff] %v372_v37  ;;  %v532_v38 = vpop.f32.mrb[1].mxu0 }
 0x22f   : > { %v375_v39 = vpop.f32.mrb[2].mxu0 }
 0x230   : > { %380 = vst [vmem:[%s215_s14 + $0x8] sm:$0xff] %v375_v39  ;;  %v533_v40 = vpop.f32.mrb[3].mxu0 }
 0x231   : > { %618 = shalt.err (!%p615_p5)
}
 0x232   : > { %s619_s8 = scalar_lea.hbm %s812_s29, 256  ;;  %s623_s11 = scalar_lea.hbm %s864_s4, 512 }
 0x233   : > { %p620_p6 = scmp.ne.s32.totalorder %s812_s29, %s619_s8  ;;  %p624_p10 = scmp.lt.u32.totalorder %s812_s29, %s864_s4 }
 0x234   : > { %p625_p11 = scmp.lt.u32.totalorder %s623_s11, %s619_s8  ;;  %p627_p13 = scmp.lt.u32.totalorder %s619_s8, %s812_s29 }
 0x235   : > { %p621_p7 = pnand %p620_p6, %p755_p4 }
 0x236   : > { %p626_p12 = por %p625_p11, %p624_p10 }
 0x237   : > { %p622_p9 = pneg %p621_p7 }
 0x238   : > { %p628_p0 = por %p627_p13, %p626_p12 }
 0x23a   : > { %p629_p1 = pnand %p628_p0, %p622_p9 }
 0x23c   : > { %632 = shalt.err (!%p629_p1)
}
 0x23d   : > { %s688_s14 = smov 128   ;;  %s689_s22 = smov 8  }
 0x23e   : > { %534 = dma.vmem_to_hbm [thread:$0]  (%p755_p4), %s807_s21, 256, %s812_s29, %s814_s30, %s688_s14, %s688_s14, %s689_s22  }
 0x23f PF: > { %p540_p2 = scmp.ge.s32.totalorder %s683_s20, 2  ;;  %s412_s24 = sand.u32 1, %s663_s15  }
 0x240   : > { %s413_s26 = scalar_lea.sflag [#allocation3], %s412_s24 }
 0x241   : > { %p537_p3 = pnand %p540_p2, %p762_p8 }
 0x243   : > { %658 = dma.done.wait (!%p537_p3), %s413_s26, 256  }
 0x244   : > { %660 = vsyncadd (!%p537_p3), %s413_s26, 4294967040  ;;  %s17_s20 = sadd.s32 1, %s683_s20   ;;  %s867_s15 = smov %s667_s16 }
 0x245   : > { %p14_p5 = scmp.ge.s32.totalorder %s17_s20, 4   ;;  %s868_s16 = smov %s671_s17 }
 0x246   : > { %s869_s17 = smov %s768_s28  ;;  %s870_s18 = smov %s679_s19 }
 0x247   : > { %s871_s19 = smov %s873_s23  ;;  %16 = sbr.rel (!%p14_p5) target bundleno = 4 (0x4), region = 71 }
 0x24e   :  { %418 = vsyncpa [#allocation3], 1 }
 0x24f   :  { %420 = vsyncpa [#allocation3 + $0x1], 1 }

// kernel: tmix_gold_forward.3
= control target key start
LH: loop header
LB: loop body
LE: loop exit
PB: predicated region body
PF: predicated region fallthrough
CT: control target
= control target key end

     0   :  { %s2946_s25 = smov 0   ;;  %s2948_s26 = smov 0   ;;  %s3424_s0 = inlined_call_operand.vmem [shape: f32[2,16,128], index: 0, kind: input, shape index: {}]   ;;  %s3425_s1 = inlined_call_operand.vmem [shape: f32[2,16,128], index: 1, kind: input, shape index: {}]   ;;  %s3426_s2 = inlined_call_operand.vmem [shape: f32[2,16,128], index: 2, kind: input, shape index: {}]   ;;  %s3427_s3 = inlined_call_operand.vmem [shape: f32[2,1,128], index: 3, kind: input, shape index: {}]   ;;  %s3428_s4 = inlined_call_operand.vmem [shape: f32[16,128], index: 4, kind: input, shape index: {}]   ;;  %s3429_s5 = inlined_call_operand.vmem [shape: f32[16,128], index: 5, kind: input, shape index: {}]   ;;  %s3430_s6 = inlined_call_operand.vmem [shape: f32[16,128], index: 6, kind: input, shape index: {}]   ;;  %s3431_s7 = inlined_call_operand.vmem [shape: f32[5,128], index: 7, kind: input, shape index: {}]   ;;  %s3432_s8 = inlined_call_operand.vmem [shape: bf16[128,32], index: 8, kind: input, shape index: {}]   ;;  %s3433_s9 = inlined_call_operand.vmem [shape: bf16[32,128], index: 9, kind: input, shape index: {}]   ;;  %s3434_s10 = inlined_call_operand.vmem [shape: bf16[128,64], index: 10, kind: input, shape index: {}]   ;;  %s3435_s11 = inlined_call_operand.vmem [shape: bf16[2,32,128], index: 11, kind: input, shape index: {}]   ;;  %s3436_s12 = inlined_call_operand.vmem [shape: bf16[128,64], index: 12, kind: input, shape index: {}]   ;;  %s3437_s13 = inlined_call_operand.vmem [shape: bf16[64,128], index: 13, kind: input, shape index: {}]   ;;  %s3438_s14 = inlined_call_operand.vmem [shape: bf16[128,64], index: 14, kind: input, shape index: {}]   ;;  %s3439_s15 = inlined_call_operand.vmem [shape: bf16[64,128], index: 15, kind: input, shape index: {}]   ;;  %s3440_s16 = inlined_call_operand.vmem [shape: bf16[128,128], index: 16, kind: input, shape index: {}]   ;;  %s3441_s17 = inlined_call_operand.vmem [shape: f32[3,128], index: 17, kind: input, shape index: {}]   ;;  %s3442_s18 = inlined_call_operand.vmem [shape: f32[3,128], index: 18, kind: input, shape index: {}]   ;;  %s3443_s19 = inlined_call_operand.vmem [shape: bf16[2,16,128], index: 19, kind: output, shape index: {0}]   ;;  %s3444_s20 = inlined_call_operand.vmem [shape: bf16[2,16,128], index: 20, kind: output, shape index: {1}]   ;;  %s3445_s21 = inlined_call_operand.vmem [shape: bf16[2,16,128], index: 21, kind: output, shape index: {2}]  }
   0x1   :  { %3448 = sst [smem:[#allocation4_spill]] %s3424_s0 }
   0x2   :  { %3449 = sst [smem:[#allocation5_spill]] %s3425_s1 }
   0x3   :  { %3450 = sst [smem:[#allocation6_spill]] %s3426_s2  ;;  %s2944_s2 = smov 0  }
   0x4   :  { %3451 = sst [smem:[#allocation7_spill]] %s3427_s3 }
   0x5   :  { %3452 = sst [smem:[#allocation8_spill]] %s3428_s4 }
   0x6   :  { %3453 = sst [smem:[#allocation9_spill]] %s3429_s5 }
   0x7 LB: > { %s44_s27 = sadd.s32 1, %s2823_s25  ;;  %p2367_p0 = scmp.ge.s32.totalorder %s2827_s26, 1  ;;  %s2827_s26 = sphi %s2948_s26, %s32_s26   ;;  %s2823_s25 = sphi %s2946_s25, %s3463_s25   ;;  %s2819_s2 = sphi %s2944_s2, %s3462_s2  }
   0x8   : > { %p46_p1 = scmp.ge.s32.totalorder %s44_s27, 2  ;;  %p692_p2 = scmp.lt.s32.totalorder %s2827_s26, 3 }
   0xa   : > { %s3465_s27 = smov (%p46_p1, %s44_s27), 0  ;;  %p693_p3 = pnand %p2367_p0, %p692_p2 }
   0xb   : > { %3454 = sst [smem:[#allocation3_spill]] %s3465_s27  ;;  %p815_p4 = scmp.lt.s32.totalorder (!%p693_p3), %s2819_s2, 1  ;;  %v2829_v0 = vmov (!%p693_p3), 0.0   ;;  %v2719_v1 = vld [vmem:[%s3432_s8] sm:$0xff] (!%p693_p3)   ;;  %v2720_v2 = vld [vmem:[%s3432_s8 + $0x8] sm:$0xff] (!%p693_p3)   ;;  %v2721_v7 = vld [vmem:[%s3432_s8 + $0x10] sm:$0xff] (!%p693_p3)   ;;  %v925_v16 = vlaneseq (!%p693_p3) }
   0xc   : > { %696 = sbr.rel (%p693_p3) target bundleno = 1832 (0x728), region = 96  ;;  %908 = vst [vmem:[#allocation2 + $0x1] sm:$0x3] (!%p693_p3), %v2829_v0  ;;  %2542 = vmatprep.subr.bf16.mxu0 (!%p693_p3), %v2829_v0  ;;  %2570 = vmatprep.subr.bf16.mxu1 (!%p693_p3), %v2829_v0  ;;  %s3455_s22 = sld [smem:[#allocation7_spill]] (!%p693_p3)  ;;  %v2722_v13 = vld [vmem:[%s3432_s8 + $0x18] sm:$0xff] (!%p693_p3)   ;;  %v2723_v14 = vld [vmem:[%s3434_s10] sm:$0xff] (!%p693_p3)  }
   0xd   : > { %2543 = vmatpush3.bf16.msra.mxu0 (!%p693_p3), %v2719_v1  ;;  %s3456_s3 = sld [smem:[#allocation5_spill]] (!%p693_p3)  ;;  %s3458_s24 = sld [smem:[#allocation4_spill]] (!%p693_p3)  ;;  %2571 = vmatpush3.bf16.msra.mxu1 (!%p693_p3), %v2723_v14  ;;  %v2724_v15 = vld [vmem:[%s3432_s8 + $0x20] sm:$0xff] (!%p693_p3)   ;;  %v2725_v18 = vld [vmem:[%s3434_s10 + $0x8] sm:$0xff] (!%p693_p3)   ;;  %v3030_v20 = vshrl.u32 (!%p693_p3), %v925_v16, 7  ;;  %v2727_v23 = vld [vmem:[%s3434_s10 + $0x10] sm:$0xff] (!%p693_p3)  }
   0xe   : > { %2544 = vmatprep.subr.bf16.mxu0 (!%p693_p3), %v2829_v0  ;;  %2572 = vmatprep.subr.bf16.mxu1 (!%p693_p3), %v2829_v0  ;;  %v2726_v21 = vld [vmem:[%s3432_s8 + $0x28] sm:$0xff] (!%p693_p3)   ;;  %v2728_v26 = vld [vmem:[%s3432_s8 + $0x30] sm:$0xff] (!%p693_p3)   ;;  %v3061_v29 = vld [vmem:[%s3431_s7] sm:$0x1f] (!%p693_p3)  ;;  %vm2830_vm2 = vmmov (!%p693_p3), 0   ;;  %vm1110_vm3 = vcmask (!%p693_p3), 261120  }
   0xf   : > { %v3038_v22 = vsub.s32 (!%p693_p3), 0, %v3030_v20  ;;  %vm932_vm0 = vcmp.lt.s32.totalorder (!%p693_p3), %v3030_v20, 1  ;;  %vm928_vm1 = vcmp.eq.s32.totalorder (!%p693_p3), %v3030_v20, 0  ;;  %v2729_v30 = vld [vmem:[%s3434_s10 + $0x18] sm:$0xff] (!%p693_p3)   ;;  %v2731_v37 = vld [vmem:[%s3434_s10 + $0x20] sm:$0xff] (!%p693_p3)   ;;  %2558 = vmatprep.mubr.msk.bf16.mxu0 (!%p693_p3), %vm2830_vm2, %v2829_v0  ;;  %v2732_v41 = vld [vmem:[%s3434_s10 + $0x28] sm:$0xff] (!%p693_p3)   ;;  %2586 = vmatprep.mubr.msk.bf16.mxu1 (!%p693_p3), %vm2830_vm2, %v2829_v0 }
  0x10   : > { %v2730_v36 = vld [vmem:[%s3432_s8 + $0x38] sm:$0xff] (!%p693_p3)   ;;  %v2733_v42 = vld [vmem:[%s3434_s10 + $0x30] sm:$0xff] (!%p693_p3)   ;;  %v2735_v44 = vld [vmem:[%s3433_s9] sm:$0xff] (!%p693_p3)   ;;  %v3115_v53 = vsub.s32 (!%p693_p3), 1, %v3030_v20  ;;  %v3121_v56 = vsub.s32 (!%p693_p3), 2, %v3030_v20  ;;  %s2831_s29 = smov (!%p693_p3), 96  }
  0x11   : > { %2545 = vmatpush3.bf16.msra.mxu0 (!%p693_p3), %v2720_v2  ;;  %2573 = vmatpush3.bf16.msra.mxu1 (!%p693_p3), %v2725_v18  ;;  %v980_v33 = vrot.slane (!%p693_p3), %v3061_v29, %v3038_v22  ;;  %v2734_v43 = vld [vmem:[%s3434_s10 + $0x38] sm:$0xff] (!%p693_p3)   ;;  %v2736_v45 = vld [vmem:[%s3433_s9 + $0x8] sm:$0xff] (!%p693_p3)   ;;  %vm1567_vm4 = vcmask (!%p693_p3), 523264   ;;  %s2832_s5 = smov (!%p693_p3), 112  }
  0x12   : > { %2546 = vmatprep.subr.bf16.mxu0 (!%p693_p3), %v2829_v0  ;;  %2574 = vmatprep.subr.bf16.mxu1 (!%p693_p3), %v2829_v0  ;;  %v1158_v61 = vrot.slane (!%p693_p3), %v3061_v29, %v3121_v56 }
  0x13   : > { %s3467_s2 = smov (!%p815_p4, %s2819_s2), 1 }
  0x14   : > { %s2451_s4 = sshll.u32 %s3467_s2, 4  ;;  %s846_s23 = scalar_lea.vmem %s3455_s22, %s3467_s2 }
  0x15   : > { %s832_s28 = scalar_lea.vmem %s3456_s3, %s2451_s4  ;;  %v906_v3 = vld [vmem:[%s846_s23] sm:$0x1]  ;;  %s3457_s22 = sld [smem:[#allocation6_spill]]  ;;  %2547 = vmatpush3.bf16.msra.mxu0 %v2721_v7  ;;  %2575 = vmatpush3.bf16.msra.mxu1 %v2727_v23  ;;  %v2738_v23 = vld [vmem:[%s3435_s11 + $0x8] sm:$0xff]  }
  0x16   : > { %v2982_v4 = vld [vmem:[%s832_s28] sm:$0xff]  ;;  %907 = vst [vmem:[#allocation2] sm:$0x1] %v906_v3  ;;  %v2984_v5 = vld [vmem:[%s832_s28 + $0x8] sm:$0xff]  ;;  %s822_s3 = scalar_lea.vmem %s3458_s24, %s2451_s4  ;;  %2548 = vmatprep.subr.bf16.mxu0 %v2829_v0  ;;  %2576 = vmatprep.subr.bf16.mxu1 %v2829_v0  ;;  %s3380_s1 = sshll.u32 %s3467_s2, 3 }
  0x17   : > { %v910_v6 = vmul.f32 %v2982_v4, %v2982_v4  ;;  %v911_v8 = vmul.f32 %v2984_v5, %v2984_v5  ;;  %v3005_v10 = vld [vmem:[%s822_s3 + $0x8] sm:$0xff]  ;;  %v3012_v12 = vld [vmem:[%s822_s3] sm:$0xff]  ;;  %s893_s3 = scalar_lea.vmem %s3445_s21, %s3380_s1  ;;  %s3459_s28 = sld [smem:[#allocation9_spill]] }
  0x18   : > { %v930_v17 = vrot.slane %v3012_v12, 7  ;;  %v931_v19 = vrot.slane %v3005_v10, 7  ;;  %s873_s0 = scalar_lea.vmem %s3443_s19, %s3380_s1  ;;  %s883_s24 = scalar_lea.vmem %s3444_s20, %s3380_s1 }
  0x19   : > { %912 = vadd.xlane.f32.xlu0 %v910_v6  ;;  %2549 = vmatpush3.bf16.msra.mxu0 %v2722_v13 }
  0x1a   : > { %2550 = vmatprep.subr.bf16.mxu0 %v2829_v0  ;;  %v934_v25 = vsel %vm932_vm0, %v931_v19, %v930_v17  ;;  %v933_v27 = vsel %vm932_vm0, %v930_v17, %v931_v19  ;;  %2577 = vmatpush3.bf16.msra.mxu1 %v2729_v30  ;;  %v2742_v30 = vld [vmem:[%s3436_s12 + $0x8] sm:$0xff]  }
  0x1b   : > { %s2994_s27 = scalar_lea.vmem %s3457_s22, %s2451_s4  ;;  %v3070_v32 = vsub.f32 %v933_v27, %v3005_v10  ;;  %2578 = vmatprep.subr.bf16.mxu1 %v2829_v0  ;;  %s2833_s22 = smov 16  }
  0x1c   : > { %v3003_v9 = vld [vmem:[%s2994_s27 + $0x8] sm:$0xff] }
  0x1d   : > { %v3008_v11 = vld [vmem:[#allocation2] sm:$0x7]  ;;  %914 = vadd.xlane.f32.xlu0 %v911_v8  ;;  %2551 = vmatpush3.bf16.msra.mxu0 %v2724_v15  ;;  %v982_v35 = vmul.f32 %v980_v33, %v3070_v32 }
  0x1e   : > { %973 = vst [vmem:[#allocation2 - $0x5] sm:$0x80] %v3003_v9  ;;  %971 = vst [vmem:[#allocation2 - $0x7] sm:$0x80] %v3005_v10  ;;  %2552 = vmatprep.subr.bf16.mxu0 %v2829_v0  ;;  %v942_v24 = vrot.slane %v3008_v11, %v3038_v22  ;;  %2579 = vmatpush3.bf16.msra.mxu1 %v2731_v37  ;;  %v954_v58 = vrot.slane %v3008_v11, %v3115_v53 }
  0x1f   : > { %v984_v39 = vadd.f32 %v982_v35, %v3005_v10  ;;  %2580 = vmatprep.subr.bf16.mxu1 %v2829_v0 }
  0x20   : > { %v943_v28 = vsel %vm928_vm1, %v942_v24, %v934_v25 }
  0x21   : > { %2553 = vmatpush3.bf16.msra.mxu0 %v2726_v21  ;;  %v3067_v31 = vsub.f32 %v943_v28, %v3012_v12  ;;  %v2737_v21 = vld [vmem:[%s3435_s11] sm:$0xff]  }
  0x22   : > { %2554 = vmatprep.subr.bf16.mxu0 %v2829_v0  ;;  %2581 = vmatpush3.bf16.msra.mxu1 %v2732_v41  ;;  %v2741_v28 = vld [vmem:[%s3436_s12] sm:$0xff]   ;;  %v1399_v41 = vrot.slane %v3061_v29, %v3115_v53 }
  0x23   : > { %v981_v34 = vmul.f32 %v980_v33, %v3067_v31  ;;  %2582 = vmatprep.subr.bf16.mxu1 %v2829_v0  ;;  %v2743_v33 = vld [vmem:[%s3436_s12 + $0x10] sm:$0xff]  }
  0x25   : > { %2555 = vmatpush3.bf16.msra.mxu0 %v2728_v26  ;;  %v983_v38 = vadd.f32 %v981_v34, %v3012_v12 }
  0x26   : > { %2556 = vmatprep.subr.bf16.mxu0 %v2829_v0  ;;  %2583 = vmatpush3.bf16.msra.mxu1 %v2733_v42 }
  0x27   : > { %v1001_v40 = vpack.c.bf16 %v984_v39, %v983_v38  ;;  %2584 = vmatprep.subr.bf16.mxu1 %v2829_v0  ;;  %v2744_v38 = vld [vmem:[%s3436_s12 + $0x18] sm:$0xff]  }
  0x28   : > { %v2740_v39 = vld [vmem:[%s3435_s11 + $0x18] sm:$0xff]  }
  0x29   : > { %2557 = vmatpush3.bf16.msra.mxu0 %v2730_v36  ;;  %v2739_v36 = vld [vmem:[%s3435_s11 + $0x10] sm:$0xff]  }
  0x2a   : > { %2562 = vmatprep.subr.bf16.mxu0 %v2829_v0  ;;  %2585 = vmatpush3.bf16.msra.mxu1 %v2734_v43 }
  0x2b   : > { %2606 = vmatprep.subr.bf16.mxu1 %v2829_v0 }
  0x2c   : > { %2559 = vmatmul.mubr.bf16.vlgmr.msra.gmra.mrb[0].mxu0 %v1001_v40  ;;  %v2745_v40 = vld [vmem:[%s3436_s12 + $0x20] sm:$0xff]  }
  0x2d   : > { %2566 = vmatprep.mubr.msk.bf16.mxu0 %vm2830_vm2, %v2829_v0  ;;  %2563 = vmatpush3.bf16.msra.mxu0 %v2735_v44 }
  0x2e   : > { %2564 = vmatprep.subr.bf16.mxu0 %v2829_v0 }
  0x31   : > { %2565 = vmatpush3.bf16.msra.mxu0 %v2736_v45 }
  0x32   : > { %2590 = vmatprep.subr.bf16.mxu0 %v2829_v0 }
  0xa6   : > { %v913_v46 = vpop.xlane.xlu0 %912 }
  0xa7   : > { %v917_v47 = vmul.f32 0.0078125, %v913_v46 }
  0xa9   : > { %v919_v48 = vadd.f32 1e-08, %v917_v47 }
  0xaa   : > { %v915_v49 = vpop.xlane.xlu0 %914 }
  0xab   : > { %2773 = vrsqrt.f32 %v919_v48  ;;  %v918_v50 = vmul.f32 0.0078125, %v915_v49 }
  0xad   : > { %v920_v51 = vadd.f32 1e-08, %v918_v50 }
  0xaf   : > { %2775 = vrsqrt.f32 %v920_v51 }
  0xb5   : > { %v2774_v52 = vpop.eup %2773 }
  0xb6   : > { %v3118_v54 = vmul.f32 %v2774_v52, %v2982_v4 }
  0xb8   : > { %v947_v59 = vrot.slane %v3118_v54, 7 }
  0xb9   : > { %v2776_v55 = vpop.eup %2775 }
  0xba   : > { %v3124_v57 = vmul.f32 %v2776_v55, %v2984_v5  ;;  %v2746_v55 = vld [vmem:[%s3436_s12 + $0x28] sm:$0xff]  }
  0xbc   : > { %972 = vst [vmem:[#allocation2 - $0x6] sm:$0x80] %v3124_v57  ;;  %v948_v60 = vrot.slane %v3124_v57, 7 }
  0xbe   : > { %v949_v62 = vsel %vm932_vm0, %v947_v59, %v948_v60  ;;  %v950_v63 = vsel %vm932_vm0, %v948_v60, %v947_v59  ;;  %v966_v60 = vrot.slane %v3008_v11, %v3121_v56 }
  0xbf   : > { %v955_v1 = vsel %vm928_vm1, %v954_v58, %v950_v63  ;;  %v3140_v2 = vsub.f32 %v949_v62, %v3124_v57  ;;  %v960_v58 = vrot.slane %v3003_v9, 7  ;;  %v1408_v62 = vsub.s32 3, %v3030_v20 }
  0xc0   : > { %v3143_v3 = vsub.f32 %v955_v1, %v3118_v54 }
  0xc1   : > { %v1160_v4 = vmul.f32 %v1158_v61, %v3140_v2  ;;  %v1409_v1 = vrot.slane %v3061_v29, %v1408_v62 }
  0xc2   : > { %v1159_v5 = vmul.f32 %v1158_v61, %v3143_v3 }
  0xc3   : > { %v1162_v6 = vadd.f32 %v1160_v4, %v3124_v57 }
  0xc4   : > { %v1161_v7 = vadd.f32 %v1159_v5, %v3118_v54 }
  0xc6   : > { %v1179_v8 = vpack.c.bf16 %v1162_v6, %v1161_v7 }
  0xc8   : > { %2587 = vmatmul.mubr.bf16.vlgmr.msra.gmra.mrb[0].mxu1 %v1179_v8 }
  0xc9   : > { %2622 = vmatprep.mubr.msk.bf16.mxu1 %vm2830_vm2, %v2829_v0  ;;  %2607 = vmatpush3.bf16.msra.mxu1 %v2741_v28 }
  0xca   : > { %2608 = vmatprep.subr.bf16.mxu1 %v2829_v0 }
  0xcd   : > { %2609 = vmatpush3.bf16.msra.mxu1 %v2742_v30 }
  0xce   : > { %2610 = vmatprep.subr.bf16.mxu1 %v2829_v0 }
  0xd1   : > { %2611 = vmatpush3.bf16.msra.mxu1 %v2743_v33 }
  0xd2   : > { %2612 = vmatprep.subr.bf16.mxu1 %v2829_v0 }
  0xd5   : > { %2613 = vmatpush3.bf16.msra.mxu1 %v2744_v38 }
  0xd6   : > { %2614 = vmatprep.subr.bf16.mxu1 %v2829_v0 }
  0xd9   : > { %2615 = vmatpush3.bf16.msra.mxu1 %v2745_v40 }
  0xda   : > { %2616 = vmatprep.subr.bf16.mxu1 %v2829_v0 }
  0xdd   : > { %2617 = vmatpush3.bf16.msra.mxu1 %v2746_v55 }
  0xde   : > { %2618 = vmatprep.subr.bf16.mxu1 %v2829_v0 }
  0xff   : > { %v1084_v13 = vpop.f32.mrb[0].mxu0 }
 0x100   : > { %2777 = vtanh.f32 %v1084_v13  ;;  %v2560_v14 = vpop.f32.mrb[1].mxu0 }
 0x101   : > { %v1087_v15 = vpop.f32.mrb[2].mxu0 }
 0x102   : > { %2779 = vtanh.f32 %v1087_v15  ;;  %v2561_v16 = vpop.f32.mrb[3].mxu0 }
 0x10a   : > { %v2778_v17 = vpop.eup %2777 }
 0x10c   : > { %v2780_v18 = vpop.eup %2779 }
 0x10d   : > { %v1097_v19 = vpack.c.bf16 %v2780_v18, %v2778_v17 }
 0x10f   : > { %2567 = vmatmul.mubr.msk.bf16.vlgmr.msra.gmra.mrb[4].mxu0 %vm1110_vm3, %v1097_v19 }
 0x110   : > { %2594 = vmatprep.mubr.msk.bf16.mxu0 %vm2830_vm2, %v2829_v0  ;;  %2591 = vmatpush3.bf16.msra.mxu0 %v2737_v21 }
 0x111   : > { %2592 = vmatprep.subr.bf16.mxu0 %v2829_v0 }
 0x114   : > { %2593 = vmatpush3.bf16.msra.mxu0 %v2738_v23  ;;  %v2749_v23 = vld [vmem:[%s3437_s13] sm:$0xff]  }
 0x115   : > { %2598 = vmatprep.subr.bf16.mxu0 %v2829_v0 }
 0x19b   : > { %v1262_v24 = vpop.f32.mrb[0].mxu1 }
 0x19c   : > { %v2588_v25 = vpop.f32.mrb[1].mxu1  ;;  %2781 = vtanh.f32 %v1262_v24  ;;  %v2750_v24 = vld [vmem:[%s3437_s13 + $0x8] sm:$0xff]  }
 0x19d   : > { %v1265_v26 = vpop.f32.mrb[2].mxu1  ;;  %v2752_v25 = vld [vmem:[%s3437_s13 + $0x18] sm:$0xff]  }
 0x19e   : > { %2783 = vtanh.f32 %v1265_v26  ;;  %v2589_v27 = vpop.f32.mrb[3].mxu1 }
 0x1a6   : > { %v2782_v34 = vpop.eup %2781 }
 0x1a8   : > { %v2784_v35 = vpop.eup %2783 }
 0x1a9   : > { %v1275_v37 = vpack.c.bf16 %v2784_v35, %v2782_v34 }
 0x1ab   : > { %1338 = vrot.lane.b32.xlu1 %v1275_v37, %s2831_s29  ;;  %2595 = vmatmul.mubr.msk.bf16.vlgmr.msra.gmra.mrb[8].mxu0 %vm1110_vm3, %v1275_v37 }
 0x1ac   : > { %2599 = vmatpush3.bf16.msra.mxu0 %v2739_v36  ;;  %2602 = vmatprep.mubr.msk.bf16.mxu0 %vm2830_vm2, %v2829_v0 }
 0x1ad   : > { %2600 = vmatprep.subr.bf16.mxu0 %v2829_v0 }
 0x1b0   : > { %2601 = vmatpush3.bf16.msra.mxu0 %v2740_v39  ;;  %v2753_v39 = vld [vmem:[%s3438_s14] sm:$0xff]  }
 0x1b1   : > { %2626 = vmatprep.subr.bf16.mxu0 %v2829_v0 }
 0x1e2   : > { %v1148_v42 = vpop.f32.mrb[4].mxu0 }
 0x1e3   : > { %v1400_v43 = vadd.f32 %v1399_v41, %v1148_v42  ;;  %v2568_v44 = vpop.f32.mrb[5].mxu0  ;;  %v2755_v42 = vld [vmem:[%s3438_s14 + $0x10] sm:$0xff]  }
 0x1e4   : > { %v1151_v45 = vpop.f32.mrb[6].mxu0  ;;  %v1418_v44 = vsub.s32 4, %v3030_v20  ;;  %v2759_v20 = vld [vmem:[%s3438_s14 + $0x30] sm:$0xff]  }
 0x1e5   : > { %v1402_v46 = vmul.f32 %v1400_v43, %v3067_v31  ;;  %v1401_v47 = vadd.f32 %v1399_v41, %v1151_v45  ;;  %v2569_v48 = vpop.f32.mrb[7].mxu0  ;;  %v2754_v41 = vld [vmem:[%s3438_s14 + $0x8] sm:$0xff]   ;;  %v2756_v43 = vld [vmem:[%s3438_s14 + $0x18] sm:$0xff]   ;;  %v2757_v45 = vld [vmem:[%s3438_s14 + $0x20] sm:$0xff]  }
 0x1e7   : > { %v3197_v49 = vadd.f32 %v1402_v46, %v3012_v12  ;;  %v1403_v50 = vmul.f32 %v1401_v47, %v3070_v32  ;;  %v2747_v12 = vld [vmem:[%s3436_s12 + $0x30] sm:$0xff]   ;;  %v900_v32 = vld [vmem:[%s2994_s27] sm:$0xff]  ;;  %v1419_v46 = vrot.slane %v3061_v29, %v1418_v44  ;;  %v2758_v47 = vld [vmem:[%s3438_s14 + $0x28] sm:$0xff]  }
 0x1e8   : > { %2619 = vmatpush3.bf16.msra.mxu1 %v2747_v12  ;;  %v959_v59 = vrot.slane %v900_v32, 7  ;;  %v2760_v12 = vld [vmem:[%s3438_s14 + $0x38] sm:$0xff]  }
 0x1e9   : > { %v3201_v51 = vadd.f32 %v1403_v50, %v3005_v10  ;;  %2620 = vmatprep.subr.bf16.mxu1 %v2829_v0  ;;  %v2748_v10 = vld [vmem:[%s3436_s12 + $0x38] sm:$0xff]  }
 0x1ea   : > { %v962_v61 = vsel %vm932_vm0, %v960_v58, %v959_v59  ;;  %v961_v4 = vsel %vm932_vm0, %v959_v59, %v960_v58 }
 0x1eb   : > { %v1817_v52 = vpack.c.bf16 %v3201_v51, %v3197_v49  ;;  %v967_v63 = vsel %vm928_vm1, %v966_v60, %v962_v61  ;;  %v970_v13 = vsub.f32 %v961_v4, %v3003_v9 }
 0x1ec   : > { %2621 = vmatpush3.bf16.msra.mxu1 %v2748_v10  ;;  %v969_v5 = vsub.f32 %v967_v63, %v900_v32 }
 0x1ed   : > { %2658 = vmatprep.subr.bf16.mxu1 %v2829_v0 }
 0x21d   : > { %v1339_v31 = vpop.permute.xlu1 %1338 }
 0x21e   : > { %2603 = vmatmul.mubr.msk.bf16.vlgmr.msra.gmra.mrb[12].mxu0 %vm1110_vm3, %v1339_v31 }
 0x21f   : > { %2634 = vmatprep.mubr.msk.bf16.mxu0 %vm2830_vm2, %v2829_v0  ;;  %2627 = vmatpush3.bf16.msra.mxu0 %v2749_v23 }
 0x220   : > { %2628 = vmatprep.subr.bf16.mxu0 %v2829_v0 }
 0x223   : > { %2629 = vmatpush3.bf16.msra.mxu0 %v2750_v24 }
 0x224   : > { %2630 = vmatprep.subr.bf16.mxu0 %v2829_v0 }
 0x27e   : > { %v1325_v6 = vpop.f32.mrb[8].mxu0 }
 0x27f   : > { %v1410_v7 = vadd.f32 %v1409_v1, %v1325_v6  ;;  %v2596_v8 = vpop.f32.mrb[9].mxu0 }
 0x280   : > { %v1328_v11 = vpop.f32.mrb[10].mxu0  ;;  %v2765_v8 = vld [vmem:[%s3440_s16] sm:$0xff]  }
 0x281   : > { %v1412_v14 = vmul.f32 %v1410_v7, %v969_v5  ;;  %v1411_v15 = vadd.f32 %v1409_v1, %v1328_v11  ;;  %v2597_v16 = vpop.f32.mrb[11].mxu0  ;;  %v2766_v11 = vld [vmem:[%s3440_s16 + $0x8] sm:$0xff]  }
 0x282   : > { %v2769_v16 = vld [vmem:[%s3440_s16 + $0x20] sm:$0xff]  }
 0x283   : > { %v1413_v17 = vmul.f32 %v1411_v15, %v970_v13  ;;  %v3233_v18 = vadd.f32 %v1412_v14, %v900_v32  ;;  %v2764_v32 = vld [vmem:[%s3439_s15 + $0x18] sm:$0xff]   ;;  %v2767_v14 = vld [vmem:[%s3440_s16 + $0x10] sm:$0xff]  }
 0x284   : > { %v2768_v15 = vld [vmem:[%s3440_s16 + $0x18] sm:$0xff]  }
 0x285   : > { %v3236_v19 = vadd.f32 %v1413_v17, %v3003_v9  ;;  %v2751_v9 = vld [vmem:[%s3437_s13 + $0x10] sm:$0xff]   ;;  %v2770_v17 = vld [vmem:[%s3440_s16 + $0x28] sm:$0xff]  }
 0x286   : > { %2631 = vmatpush3.bf16.msra.mxu0 %v2751_v9 }
 0x287   : > { %v1442_v21 = vpack.c.bf16 %v3236_v19, %v3233_v18  ;;  %2632 = vmatprep.subr.bf16.mxu0 %v2829_v0 }
 0x289   : > { %2623 = vmatmul.mubr.bf16.vlgmr.msra.gmra.mrb[4].mxu1 %v1442_v21  ;;  %v2772_v21 = vld [vmem:[%s3440_s16 + $0x38] sm:$0xff]  }
 0x28a   : > { %2666 = vmatprep.mubr.msk.bf16.mxu1 %vm2830_vm2, %v2829_v0  ;;  %2633 = vmatpush3.bf16.msra.mxu0 %v2752_v25 }
 0x28b   : > { %2638 = vmatprep.subr.bf16.mxu0 %v2829_v0 }
 0x2f1   : > { %v1389_v26 = vpop.f32.mrb[12].mxu0 }
 0x2f2   : > { %v2604_v27 = vpop.f32.mrb[13].mxu0  ;;  %v1420_v50 = vadd.f32 %v1419_v46, %v1389_v26 }
 0x2f3   : > { %v1392_v28 = vpop.f32.mrb[14].mxu0 }
 0x2f4   : > { %v2605_v30 = vpop.f32.mrb[15].mxu0  ;;  %v1421_v48 = vadd.f32 %v1419_v46, %v1392_v28  ;;  %v1422_v29 = vmul.f32 %v1420_v50, %v3143_v3  ;;  %v2761_v3 = vld [vmem:[%s3439_s15] sm:$0xff]  }
 0x2f5   : > { %2659 = vmatpush3.bf16.msra.mxu1 %v2761_v3 }
 0x2f6   : > { %v1423_v55 = vmul.f32 %v1421_v48, %v3140_v2  ;;  %v3300_v31 = vadd.f32 %v1422_v29, %v3118_v54  ;;  %2660 = vmatprep.subr.bf16.mxu1 %v2829_v0  ;;  %v2763_v54 = vld [vmem:[%s3439_s15 + $0x10] sm:$0xff]  }
 0x2f8   : > { %v3296_v10 = vadd.f32 %v1423_v55, %v3124_v57  ;;  %v2762_v57 = vld [vmem:[%s3439_s15 + $0x8] sm:$0xff]  }
 0x2f9   : > { %2661 = vmatpush3.bf16.msra.mxu1 %v2762_v57  ;;  %v975_v57 = vld [vmem:[%s3441_s17] sm:$0x7] }
 0x2fa   : > { %v1630_v2 = vpack.c.bf16 %v3296_v10, %v3300_v31  ;;  %2662 = vmatprep.subr.bf16.mxu1 %v2829_v0 }
 0x2fd   : > { %2663 = vmatpush3.bf16.msra.mxu1 %v2763_v54  ;;  %v976_v54 = vld [vmem:[%s3442_s18] sm:$0x7] }
 0x2fe   : > { %2664 = vmatprep.subr.bf16.mxu1 %v2829_v0 }
 0x301   : > { %2665 = vmatpush3.bf16.msra.mxu1 %v2764_v32  ;;  %v1968_v32 = vrot.slane %v975_v57, %v3115_v53 }
 0x302   : > { %2670 = vmatprep.subr.bf16.mxu1 %v2829_v0 }
 0x35c   : > { %v1525_v33 = vpop.f32.mrb[4].mxu1 }
 0x35d   : > { %v2624_v34 = vpop.f32.mrb[5].mxu1  ;;  %2785 = vtanh.f32 %v1525_v33 }
 0x35e   : > { %v1528_v35 = vpop.f32.mrb[6].mxu1 }
 0x35f   : > { %2787 = vtanh.f32 %v1528_v35  ;;  %v2625_v36 = vpop.f32.mrb[7].mxu1 }
 0x367   : > { %v2786_v37 = vpop.eup %2785 }
 0x369   : > { %v2788_v38 = vpop.eup %2787 }
 0x36a   : > { %v1542_v40 = vpack.c.bf16 %v2788_v38, %v2786_v37 }
 0x36c   : > { %2635 = vmatmul.mubr.msk.bf16.vlgmr.msra.gmra.mrb[16].mxu0 %vm1567_vm4, %v1542_v40 }
 0x36d   : > { %2639 = vmatpush3.bf16.msra.mxu0 %v2753_v39  ;;  %2654 = vmatprep.mubr.msk.bf16.mxu0 %vm2830_vm2, %v2829_v0 }
 0x36e   : > { %2640 = vmatprep.subr.bf16.mxu0 %v2829_v0 }
 0x371   : > { %2641 = vmatpush3.bf16.msra.mxu0 %v2754_v41 }
 0x372   : > { %2642 = vmatprep.subr.bf16.mxu0 %v2829_v0 }
 0x375   : > { %2643 = vmatpush3.bf16.msra.mxu0 %v2755_v42 }
 0x376   : > { %2644 = vmatprep.subr.bf16.mxu0 %v2829_v0 }
 0x379   : > { %2645 = vmatpush3.bf16.msra.mxu0 %v2756_v43 }
 0x37a   : > { %2646 = vmatprep.subr.bf16.mxu0 %v2829_v0 }
 0x37d   : > { %2647 = vmatpush3.bf16.msra.mxu0 %v2757_v45 }
 0x37e   : > { %2648 = vmatprep.subr.bf16.mxu0 %v2829_v0 }
 0x381   : > { %2649 = vmatpush3.bf16.msra.mxu0 %v2758_v47 }
 0x382   : > { %2650 = vmatprep.subr.bf16.mxu0 %v2829_v0 }
 0x385   : > { %2651 = vmatpush3.bf16.msra.mxu0 %v2759_v20 }
 0x386   : > { %2652 = vmatprep.subr.bf16.mxu0 %v2829_v0 }
 0x389   : > { %2653 = vmatpush3.bf16.msra.mxu0 %v2760_v12 }
 0x38c   : > { %2655 = vmatmul.mubr.bf16.vlgmr.msra.gmra.mrb[20].mxu0 %v1630_v2 }
 0x43f   : > { %v1605_v58 = vpop.f32.mrb[16].mxu0 }
 0x440   : > { %v1612_v59 = vadd.f32 %v1605_v58, %v3233_v18  ;;  %v2636_v60 = vpop.f32.mrb[17].mxu0  ;;  %v2771_v18 = vld [vmem:[%s3440_s16 + $0x30] sm:$0xff]  }
 0x441   : > { %v1608_v61 = vpop.f32.mrb[18].mxu0  ;;  %v1974_v60 = vrot.slane %v976_v54, %v3115_v53 }
 0x442   : > { %1943 = vadd.xlane.f32.xlu0 %v1612_v59  ;;  %v2637_v62 = vpop.f32.mrb[19].mxu0  ;;  %v1613_v33 = vadd.f32 %v1608_v61, %v3236_v19 }
 0x45f   : > { %v1713_v63 = vpop.f32.mrb[20].mxu0 }
 0x460   : > { %v2656_v1 = vpop.f32.mrb[21].mxu0  ;;  %2789 = vtanh.f32 %v1713_v63 }
 0x461   : > { %v1716_v4 = vpop.f32.mrb[22].mxu0 }
 0x462   : > { %2791 = vtanh.f32 %v1716_v4  ;;  %v2657_v5 = vpop.f32.mrb[23].mxu0 }
 0x46a   : > { %v2790_v6 = vpop.eup %2789 }
 0x46c   : > { %v2792_v7 = vpop.eup %2791 }
 0x46d   : > { %v1730_v13 = vpack.c.bf16 %v2792_v7, %v2790_v6 }
 0x46f   : > { %2667 = vmatmul.mubr.msk.bf16.vlgmr.msra.gmra.mrb[8].mxu1 %vm1567_vm4, %v1730_v13 }
 0x470   : > { %2671 = vmatpush3.bf16.msra.mxu1 %v2765_v8  ;;  %2686 = vmatprep.mubr.msk.bf16.mxu1 %vm2830_vm2, %v2829_v0 }
 0x471   : > { %2672 = vmatprep.subr.bf16.mxu1 %v2829_v0 }
 0x474   : > { %2673 = vmatpush3.bf16.msra.mxu1 %v2766_v11 }
 0x475   : > { %2674 = vmatprep.subr.bf16.mxu1 %v2829_v0 }
 0x478   : > { %2675 = vmatpush3.bf16.msra.mxu1 %v2767_v14 }
 0x479   : > { %2676 = vmatprep.subr.bf16.mxu1 %v2829_v0 }
 0x47c   : > { %2677 = vmatpush3.bf16.msra.mxu1 %v2768_v15 }
 0x47d   : > { %2678 = vmatprep.subr.bf16.mxu1 %v2829_v0 }
 0x480   : > { %2679 = vmatpush3.bf16.msra.mxu1 %v2769_v16 }
 0x481   : > { %2680 = vmatprep.subr.bf16.mxu1 %v2829_v0 }
 0x484   : > { %2681 = vmatpush3.bf16.msra.mxu1 %v2770_v17 }
 0x485   : > { %2682 = vmatprep.subr.bf16.mxu1 %v2829_v0 }
 0x488   : > { %2683 = vmatpush3.bf16.msra.mxu1 %v2771_v18 }
 0x489   : > { %2684 = vmatprep.subr.bf16.mxu1 %v2829_v0 }
 0x48c   : > { %2685 = vmatpush3.bf16.msra.mxu1 %v2772_v21 }
 0x48f   : > { %2687 = vmatmul.mubr.bf16.vlgmr.msra.gmra.mrb[12].mxu1 %v1817_v52 }
 0x4cf   : > { %v1944_v34 = vpop.xlane.xlu0 %1943 }
 0x4d0   : > { %v1947_v0 = vmul.f32 0.0078125, %v1944_v34 }
 0x4d2   : > { %v1949_v49 = vsub.f32 %v1612_v59, %v1947_v0 }
 0x4d4   : > { %v1951_v52 = vmul.f32 %v1949_v49, %v1949_v49 }
 0x542   : > { %v1792_v23 = vpop.f32.mrb[8].mxu1 }
 0x543   : > { %v2668_v24 = vpop.f32.mrb[9].mxu1  ;;  %v1799_v35 = vadd.f32 %v1792_v23, %v3300_v31 }
 0x544   : > { %v1795_v9 = vpop.f32.mrb[10].mxu1 }
 0x545   : > { %v2669_v25 = vpop.f32.mrb[11].mxu1  ;;  %v1800_v51 = vadd.f32 %v1795_v9, %v3296_v10  ;;  %v1932_v9 = vrot.slane %v975_v57, %v3038_v22 }
 0x562   : > { %v1900_v26 = vpop.f32.mrb[12].mxu1 }
 0x563   : > { %1907 = vadd.xlane.f32.xlu1 %v1900_v26  ;;  %v2688_v27 = vpop.f32.mrb[13].mxu1 }
 0x564   : > { %v1903_v28 = vpop.f32.mrb[14].mxu1  ;;  %v1938_v27 = vrot.slane %v976_v54, %v3038_v22 }
 0x565   : > { %1909 = vadd.xlane.f32.xlu0 %v1903_v28  ;;  %v2689_v30 = vpop.f32.mrb[15].mxu1 }
 0x569   : > { %1945 = vadd.xlane.f32.xlu0 %v1613_v33 }
 0x56d   : > { %1977 = vadd.xlane.f32.xlu0 %v1799_v35 }
 0x571   : > { %1979 = vadd.xlane.f32.xlu0 %v1800_v51 }
 0x575   : > { %1953 = vadd.xlane.f32.xlu0 %v1951_v52 }
 0x5f0   : > { %v1908_v36 = vpop.xlane.xlu1 %1907 }
 0x5f1   : > { %v1911_v37 = vmul.f32 0.0078125, %v1908_v36 }
 0x5f2   : > { %v1910_v38 = vpop.xlane.xlu0 %1909 }
 0x5f3   : > { %v1913_v39 = vsub.f32 %v1900_v26, %v1911_v37  ;;  %v1912_v40 = vmul.f32 0.0078125, %v1910_v38 }
 0x5f5   : > { %v1914_v41 = vsub.f32 %v1903_v28, %v1912_v40  ;;  %v1915_v42 = vmul.f32 %v1913_v39, %v1913_v39 }
 0x5f6   : > { %v1946_v19 = vpop.xlane.xlu0 %1945 }
 0x5f7   : > { %v1948_v43 = vmul.f32 0.0078125, %v1946_v19  ;;  %1917 = vadd.xlane.f32.xlu0 %v1915_v42  ;;  %v1916_v45 = vmul.f32 %v1914_v41, %v1914_v41 }
 0x5f9   : > { %v1950_v44 = vsub.f32 %v1613_v33, %v1948_v43 }
 0x5fa   : > { %v1978_v46 = vpop.xlane.xlu0 %1977 }
 0x5fb   : > { %v1981_v47 = vmul.f32 0.0078125, %v1978_v46  ;;  %1919 = vadd.xlane.f32.xlu0 %v1916_v45  ;;  %v1952_v50 = vmul.f32 %v1950_v44, %v1950_v44 }
 0x5fd   : > { %v1983_v48 = vsub.f32 %v1799_v35, %v1981_v47  ;;  %v2002_v35 = vrot.slane %v975_v57, %v3121_v56  ;;  %v2014_v47 = vld [vmem:[%s3459_s28 + $0x8] sm:$0xff] }
 0x5fe   : > { %v1980_v20 = vpop.xlane.xlu0 %1979 }
 0x5ff   : > { %v1982_v55 = vmul.f32 0.0078125, %v1980_v20  ;;  %1955 = vadd.xlane.f32.xlu0 %v1952_v50  ;;  %v1985_v29 = vmul.f32 %v1983_v48, %v1983_v48  ;;  %v2013_v50 = vld [vmem:[%s3459_s28] sm:$0xff] }
 0x601   : > { %v1984_v12 = vsub.f32 %v1800_v51, %v1982_v55  ;;  %1987 = vadd.xlane.f32.xlu1 %v1985_v29  ;;  %v2016_v55 = vld [vmem:[%s3430_s6 + $0x8] sm:$0xff] }
 0x602   : > { %v1954_v10 = vpop.xlane.xlu0 %1953 }
 0x603   : > { %v1957_v31 = vmul.f32 0.0078125, %v1954_v10  ;;  %v1986_v2 = vmul.f32 %v1984_v12, %v1984_v12 }
 0x605   : > { %v1959_v3 = vadd.f32 1e-05, %v1957_v31  ;;  %1989 = vadd.xlane.f32.xlu0 %v1986_v2  ;;  %v2015_v2 = vld [vmem:[%s3430_s6] sm:$0xff] }
 0x607   : > { %2793 = vrsqrt.f32 %v1959_v3 }
 0x611   : > { %v2794_v58 = vpop.eup %2793 }
 0x612   : > { %v1963_v59 = vmul.f32 %v2794_v58, %v1949_v49 }
 0x614   : > { %v1969_v61 = vmul.f32 %v1968_v32, %v1963_v59 }
 0x616   : > { %v3369_v62 = vadd.f32 %v1974_v60, %v1969_v61 }
 0x618   : > { %2035 = vrot.lane.b32.xlu1 %v3369_v62, %s2832_s5 }
 0x684   : > { %v1918_v63 = vpop.xlane.xlu0 %1917 }
 0x685   : > { %v1921_v1 = vmul.f32 0.0078125, %v1918_v63 }
 0x687   : > { %v1923_v4 = vadd.f32 1e-05, %v1921_v1 }
 0x688   : > { %v1920_v5 = vpop.xlane.xlu0 %1919 }
 0x689   : > { %v1922_v6 = vmul.f32 0.0078125, %v1920_v5  ;;  %2795 = vrsqrt.f32 %v1923_v4 }
 0x68b   : > { %v1924_v7 = vadd.f32 1e-05, %v1922_v6 }
 0x68c   : > { %v1956_v8 = vpop.xlane.xlu0 %1955 }
 0x68d   : > { %2797 = vrsqrt.f32 %v1924_v7  ;;  %v1958_v13 = vmul.f32 0.0078125, %v1956_v8 }
 0x68e   : > { %v1988_v11 = vpop.xlane.xlu1 %1987 }
 0x68f   : > { %v1960_v14 = vadd.f32 1e-05, %v1958_v13  ;;  %v1991_v53 = vmul.f32 0.0078125, %v1988_v11 }
 0x691   : > { %2799 = vrsqrt.f32 %v1960_v14  ;;  %v1993_v15 = vadd.f32 1e-05, %v1991_v53 }
 0x692   : > { %v1990_v16 = vpop.xlane.xlu0 %1989 }
 0x693   : > { %2801 = vrsqrt.f32 %v1993_v15  ;;  %v1992_v17 = vmul.f32 0.0078125, %v1990_v16  ;;  %v2796_v18 = vpop.eup %2795 }
 0x694   : > { %v1927_v25 = vmul.f32 %v2796_v18, %v1913_v39  ;;  %v2008_v39 = vrot.slane %v976_v54, %v3121_v56 }
 0x695   : > { %v1994_v21 = vadd.f32 1e-05, %v1992_v17 }
 0x696   : > { %v1933_v34 = vmul.f32 %v1932_v9, %v1927_v25 }
 0x697   : > { %v2798_v23 = vpop.eup %2797  ;;  %2803 = vrsqrt.f32 %v1994_v21 }
 0x698   : > { %v1928_v24 = vmul.f32 %v2798_v23, %v1914_v41  ;;  %v1939_v37 = vadd.f32 %v1938_v27, %v1933_v34 }
 0x69a   : > { %v1934_v26 = vmul.f32 %v1932_v9, %v1928_v24  ;;  %v1941_v42 = vmul.f32 0.17677669, %v1939_v37 }
 0x69b   : > { %v2800_v28 = vpop.eup %2799 }
 0x69c   : > { %v1940_v30 = vadd.f32 %v1938_v27, %v1934_v26  ;;  %v1964_v33 = vmul.f32 %v2800_v28, %v1950_v44  ;;  %v2036_v44 = vpop.permute.xlu1 %2035 }
 0x69d   : > { %v2802_v0 = vpop.eup %2801 }
 0x69e   : > { %v1997_v49 = vmul.f32 %v2802_v0, %v1983_v48  ;;  %v1942_v51 = vmul.f32 0.17677669, %v1940_v30  ;;  %v1970_v52 = vmul.f32 %v1968_v32, %v1964_v33  ;;  %v2045_v32 = vmul.f32 %v2036_v44, %v2013_v50 }
 0x6a0   : > { %2019 = vrot.lane.b32.xlu0 %v1942_v51, %s2832_s5  ;;  %v1976_v36 = vadd.f32 %v1974_v60, %v1970_v52  ;;  %v2003_v40 = vmul.f32 %v2002_v35, %v1997_v49 }
 0x6a1   : > { %v2804_v38 = vpop.eup %2803 }
 0x6a2   : > { %v1998_v22 = vmul.f32 %v2804_v38, %v1984_v12  ;;  %2037 = vrot.lane.b32.xlu1 %v1976_v36, %s2832_s5  ;;  %v2009_v19 = vadd.f32 %v2008_v39, %v2003_v40 }
 0x6a4   : > { %v2004_v41 = vmul.f32 %v2002_v35, %v1998_v22  ;;  %2023 = vrot.lane.b32.xlu0 %v1942_v51, %s2833_s22 }
 0x6a6   : > { %v2010_v43 = vadd.f32 %v2008_v39, %v2004_v41  ;;  %2017 = vrot.lane.b32.xlu1 %v1941_v42, %s2832_s5  ;;  %s3460_s5 = sld [smem:[#allocation8_spill]] }
 0x6a8   : > { %2041 = vrot.lane.b32.xlu0 %v1976_v36, %s2833_s22  ;;  %v2476_v56 = vpack.c.bf16 %v2010_v43, %v2009_v19 }
 0x6aa   : > { %2021 = vrot.lane.b32.xlu1 %v1941_v42, %s2833_s22  ;;  %2477 = vst [vmem:[%s893_s3] sm:$0xff] %v2476_v56  }
 0x6ac   : > { %v2012_v20 = vld [vmem:[%s3460_s5 + $0x8] sm:$0xff]  ;;  %v2011_v31 = vld [vmem:[%s3460_s5] sm:$0xff] }
 0x6ad   : > { %v2026_v3 = vmul.f32 %v2012_v20, %v1942_v51  ;;  %v2025_v54 = vmul.f32 %v2011_v31, %v1941_v42  ;;  %v2043_v4 = vmul.f32 %v2011_v31, %v3369_v62  ;;  %v2044_v5 = vmul.f32 %v2012_v20, %v1976_v36 }
 0x6ae   : > { %2039 = vrot.lane.b32.xlu1 %v3369_v62, %s2833_s22 }
 0x6af   : > { %v2047_v11 = vadd.f32 %v2045_v32, %v2043_v4 }
 0x712   : > { %v2020_v45 = vpop.permute.xlu0 %2019 }
 0x713   : > { %v2028_v12 = vmul.f32 %v2020_v45, %v2014_v47 }
 0x714   : > { %v2038_v46 = vpop.permute.xlu1 %2037 }
 0x715   : > { %v2030_v60 = vadd.f32 %v2028_v12, %v2026_v3  ;;  %v2046_v61 = vmul.f32 %v2038_v46, %v2014_v47 }
 0x716   : > { %v2024_v48 = vpop.permute.xlu0 %2023 }
 0x717   : > { %v2032_v57 = vmul.f32 %v2024_v48, %v2016_v55  ;;  %v2048_v14 = vadd.f32 %v2046_v61, %v2044_v5 }
 0x718   : > { %v2018_v29 = vpop.permute.xlu1 %2017 }
 0x719   : > { %v2027_v10 = vmul.f32 %v2018_v29, %v2013_v50  ;;  %v2034_v6 = vadd.f32 %v2032_v57, %v2030_v60 }
 0x71a   : > { %v2042_v58 = vpop.permute.xlu0 %2041 }
 0x71b   : > { %v2029_v63 = vadd.f32 %v2027_v10, %v2025_v54  ;;  %v2050_v7 = vmul.f32 %v2042_v58, %v2016_v55 }
 0x71c   : > { %v2022_v59 = vpop.permute.xlu1 %2021 }
 0x71d   : > { %v2031_v1 = vmul.f32 %v2022_v59, %v2015_v2  ;;  %v2052_v16 = vadd.f32 %v2050_v7, %v2048_v14 }
 0x71f   : > { %v2033_v8 = vadd.f32 %v2031_v1, %v2029_v63 }
 0x720   : > { %v2040_v13 = vpop.permute.xlu1 %2039 }
 0x721   : > { %v2466_v53 = vpack.c.bf16 %v2034_v6, %v2033_v8  ;;  %v2049_v15 = vmul.f32 %v2040_v13, %v2015_v2 }
 0x723   : > { %2467 = vst [vmem:[%s873_s0] sm:$0xff] %v2466_v53   ;;  %v2051_v17 = vadd.f32 %v2049_v15, %v2047_v11 }
 0x725   : > { %v2471_v62 = vpack.c.bf16 %v2052_v16, %v2051_v17 }
 0x727   : > { %2472 = vst [vmem:[%s883_s24] sm:$0xff] %v2471_v62  }
 0x728 PF: > { %s32_s26 = sadd.s32 1, %s2827_s26   ;;  %s3461_s22 = sld [smem:[#allocation3_spill]] }
 0x729   : > { %p29_p5 = scmp.ge.s32.totalorder %s32_s26, 4   ;;  %s3462_s2 = smov %s2823_s25 }
 0x72b   :  { %31 = sbr.rel (!%p29_p5) target bundleno = 7 (0x7), region = 173 }
 0x72e   : > { %s3463_s25 = smov %s3461_s22 }

// kernel: tmix_gold_forward.4
= control target key start
LH: loop header
LB: loop body
LE: loop exit
PB: predicated region body
PF: predicated region fallthrough
CT: control target
= control target key end

     0   :  { %s2444_s12 = smov 0   ;;  %s2446_s13 = smov 0   ;;  %s2798_s0 = inlined_call_operand.vmem [shape: bf16[2,16,128], index: 0, kind: input, shape index: {}]   ;;  %s2799_s1 = inlined_call_operand.vmem [shape: bf16[2,16,128], index: 1, kind: input, shape index: {}]   ;;  %s2800_s2 = inlined_call_operand.vmem [shape: bf16[2,16,128], index: 2, kind: input, shape index: {}]   ;;  %s2801_s3 = inlined_call_operand.vmem [shape: bf16[2,16,128], index: 3, kind: output, shape index: {}]  }
   0x1   :  { %s2448_s14 = smov 0  }
   0x2 LB: > { %s32_s15 = sadd.s32 1, %s2411_s13  ;;  %p2165_p0 = scmp.ge.s32.totalorder %s2415_s14, 1  ;;  %s2415_s14 = sphi %s2448_s14, %s13_s14   ;;  %s2411_s13 = sphi %s2446_s13, %s2803_s13   ;;  %s2407_s12 = sphi %s2444_s12, %s2802_s12  }
   0x3   : > { %p34_p1 = scmp.ge.s32.totalorder %s32_s15, 2  ;;  %p215_p2 = scmp.lt.s32.totalorder %s2415_s14, 3 }
   0x5   : > { %s2805_s15 = smov (%p34_p1, %s32_s15), 0  ;;  %p216_p3 = pnand %p2165_p0, %p215_p2 }
   0x6   : > { %p270_p4 = scmp.lt.s32.totalorder (!%p216_p3), %s2407_s12, 1  ;;  %v2417_v0 = vmov (!%p216_p3), 0.0   ;;  %vm2418_vm0 = vmmov (!%p216_p3), 0   ;;  %vm1153_vm1 = vcmask (!%p216_p3), 261120   ;;  %vm322_vm2 = vcmask (!%p216_p3), 7168   ;;  %s2421_s23 = smov (!%p216_p3), 96  }
   0x7   : > { %219 = sbr.rel (%p216_p3) target bundleno = 1432 (0x598), region = 32  ;;  %2252 = vmatprep.subr.bf16.mxu0 (!%p216_p3), %v2417_v0  ;;  %339 = vst [vmem:[#allocation4] sm:$0xff] (!%p216_p3), %v2417_v0  ;;  %340 = vst [vmem:[#allocation4 + $0x8] sm:$0xff] (!%p216_p3), %v2417_v0  ;;  %2254 = vmatprep.mubr.msk.bf16.mxu0 (!%p216_p3), %vm2418_vm0, %v2417_v0  ;;  %v2419_v4 = vmov (!%p216_p3), -1e+30   ;;  %v1124_v5 = vlaneseq (!%p216_p3)  ;;  %vm1205_vm4 = vcmask (!%p216_p3), 130048  }
   0x8   : > { %2258 = vmatprep.subr.bf16.mxu1 (!%p216_p3), %v2417_v0  ;;  %2260 = vmatprep.mubr.msk.bf16.mxu1 (!%p216_p3), %vm2418_vm0, %v2417_v0  ;;  %323 = vst.msk [vmem:[#allocation2] sm:$0xff] (!%p216_p3), %vm322_vm2, %v2419_v4  ;;  %324 = vst.msk [vmem:[#allocation2 + $0x8] sm:$0xff] (!%p216_p3), %vm322_vm2, %v2419_v4  ;;  %v2420_v17 = vmov (!%p216_p3), 0   ;;  %s2422_s27 = smov (!%p216_p3), 64   ;;  %s2423_s28 = smov (!%p216_p3), 32   ;;  %vm1516_vm6 = vcmask (!%p216_p3), 523520  }
   0x9   : > { %325 = vst.msk [vmem:[#allocation2 + $0x10] sm:$0xff] (!%p216_p3), %vm322_vm2, %v2419_v4  ;;  %326 = vst.msk [vmem:[#allocation2 + $0x18] sm:$0xff] (!%p216_p3), %vm322_vm2, %v2419_v4  ;;  %v2515_v6 = vshrl.u32 (!%p216_p3), %v1124_v5, 7  ;;  %v2517_v7 = vand.u32 (!%p216_p3), 127, %v1124_v5  ;;  %2331 = vset.pattern.permute.xlu1 (!%p216_p3), %v2420_v17  ;;  %2332 = vset.pattern.permute.xlu0 (!%p216_p3), %v2420_v17  ;;  %vm1715_vm7 = vcmask (!%p216_p3), 785920   ;;  %vm1914_vm8 = vcmask (!%p216_p3), 1048320  }
   0xa   : > { %327 = vst.msk [vmem:[#allocation2 + $0x20] sm:$0xff] (!%p216_p3), %vm322_vm2, %v2419_v4  ;;  %328 = vst.msk [vmem:[#allocation2 + $0x28] sm:$0xff] (!%p216_p3), %vm322_vm2, %v2419_v4  ;;  %vm1945_vm9 = vcmask (!%p216_p3), 257024   ;;  %vm1974_vm10 = vcmask (!%p216_p3), 519424   ;;  %vm2003_vm11 = vcmask (!%p216_p3), 781824   ;;  %vm2032_vm12 = vcmask (!%p216_p3), 1044224  }
   0xb   : > { %329 = vst.msk [vmem:[#allocation2 + $0x30] sm:$0xff] (!%p216_p3), %vm322_vm2, %v2419_v4  ;;  %330 = vst.msk [vmem:[#allocation2 + $0x38] sm:$0xff] (!%p216_p3), %vm322_vm2, %v2419_v4  ;;  %v2520_v8 = vadd.s32 (!%p216_p3), 8, %v2515_v6  ;;  %vm1135_vm3 = vcmp.ge.s32.totalorder (!%p216_p3), %v2515_v6, %v2517_v7 }
   0xc   : > { %331 = vst.msk [vmem:[#allocation3] sm:$0xff] (!%p216_p3), %vm322_vm2, %v2417_v0  ;;  %332 = vst.msk [vmem:[#allocation3 + $0x8] sm:$0xff] (!%p216_p3), %vm322_vm2, %v2417_v0 }
   0xd   : > { %333 = vst.msk [vmem:[#allocation3 + $0x10] sm:$0xff] (!%p216_p3), %vm322_vm2, %v2417_v0  ;;  %334 = vst.msk [vmem:[#allocation3 + $0x18] sm:$0xff] (!%p216_p3), %vm322_vm2, %v2417_v0  ;;  %vm1136_vm5 = vcmp.ge.s32.totalorder (!%p216_p3), %v2520_v8, %v2517_v7 }
   0xe   : > { %s2807_s12 = smov (!%p270_p4, %s2407_s12), 1  ;;  %335 = vst.msk [vmem:[#allocation3 + $0x20] sm:$0xff] %vm322_vm2, %v2417_v0  ;;  %336 = vst.msk [vmem:[#allocation3 + $0x28] sm:$0xff] %vm322_vm2, %v2417_v0 }
   0xf   : > { %s2470_s16 = sshll.u32 %s2807_s12, 3  ;;  %337 = vst.msk [vmem:[#allocation3 + $0x30] sm:$0xff] %vm322_vm2, %v2417_v0  ;;  %338 = vst.msk [vmem:[#allocation3 + $0x38] sm:$0xff] %vm322_vm2, %v2417_v0  ;;  %v2536_v19 = vld [vmem:[#allocation2] sm:$0xff]  ;;  %v2541_v22 = vld [vmem:[#allocation2 + $0x8] sm:$0xff] }
  0x10   : > { %s2476_s19 = scalar_lea.vmem %s2799_s1, %s2470_s16  ;;  %s2483_s22 = scalar_lea.vmem %s2798_s0, %s2470_s16  ;;  %v2641_v6 = vld [vmem:[#allocation2 + $0x10] sm:$0xff] }
  0x11   : > { %v2333_v1 = vld [vmem:[%s2476_s19] sm:$0xff]   ;;  %s2563_s26 = scalar_lea.vmem %s2800_s2, %s2470_s16  ;;  %s315_s4 = scalar_lea.vmem %s2801_s3, %s2470_s16 }
  0x12   : > { %v1158_v2 = vsel %vm1153_vm1, %v2333_v1, 0  ;;  %v2334_v3 = vld [vmem:[%s2483_s22] sm:$0xff]  }
  0x13   : > { %2253 = vmatpush3.bf16.xpose.msra.mxu0 %v1158_v2  ;;  %v2335_v18 = vld [vmem:[%s2476_s19] sm:$0xff]  }
  0x14   : > { %2270 = vmatprep.subr.bf16.mxu0 %v2417_v0  ;;  %v2336_v27 = vld [vmem:[%s2483_s22] sm:$0xff]  }
  0x15   : > { %v2337_v28 = vld [vmem:[%s2476_s19] sm:$0xff]  }
  0x16   : > { %v2341_v29 = vld [vmem:[%s2563_s26] sm:$0xff]  }
  0x17   : > { %2259 = vmatpush3.bf16.msra.mxu1 %v2341_v29  ;;  %v2338_v30 = vld [vmem:[%s2483_s22] sm:$0xff]  }
  0x18   : > { %2264 = vmatprep.subr.bf16.mxu1 %v2417_v0  ;;  %v2339_v31 = vld [vmem:[%s2476_s19] sm:$0xff]  }
  0x19   : > { %v2340_v32 = vld [vmem:[%s2483_s22] sm:$0xff]  }
  0x1a   : > { %2255 = vmatmul.mubr.msk.bf16.vlgmr.msra.gmra.mrb[0].mxu0 %vm1153_vm1, %v2334_v3  ;;  %v2342_v8 = vld [vmem:[%s2563_s26] sm:$0xff]  }
  0x1b   : > { %2272 = vmatprep.mubr.msk.bf16.mxu0 %vm2418_vm0, %v2417_v0 }
  0xed   : > { %v1194_v9 = vpop.f32.mrb[0].mxu0 }
  0xee   : > { %v1201_v10 = vsel %vm1135_vm3, %v1194_v9, -1e+30  ;;  %v2256_v11 = vpop.f32.mrb[1].mxu0 }
  0xef   : > { %v1197_v12 = vpop.f32.mrb[2].mxu0  ;;  %v1206_v13 = vsel %vm1205_vm4, %v1201_v10, -inf }
  0xf0   : > { %v1202_v14 = vsel %vm1136_vm5, %v1197_v12, -1e+30  ;;  %1207 = vmax.xlane.f32.xlu0 %v1206_v13  ;;  %v2257_v15 = vpop.f32.mrb[3].mxu0 }
  0xf1   : > { %v1209_v16 = vsel %vm1205_vm4, %v1202_v14, -inf }
  0xf4   : > { %1210 = vmax.xlane.f32.xlu0 %v1209_v16 }
 0x10a   : > { %1340 = vrot.lane.b32.xlu0 %v2335_v18, %s2421_s23 }
 0x17d   : > { %v1208_v20 = vpop.xlane.xlu0 %1207 }
 0x17e   : > { %v2539_v21 = vmax.f32 %v2536_v19, %v1208_v20 }
 0x180   : > { %v1214_v23 = vsub.f32 %v2536_v19, %v2539_v21  ;;  %1320 = vst.msk [vmem:[#allocation2] sm:$0xff] %vm322_vm2, %v2539_v21  ;;  %1222 = vperm.xlu1 %2331, %v2539_v21  }
 0x181   : > { %v1211_v24 = vpop.xlane.xlu0 %1210 }
 0x182   : > { %v2549_v25 = vmax.f32 %v2541_v22, %v1211_v24  ;;  %v1393_v24 = vld [vmem:[#allocation2 + $0x18] sm:$0xff] }
 0x184   : > { %v1215_v26 = vsub.f32 %v2541_v22, %v2549_v25  ;;  %1321 = vst.msk [vmem:[#allocation2 + $0x8] sm:$0xff] %vm322_vm2, %v2549_v25  ;;  %1227 = vperm.xlu1 %2331, %v2549_v25  }
 0x185   : > { %v1341_v40 = vpop.permute.xlu0 %1340 }
 0x186   : > { %v1346_v43 = vsel %vm1153_vm1, %v1341_v40, 0  ;;  %v2343_v40 = vld [vmem:[%s2563_s26] sm:$0xff]  }
 0x188   : > { %1333 = vrot.lane.b32.xlu1 %v2336_v27, %s2421_s23 }
 0x18c   : > { %1539 = vrot.lane.b32.xlu1 %v2337_v28, %s2422_s27 }
 0x190   : > { %1532 = vrot.lane.b32.xlu1 %v2338_v30, %s2422_s27 }
 0x194   : > { %1738 = vrot.lane.b32.xlu1 %v2339_v31, %s2423_s28  ;;  %v2653_v31 = vld [vmem:[#allocation2 + $0x20] sm:$0xff] }
 0x198   : > { %1731 = vrot.lane.b32.xlu1 %v2340_v32, %s2423_s28 }
 0x1ff   : > { %v1223_v33 = vpop.permute.xlu1 %1222 }
 0x200   : > { %v1230_v34 = vsub.f32 %v1201_v10, %v1223_v33  ;;  %v2656_v33 = vld [vmem:[#allocation2 + $0x28] sm:$0xff] }
 0x202   : > { %v1232_v35 = vmul.f32 1.442695, %v1230_v34 }
 0x203   : > { %v1228_v36 = vpop.permute.xlu1 %1227 }
 0x204   : > { %v1231_v37 = vsub.f32 %v1202_v14, %v1228_v36  ;;  %2345 = vpow2.f32 %v1232_v35 }
 0x206   : > { %v1234_v38 = vmul.f32 1.442695, %v1231_v37 }
 0x207   : > { %v1334_v39 = vpop.permute.xlu1 %1333 }
 0x208   : > { %2347 = vpow2.f32 %v1234_v38 }
 0x20b   : > { %v1540_v45 = vpop.permute.xlu1 %1539 }
 0x20c   : > { %v1545_v47 = vsel %vm1153_vm1, %v1540_v45, 0 }
 0x20e   : > { %v2574_v41 = vpop.eup %2345 }
 0x20f   : > { %v1533_v46 = vpop.permute.xlu1 %1532 }
 0x212   : > { %v2576_v42 = vpop.eup %2347 }
 0x213   : > { %v1265_v44 = vpack.c.bf16 %v2576_v42, %v2574_v41  ;;  %v1739_v48 = vpop.permute.xlu1 %1738 }
 0x214   : > { %v1744_v49 = vsel %vm1153_vm1, %v1739_v48, 0 }
 0x215   : > { %2261 = vmatmul.mubr.msk.bf16.vlgmr.msra.gmra.mrb[0].mxu1 %vm1205_vm4, %v1265_v44  ;;  %v2677_v44 = vld [vmem:[#allocation2 + $0x38] sm:$0xff] }
 0x216   : > { %2265 = vmatpush3.bf16.xpose.msra.mxu1 %v1346_v43  ;;  %2266 = vmatprep.mubr.msk.bf16.mxu1 %vm2418_vm0, %v2417_v0 }
 0x217   : > { %2276 = vmatprep.subr.bf16.mxu1 %v2417_v0  ;;  %v1732_v50 = vpop.permute.xlu1 %1731 }
 0x21d   : > { %2267 = vmatmul.mubr.msk.bf16.vlgmr.msra.gmra.mrb[4].mxu1 %vm1153_vm1, %v1334_v39  ;;  %v2673_v39 = vld [vmem:[#allocation2 + $0x30] sm:$0xff] }
 0x21e   : > { %2277 = vmatpush3.bf16.xpose.msra.mxu1 %v1545_v47  ;;  %2278 = vmatprep.mubr.msk.bf16.mxu1 %vm2418_vm0, %v2417_v0 }
 0x21f   : > { %2288 = vmatprep.subr.bf16.mxu1 %v2417_v0 }
 0x225   : > { %2279 = vmatmul.mubr.msk.bf16.vlgmr.msra.gmra.mrb[8].mxu1 %vm1153_vm1, %v1533_v46 }
 0x226   : > { %2289 = vmatpush3.bf16.xpose.msra.mxu1 %v1744_v49  ;;  %2290 = vmatprep.mubr.msk.bf16.mxu1 %vm2418_vm0, %v2417_v0 }
 0x22d   : > { %2291 = vmatmul.mubr.msk.bf16.vlgmr.msra.gmra.mrb[12].mxu1 %vm1153_vm1, %v1732_v50  ;;  %v2344_v50 = vld [vmem:[%s2563_s26] sm:$0xff]  }
 0x2e8   : > { %v2595_v51 = vpop.f32.mrb[0].mxu1 }
 0x2e9   : > { %v2262_v52 = vpop.f32.mrb[1].mxu1 }
 0x2ea   : > { %v2597_v53 = vpop.f32.mrb[2].mxu1  ;;  %v1243_v52 = vsel %vm1205_vm4, %v2576_v42, 0.0 }
 0x2eb   : > { %v2263_v54 = vpop.f32.mrb[3].mxu1 }
 0x2ec   : > { %v1216_v54 = vmul.f32 1.442695, %v1214_v23 }
 0x2ee   : > { %2349 = vpow2.f32 %v1216_v54 }
 0x2f0   : > { %v1382_v55 = vpop.f32.mrb[4].mxu1 }
 0x2f1   : > { %v2602_v56 = vsel %vm1135_vm3, %v1382_v55, -1e+30  ;;  %v2268_v57 = vpop.f32.mrb[5].mxu1 }
 0x2f2   : > { %v1385_v58 = vpop.f32.mrb[6].mxu1  ;;  %v1394_v59 = vsel %vm1205_vm4, %v2602_v56, -inf  ;;  %v1240_v57 = vsel %vm1205_vm4, %v2574_v41, 0.0 }
 0x2f3   : > { %v2609_v60 = vsel %vm1136_vm5, %v1385_v58, -1e+30  ;;  %1395 = vmax.xlane.f32.xlu1 %v1394_v59  ;;  %v2269_v61 = vpop.f32.mrb[7].mxu1  ;;  %v1218_v58 = vmul.f32 1.442695, %v1215_v26 }
 0x2f4   : > { %v1397_v62 = vsel %vm1205_vm4, %v2609_v60, -inf }
 0x2f5   : > { %1398 = vmax.xlane.f32.xlu0 %v1397_v62  ;;  %2351 = vpow2.f32 %v1218_v58 }
 0x2f8   : > { %v1581_v63 = vpop.f32.mrb[8].mxu1  ;;  %v2703_v55 = vpop.eup %2349 }
 0x2f9   : > { %v2616_v1 = vsel %vm1135_vm3, %v1581_v63, -1e+30  ;;  %v2280_v2 = vpop.f32.mrb[9].mxu1 }
 0x2fa   : > { %v1584_v3 = vpop.f32.mrb[10].mxu1  ;;  %v1593_v4 = vsel %vm1205_vm4, %v2616_v1, -inf }
 0x2fb   : > { %v2623_v5 = vsel %vm1136_vm5, %v1584_v3, -1e+30  ;;  %1594 = vmax.xlane.f32.xlu0 %v1593_v4  ;;  %v2281_v9 = vpop.f32.mrb[11].mxu1 }
 0x2fc   : > { %v1596_v10 = vsel %vm1205_vm4, %v2623_v5, -inf }
 0x2fd   : > { %1597 = vmax.xlane.f32.xlu1 %v1596_v10 }
 0x2ff   : > { %v2711_v59 = vpop.eup %2351 }
 0x300   : > { %v1780_v11 = vpop.f32.mrb[12].mxu1 }
 0x301   : > { %v2630_v12 = vsel %vm1135_vm3, %v1780_v11, -1e+30  ;;  %v2292_v13 = vpop.f32.mrb[13].mxu1 }
 0x302   : > { %v1783_v14 = vpop.f32.mrb[14].mxu1  ;;  %v1792_v15 = vsel %vm1205_vm4, %v2630_v12, -inf }
 0x303   : > { %v2637_v16 = vsel %vm1136_vm5, %v1783_v14, -1e+30  ;;  %v2293_v17 = vpop.f32.mrb[15].mxu1  ;;  %1793 = vmax.xlane.f32.xlu0 %v1792_v15 }
 0x304   : > { %v1795_v18 = vsel %vm1205_vm4, %v2637_v16, -inf }
 0x305   : > { %1796 = vmax.xlane.f32.xlu1 %v1795_v18 }
 0x380   : > { %v1396_v20 = vpop.xlane.xlu1 %1395 }
 0x381   : > { %v2644_v27 = vmax.f32 %v2641_v6, %v1396_v20 }
 0x382   : > { %v1399_v28 = vpop.xlane.xlu0 %1398 }
 0x383   : > { %v1402_v29 = vsub.f32 %v2641_v6, %v2644_v27  ;;  %1519 = vst.msk [vmem:[#allocation2 + $0x10] sm:$0xff] %vm322_vm2, %v2644_v27  ;;  %v1401_v7 = vmax.f32 %v1393_v24, %v1399_v28  ;;  %1410 = vperm.xlu0 %2332, %v2644_v27  }
 0x385   : > { %v1403_v30 = vsub.f32 %v1393_v24, %v1401_v7  ;;  %1520 = vst.msk [vmem:[#allocation2 + $0x18] sm:$0xff] %vm322_vm2, %v1401_v7  ;;  %1415 = vperm.xlu1 %2331, %v1401_v7  }
 0x387   : > { %1857 = vrot.lane.b32.xlu0 %v2342_v8, %s2423_s28  ;;  %v1406_v42 = vmul.f32 1.442695, %v1403_v30 }
 0x388   : > { %v1595_v32 = vpop.xlane.xlu0 %1594 }
 0x389   : > { %v2659_v34 = vmax.f32 %v2653_v31, %v1595_v32  ;;  %2353 = vpow2.f32 %v1406_v42  ;;  %v1404_v32 = vmul.f32 1.442695, %v1402_v29 }
 0x38a   : > { %v1598_v35 = vpop.xlane.xlu1 %1597 }
 0x38b   : > { %v1601_v36 = vsub.f32 %v2653_v31, %v2659_v34  ;;  %1718 = vst.msk [vmem:[#allocation2 + $0x20] sm:$0xff] %vm322_vm2, %v2659_v34  ;;  %v2666_v37 = vmax.f32 %v2656_v33, %v1598_v35  ;;  %1609 = vperm.xlu1 %2331, %v2659_v34  }
 0x38d   : > { %v1602_v38 = vsub.f32 %v2656_v33, %v2666_v37  ;;  %1719 = vst.msk [vmem:[#allocation2 + $0x28] sm:$0xff] %vm322_vm2, %v2666_v37  ;;  %v1624_v33 = vld [vmem:[#allocation3 + $0x20] sm:$0xff] }
 0x38f   : > { %1614 = vperm.xlu1 %2331, %v2666_v37  }
 0x390   : > { %v1794_v43 = vpop.xlane.xlu0 %1793 }
 0x391   : > { %v2680_v45 = vmax.f32 %v2673_v39, %v1794_v43  ;;  %v1603_v43 = vmul.f32 1.442695, %v1601_v36 }
 0x392   : > { %v1797_v46 = vpop.xlane.xlu1 %1796 }
 0x393   : > { %1459 = vrot.lane.b32.xlu1 %v2343_v40, %s2421_s23  ;;  %v1800_v47 = vsub.f32 %v2673_v39, %v2680_v45  ;;  %1917 = vst.msk [vmem:[#allocation2 + $0x30] sm:$0xff] %vm322_vm2, %v2680_v45  ;;  %v2688_v48 = vmax.f32 %v2677_v44, %v1797_v46  ;;  %v2714_v19 = vpop.eup %2353 }
 0x395   : > { %v1801_v49 = vsub.f32 %v2677_v44, %v2688_v48  ;;  %1918 = vst.msk [vmem:[#allocation2 + $0x38] sm:$0xff] %vm322_vm2, %v2688_v48  ;;  %v1824_v44 = vld [vmem:[#allocation3 + $0x38] sm:$0xff] }
 0x397   : > { %1808 = vperm.xlu1 %2331, %v2680_v45   ;;  %v1804_v37 = vmul.f32 1.442695, %v1801_v49 }
 0x39b   : > { %1813 = vperm.xlu1 %2331, %v2688_v48  }
 0x39f   : > { %1658 = vrot.lane.b32.xlu1 %v2344_v50, %s2422_s27 }
 0x3a6   : > { %1244 = vadd.xlane.f32.xlu0 %v1243_v52 }
 0x3bc   : > { %1255 = vperm.xlu0 %2332, %v2703_v55  }
 0x3c3   : > { %1241 = vadd.xlane.f32.xlu1 %v1240_v57  ;;  %v1236_v57 = vld [vmem:[#allocation3] sm:$0xff] }
 0x3c4   : > { %v1238_v58 = vmul.f32 %v2703_v55, %v1236_v57 }
 0x3d4   : > { %1260 = vperm.xlu1 %2331, %v2711_v59  }
 0x3d8   : > { %1448 = vperm.xlu1 %2331, %v2714_v19  }
 0x402   : > { %v1411_v21 = vpop.permute.xlu0 %1410 }
 0x403   : > { %v1418_v23 = vsub.f32 %v2602_v56, %v1411_v21 }
 0x404   : > { %v1416_v41 = vpop.permute.xlu1 %1415 }
 0x405   : > { %v1420_v61 = vmul.f32 1.442695, %v1418_v23  ;;  %v1419_v62 = vsub.f32 %v2609_v60, %v1416_v41 }
 0x406   : > { %v1858_v30 = vpop.permute.xlu0 %1857 }
 0x407   : > { %2355 = vpow2.f32 %v1420_v61  ;;  %v1422_v22 = vmul.f32 1.442695, %v1419_v62  ;;  %v1605_v61 = vmul.f32 1.442695, %v1602_v38  ;;  %v1425_v62 = vld [vmem:[#allocation3 + $0x10] sm:$0xff] }
 0x409   : > { %2357 = vpow2.f32 %v1422_v22  ;;  %v1426_v22 = vld [vmem:[#allocation3 + $0x18] sm:$0xff] }
 0x40a   : > { %v1610_v25 = vpop.permute.xlu1 %1609 }
 0x40b   : > { %v1617_v26 = vsub.f32 %v2616_v1, %v1610_v25 }
 0x40d   : > { %v1619_v63 = vmul.f32 1.442695, %v1617_v26 }
 0x40e   : > { %v1615_v2 = vpop.permute.xlu1 %1614 }
 0x40f   : > { %2359 = vpow2.f32 %v1619_v63  ;;  %v1618_v3 = vsub.f32 %v2623_v5, %v1615_v2  ;;  %v1428_v63 = vmul.f32 %v2714_v19, %v1426_v22  ;;  %v1625_v19 = vld [vmem:[#allocation3 + $0x28] sm:$0xff] }
 0x411   : > { %v2356_v4 = vpop.eup %2355  ;;  %v1621_v9 = vmul.f32 1.442695, %v1618_v3 }
 0x412   : > { %v1460_v10 = vpop.permute.xlu1 %1459  ;;  %v1429_v56 = vsel %vm1205_vm4, %v2356_v4, 0.0 }
 0x413   : > { %v2358_v11 = vpop.eup %2357  ;;  %2361 = vpow2.f32 %v1621_v9  ;;  %1430 = vadd.xlane.f32.xlu1 %v1429_v56  ;;  %2271 = vmatpush3.bf16.msra.mxu0 %v1460_v10 }
 0x414   : > { %v1432_v60 = vsel %vm1205_vm4, %v2358_v11, 0.0  ;;  %v1453_v13 = vpack.c.bf16 %v2358_v11, %v2356_v4  ;;  %2282 = vmatprep.subr.bf16.mxu0 %v2417_v0  ;;  %v1823_v11 = vld [vmem:[#allocation3 + $0x30] sm:$0xff] }
 0x415   : > { %1433 = vadd.xlane.f32.xlu0 %v1432_v60 }
 0x416   : > { %2273 = vmatmul.mubr.msk.bf16.vlgmr.msra.gmra.mrb[4].mxu0 %vm1205_vm4, %v1453_v13  ;;  %v1809_v1 = vpop.permute.xlu1 %1808 }
 0x417   : > { %v1816_v5 = vsub.f32 %v2630_v12, %v1809_v1  ;;  %2284 = vmatprep.mubr.msk.bf16.mxu0 %vm2418_vm0, %v2417_v0 }
 0x419   : > { %v2360_v14 = vpop.eup %2359  ;;  %v1818_v15 = vmul.f32 1.442695, %v1816_v5 }
 0x41a   : > { %v1814_v17 = vpop.permute.xlu1 %1813  ;;  %v1628_v18 = vsel %vm1205_vm4, %v2360_v14, 0.0 }
 0x41b   : > { %2363 = vpow2.f32 %v1818_v15  ;;  %v1817_v20 = vsub.f32 %v2637_v16, %v1814_v17  ;;  %1629 = vadd.xlane.f32.xlu1 %v1628_v18 }
 0x41d   : > { %v2362_v24 = vpop.eup %2361  ;;  %v1820_v28 = vmul.f32 1.442695, %v1817_v20 }
 0x41e   : > { %v1659_v7 = vpop.permute.xlu1 %1658  ;;  %v1631_v8 = vsel %vm1205_vm4, %v2362_v24, 0.0  ;;  %v1652_v12 = vpack.c.bf16 %v2362_v24, %v2360_v14 }
 0x41f   : > { %2365 = vpow2.f32 %v1820_v28  ;;  %1632 = vadd.xlane.f32.xlu0 %v1631_v8  ;;  %2283 = vmatpush3.bf16.msra.mxu0 %v1659_v7 }
 0x420   : > { %2294 = vmatprep.subr.bf16.mxu0 %v2417_v0  ;;  %2367 = vpow2.f32 %v1404_v32 }
 0x421   : > { %2369 = vpow2.f32 %v1603_v43 }
 0x422   : > { %2285 = vmatmul.mubr.msk.bf16.vlgmr.msra.gmra.mrb[8].mxu0 %vm1205_vm4, %v1652_v12  ;;  %2371 = vpow2.f32 %v1605_v61 }
 0x423   : > { %2295 = vmatpush3.bf16.msra.mxu0 %v1858_v30  ;;  %2296 = vmatprep.mubr.msk.bf16.mxu0 %vm2418_vm0, %v2417_v0  ;;  %v1237_v0 = vld [vmem:[#allocation3 + $0x8] sm:$0xff] }
 0x424   : > { %v1239_v6 = vmul.f32 %v2711_v59, %v1237_v0 }
 0x425   : > { %v2364_v16 = vpop.eup %2363 }
 0x426   : > { %v1827_v35 = vsel %vm1205_vm4, %v2364_v16, 0.0 }
 0x427   : > { %1828 = vadd.xlane.f32.xlu1 %v1827_v35 }
 0x429   : > { %v2366_v40 = vpop.eup %2365 }
 0x42a   : > { %v1830_v46 = vsel %vm1205_vm4, %v2366_v40, 0.0  ;;  %v1851_v50 = vpack.c.bf16 %v2366_v40, %v2364_v16  ;;  %v2368_v29 = vpop.eup %2367 }
 0x42b   : > { %1831 = vadd.xlane.f32.xlu1 %v1830_v46  ;;  %v2370_v54 = vpop.eup %2369  ;;  %v1427_v55 = vmul.f32 %v2368_v29, %v1425_v62 }
 0x42c   : > { %2297 = vmatmul.mubr.msk.bf16.vlgmr.msra.gmra.mrb[12].mxu0 %vm1205_vm4, %v1851_v50  ;;  %v1626_v38 = vmul.f32 %v2370_v54, %v1624_v33  ;;  %v2372_v4 = vpop.eup %2371 }
 0x42d   : > { %v1627_v39 = vmul.f32 %v2372_v4, %v1625_v19 }
 0x433   : > { %v1245_v27 = vpop.xlane.xlu0 %1244 }
 0x434   : > { %v1247_v52 = vadd.f32 %v1245_v27, %v1239_v6 }
 0x435   : > { %1443 = vperm.xlu0 %2332, %v2368_v29  }
 0x436   : > { %1250 = vst.msk [vmem:[#allocation3 + $0x8] sm:$0xff] %vm322_vm2, %v1247_v52 }
 0x439   : > { %1642 = vperm.xlu0 %2332, %v2370_v54  }
 0x43b   : > { %v1256_v31 = vpop.permute.xlu0 %1255 }
 0x43c   : > { %v1263_v34 = vmul.f32 0.0, %v1256_v31 }
 0x43d   : > { %v1920_v7 = vld [vmem:[#allocation3 + $0x8] sm:$0xff] }
 0x43e   : > { %v1316_v36 = vadd.f32 %v2595_v51, %v1263_v34 }
 0x440   : > { %1318 = vst.msk [vmem:[#allocation4] sm:$0xff] %vm1153_vm1, %v1316_v36 }
 0x450   : > { %v1242_v42 = vpop.xlane.xlu1 %1241 }
 0x451   : > { %v1246_v21 = vadd.f32 %v1242_v42, %v1238_v58 }
 0x453   : > { %1249 = vst.msk [vmem:[#allocation3] sm:$0xff] %vm322_vm2, %v1246_v21 }
 0x454   : > { %v1261_v59 = vpop.permute.xlu1 %1260 }
 0x455   : > { %v1264_v23 = vmul.f32 0.0, %v1261_v59  ;;  %v1439_v59 = vld [vmem:[#allocation4] sm:$0xff] }
 0x457   : > { %v1317_v41 = vadd.f32 %v2597_v53, %v1264_v23  ;;  %v1802_v53 = vmul.f32 1.442695, %v1800_v47 }
 0x458   : > { %v2755_v51 = vpop.permute.xlu1 %1448 }
 0x459   : > { %1319 = vst.msk [vmem:[#allocation4 + $0x8] sm:$0xff] %vm1153_vm1, %v1317_v41  ;;  %2373 = vpow2.f32 %v1802_v53 }
 0x45a   : > { %2375 = vpow2.f32 %v1804_v37  ;;  %v1919_v15 = vld [vmem:[#allocation3] sm:$0xff] }
 0x45b   : > { %2377 = vrcp.f32 %v1919_v15 }
 0x460   : > { %v1440_v21 = vld [vmem:[#allocation4 + $0x8] sm:$0xff] }
 0x461   : > { %v1452_v62 = vmul.f32 %v2755_v51, %v1440_v21 }
 0x463   : > { %v2374_v56 = vpop.eup %2373 }
 0x464   : > { %v1825_v60 = vmul.f32 %v2374_v56, %v1823_v11  ;;  %v2376_v13 = vpop.eup %2375 }
 0x465   : > { %v1826_v49 = vmul.f32 %v2376_v13, %v1824_v44  ;;  %v2378_v12 = vpop.eup %2377 }
 0x4a0   : > { %v1431_v25 = vpop.xlane.xlu1 %1430 }
 0x4a1   : > { %v1435_v26 = vadd.f32 %v1431_v25, %v1427_v55 }
 0x4a2   : > { %v1434_v2 = vpop.xlane.xlu0 %1433 }
 0x4a3   : > { %1437 = vst.msk [vmem:[#allocation3 + $0x10] sm:$0xff] %vm322_vm2, %v1435_v26  ;;  %v1436_v3 = vadd.f32 %v1434_v2, %v1428_v63 }
 0x4a5   : > { %1438 = vst.msk [vmem:[#allocation3 + $0x18] sm:$0xff] %vm322_vm2, %v1436_v3 }
 0x4a8   : > { %v1630_v9 = vpop.xlane.xlu1 %1629 }
 0x4a9   : > { %v1634_v10 = vadd.f32 %v1630_v9, %v1626_v38 }
 0x4aa   : > { %v1948_v28 = vld [vmem:[#allocation3 + $0x10] sm:$0xff] }
 0x4ab   : > { %1636 = vst.msk [vmem:[#allocation3 + $0x20] sm:$0xff] %vm322_vm2, %v1634_v10  ;;  %2379 = vrcp.f32 %v1948_v28 }
 0x4ac   : > { %v1633_v45 = vpop.xlane.xlu0 %1632  ;;  %2381 = vrcp.f32 %v1920_v7  ;;  %v1949_v8 = vld [vmem:[#allocation3 + $0x18] sm:$0xff] }
 0x4ad   : > { %v1635_v47 = vadd.f32 %v1633_v45, %v1627_v39  ;;  %2383 = vrcp.f32 %v1949_v8 }
 0x4af   : > { %1637 = vst.msk [vmem:[#allocation3 + $0x28] sm:$0xff] %vm322_vm2, %v1635_v47 }
 0x4b2   : > { %v1977_v32 = vld [vmem:[#allocation3 + $0x20] sm:$0xff] }
 0x4b3   : > { %2385 = vrcp.f32 %v1977_v32 }
 0x4b4   : > { %v1829_v1 = vpop.xlane.xlu1 %1828  ;;  %v1444_v42 = vpop.permute.xlu0 %1443 }
 0x4b5   : > { %v1833_v48 = vadd.f32 %v1829_v1, %v1825_v60  ;;  %v2380_v43 = vpop.eup %2379  ;;  %v1451_v41 = vmul.f32 %v1444_v42, %v1439_v59 }
 0x4b6   : > { %v1978_v50 = vld [vmem:[#allocation3 + $0x28] sm:$0xff]  ;;  %v2382_v0 = vpop.eup %2381 }
 0x4b7   : > { %1835 = vst.msk [vmem:[#allocation3 + $0x30] sm:$0xff] %vm322_vm2, %v1833_v48  ;;  %v2384_v52 = vpop.eup %2383 }
 0x4b8   : > { %v1832_v5 = vpop.xlane.xlu1 %1831  ;;  %v1643_v23 = vpop.permute.xlu0 %1642 }
 0x4b9   : > { %v1834_v14 = vadd.f32 %v1832_v5, %v1826_v49 }
 0x4bb   : > { %1836 = vst.msk [vmem:[#allocation3 + $0x38] sm:$0xff] %vm322_vm2, %v1834_v14 }
 0x4bd   : > { %v2386_v34 = vpop.eup %2385 }
 0x4be   : > { %v2006_v46 = vld [vmem:[#allocation3 + $0x30] sm:$0xff] }
 0x4bf   : > { %2387 = vrcp.f32 %v2006_v46 }
 0x4c0   : > { %2389 = vrcp.f32 %v1978_v50 }
 0x4c2   : > { %v2007_v29 = vld [vmem:[#allocation3 + $0x38] sm:$0xff] }
 0x4c3   : > { %2391 = vrcp.f32 %v2007_v29 }
 0x4c9   : > { %v2388_v36 = vpop.eup %2387 }
 0x4ca   : > { %v2390_v57 = vpop.eup %2389 }
 0x4cd   : > { %v2392_v58 = vpop.eup %2391 }
 0x4e9   : > { %v1499_v17 = vpop.f32.mrb[4].mxu0 }
 0x4ea   : > { %1508 = vrot.lane.b32.xlu1 %v1499_v17, %s2423_s28  ;;  %v2274_v18 = vpop.f32.mrb[5].mxu0 }
 0x4eb   : > { %v1502_v20 = vpop.f32.mrb[6].mxu0 }
 0x4ec   : > { %1510 = vrot.lane.b32.xlu0 %v1502_v20, %s2423_s28  ;;  %v2275_v24 = vpop.f32.mrb[7].mxu0 }
 0x4ee   : > { %1647 = vperm.xlu1 %2331, %v2372_v4  }
 0x4f0   : > { %1846 = vperm.xlu0 %2332, %v2376_v13  }
 0x4f2   : > { %1841 = vperm.xlu1 %2331, %v2374_v56  }
 0x4f5   : > { %v1698_v30 = vpop.f32.mrb[8].mxu0 }
 0x4f6   : > { %1927 = vperm.xlu1 %2331, %v2378_v12   ;;  %1707 = vrot.lane.b32.xlu0 %v1698_v30, %s2422_s27  ;;  %v2286_v16 = vpop.f32.mrb[9].mxu0 }
 0x4f7   : > { %v1701_v35 = vpop.f32.mrb[10].mxu0 }
 0x4f8   : > { %v2287_v40 = vpop.f32.mrb[11].mxu0 }
 0x4fa   : > { %1956 = vperm.xlu1 %2331, %v2380_v43   ;;  %1709 = vrot.lane.b32.xlu0 %v1701_v35, %s2422_s27 }
 0x4fe   : > { %1932 = vperm.xlu0 %2332, %v2382_v0  }
 0x4ff   : > { %v1897_v6 = vpop.f32.mrb[12].mxu0 }
 0x500   : > { %1906 = vrot.lane.b32.xlu1 %v1897_v6, %s2421_s23  ;;  %v2298_v27 = vpop.f32.mrb[13].mxu0 }
 0x501   : > { %v1900_v54 = vpop.f32.mrb[14].mxu0 }
 0x502   : > { %1961 = vperm.xlu0 %2332, %v2384_v52   ;;  %v2299_v31 = vpop.f32.mrb[15].mxu0 }
 0x504   : > { %1985 = vperm.xlu1 %2331, %v2386_v34  }
 0x506   : > { %1908 = vrot.lane.b32.xlu0 %v1900_v54, %s2421_s23 }
 0x508   : > { %2014 = vperm.xlu1 %2331, %v2388_v36  }
 0x50a   : > { %1990 = vperm.xlu0 %2332, %v2390_v57  }
 0x50e   : > { %2019 = vperm.xlu0 %2332, %v2392_v58  }
 0x55c   : > { %v1509_v61 = vpop.permute.xlu1 %1508 }
 0x55d   : > { %v1514_v22 = vadd.f32 %v1509_v61, %v1451_v41 }
 0x55e   : > { %v1511_v55 = vpop.permute.xlu0 %1510 }
 0x55f   : > { %1517 = vst.msk [vmem:[#allocation4] sm:$0xff] %vm1516_vm6, %v1514_v22  ;;  %v1515_v25 = vadd.f32 %v1511_v55, %v1452_v62 }
 0x561   : > { %1518 = vst.msk [vmem:[#allocation4 + $0x8] sm:$0xff] %vm1516_vm6, %v1515_v25 }
 0x566   : > { %v1638_v53 = vld [vmem:[#allocation4] sm:$0xff] }
 0x567   : > { %v1650_v3 = vmul.f32 %v1643_v23, %v1638_v53 }
 0x568   : > { %v1639_v38 = vld [vmem:[#allocation4 + $0x8] sm:$0xff] }
 0x56d   : > { %v1648_v26 = vpop.permute.xlu1 %1647 }
 0x56e   : > { %v1651_v9 = vmul.f32 %v1648_v26, %v1639_v38 }
 0x56f   : > { %v1847_v63 = vpop.permute.xlu0 %1846 }
 0x571   : > { %v1842_v2 = vpop.permute.xlu1 %1841 }
 0x573   : > { %v1708_v33 = vpop.permute.xlu0 %1707 }
 0x574   : > { %v1713_v37 = vadd.f32 %v1708_v33, %v1650_v3 }
 0x575   : > { %v1928_v4 = vpop.permute.xlu1 %1927 }
 0x576   : > { %1716 = vst.msk [vmem:[#allocation4] sm:$0xff] %vm1715_vm7, %v1713_v37 }
 0x577   : > { %v1710_v19 = vpop.permute.xlu0 %1709 }
 0x578   : > { %v1714_v10 = vadd.f32 %v1710_v19, %v1651_v9 }
 0x579   : > { %v1957_v51 = vpop.permute.xlu1 %1956 }
 0x57a   : > { %1717 = vst.msk [vmem:[#allocation4 + $0x8] sm:$0xff] %vm1715_vm7, %v1714_v10 }
 0x57d   : > { %v1933_v39 = vpop.permute.xlu0 %1932  ;;  %v1837_v45 = vld [vmem:[#allocation4] sm:$0xff]  ;;  %v1907_v56 = vpop.permute.xlu1 %1906 }
 0x57e   : > { %v1849_v47 = vmul.f32 %v1842_v2, %v1837_v45 }
 0x580   : > { %v1912_v11 = vadd.f32 %v1907_v56, %v1849_v47 }
 0x581   : > { %v1962_v60 = vpop.permute.xlu0 %1961  ;;  %v1838_v13 = vld [vmem:[#allocation4 + $0x8] sm:$0xff] }
 0x582   : > { %1915 = vst.msk [vmem:[#allocation4] sm:$0xff] %vm1914_vm8, %v1912_v11  ;;  %v1850_v44 = vmul.f32 %v1847_v63, %v1838_v13 }
 0x583   : > { %v1986_v1 = vpop.permute.xlu1 %1985 }
 0x585   : > { %v1909_v48 = vpop.permute.xlu0 %1908 }
 0x586   : > { %v1913_v49 = vadd.f32 %v1909_v48, %v1850_v44 }
 0x587   : > { %v2015_v18 = vpop.permute.xlu1 %2014 }
 0x588   : > { %1916 = vst.msk [vmem:[#allocation4 + $0x8] sm:$0xff] %vm1914_vm8, %v1913_v49 }
 0x589   : > { %v1923_v5 = vld [vmem:[#allocation4] sm:$0xff]  ;;  %v1991_v20 = vpop.permute.xlu0 %1990 }
 0x58a   : > { %v1935_v14 = vmul.f32 %v1928_v4, %v1923_v5  ;;  %v1964_v15 = vmul.f32 %v1957_v51, %v1923_v5  ;;  %v1993_v17 = vmul.f32 %v1986_v1, %v1923_v5  ;;  %v2022_v24 = vmul.f32 %v2015_v18, %v1923_v5 }
 0x58c   : > { %v2228_v28 = vpack.c.bf16 %v1935_v14, %v1935_v14  ;;  %v2230_v7 = vpack.c.bf16 %v1964_v15, %v1964_v15  ;;  %v2232_v8 = vpack.c.bf16 %v1993_v17, %v1993_v17  ;;  %v2234_v12 = vpack.c.bf16 %v2022_v24, %v2022_v24 }
 0x58d   : > { %v2020_v40 = vpop.permute.xlu0 %2019 }
 0x58e   : > { %1946 = vst.msk [vmem:[%s315_s4] sm:$0xf] %vm1945_vm9, %v2228_v28 }
 0x58f   : > { %1975 = vst.msk [vmem:[%s315_s4] sm:$0xf] %vm1974_vm10, %v2230_v7  ;;  %v1924_v30 = vld [vmem:[#allocation4 + $0x8] sm:$0xff] }
 0x590   : > { %2004 = vst.msk [vmem:[%s315_s4] sm:$0xf] %vm2003_vm11, %v2232_v8  ;;  %v1936_v16 = vmul.f32 %v1933_v39, %v1924_v30  ;;  %v1965_v32 = vmul.f32 %v1962_v60, %v1924_v30  ;;  %v1994_v35 = vmul.f32 %v1991_v20, %v1924_v30  ;;  %v2023_v43 = vmul.f32 %v2020_v40, %v1924_v30 }
 0x591   : > { %2033 = vst.msk [vmem:[%s315_s4] sm:$0xf] %vm2032_vm12, %v2234_v12 }
 0x592   : > { %v2229_v46 = vpack.c.bf16 %v1936_v16, %v1936_v16  ;;  %v2231_v50 = vpack.c.bf16 %v1965_v32, %v1965_v32  ;;  %v2233_v0 = vpack.c.bf16 %v1994_v35, %v1994_v35  ;;  %v2235_v6 = vpack.c.bf16 %v2023_v43, %v2023_v43 }
 0x594   : > { %1947 = vst.msk [vmem:[%s315_s4 + $0x4] sm:$0xf] %vm1945_vm9, %v2229_v46 }
 0x595   : > { %1976 = vst.msk [vmem:[%s315_s4 + $0x4] sm:$0xf] %vm1974_vm10, %v2231_v50 }
 0x596   : > { %2005 = vst.msk [vmem:[%s315_s4 + $0x4] sm:$0xf] %vm2003_vm11, %v2233_v0 }
 0x597   : > { %2034 = vst.msk [vmem:[%s315_s4 + $0x4] sm:$0xf] %vm2032_vm12, %v2235_v6 }
 0x598 PF: > { %s13_s14 = sadd.s32 1, %s2415_s14   ;;  %s2802_s12 = smov %s2411_s13 }
 0x599   : > { %p10_p5 = scmp.ge.s32.totalorder %s13_s14, 4   ;;  %s2803_s13 = smov %s2805_s15 }
 0x59b   :  { %12 = sbr.rel (!%p10_p5) target bundleno = 2 (0x2), region = 92 }

</bundles_post_ra>
